<compile_context>
chip_gen: v5e
topology: v5e:2x2
jax: 0.10.0
libtpu: 0.0.40
codegen_flags: <defaults>
</compile_context>

<pallas_src>
import functools

import jax
import jax.numpy as jnp
from jax import lax
from jax.experimental import pallas as pl
from jax.experimental.pallas import tpu as pltpu

IMAGENET_MEAN = jnp.array([0.485, 0.456, 0.406], dtype=jnp.float32)
IMAGENET_STD = jnp.array([0.229, 0.224, 0.225], dtype=jnp.float32)


# ------------------------------ Pallas kernel ------------------------------
def _dream_tile_kernel(x_ref, w_ref, out_ref):
    """Fused (norm-folded) 3x3 conv + ReLU + squared-sum on one row tile.

    x_ref  : (1, Cin, TILE_ROWS + 2, W + 2) VMEM  mean-subtracted, zero padded
    w_ref  : (Cout, Cin * 9)                SMEM  conv weights, 1/std folded in
    out_ref: (1, 8, 128)                    VMEM  partial loss (broadcast tile)
    """
    x = x_ref[0]                        # (Cin, TH + 2, W + 2)
    cin, thp, wp = x.shape
    th, w = thp - 2, wp - 2
    cout = w_ref.shape[0]

    # 27 shifted views of the padded tile, built once in VMEM and shared by
    # all output channels (this is the in-VMEM "im2col" -- never touches HBM).
    shifted = [x[c, di:di + th, dj:dj + w]
               for c in range(cin) for di in range(3) for dj in range(3)]

    total = jnp.zeros((th, w), jnp.float32)
    for o in range(cout):
        acc = jnp.zeros((th, w), jnp.float32)
        for k, xs in enumerate(shifted):
            acc = acc + w_ref[o, k] * xs        # SMEM scalar x lane-dense slab
        r = jnp.maximum(acc, 0.0)               # ReLU
        total = total + r * r                   # |act|^2 summed over channels
    partial = -jnp.sum(total)                   # DeepDreamLoss sign

    out_ref[...] = jnp.full(out_ref.shape, partial, dtype=jnp.float32)


# ------------------------------ JAX wrapper --------------------------------
def _pick_tile_rows(h):
    for cand in (128, 64, 32, 16, 8, 4, 2, 1):
        if h % cand == 0:
            return cand
    return h


def deepdream_forward(img, weight, tile_rows=None):
    """loss = DeepDreamLoss(dream_layer(ImageNetInputNorm(img)))."""
    # TODO(synk): the PyTorch recipe applies a random crop img[:, :, rnd:, rnd:]
    # (rnd = randint(0, 10)) and octave striding; fixed to rnd=0 / octave=1 so
    # the kernel is deterministic.
    n, cin, h, w = img.shape
    cout, cin_w, kh, kw = weight.shape
    assert cin_w == cin and kh == 3 and kw == 3
    th = _pick_tile_rows(h) if tile_rows is None else tile_rows
    assert h % th == 0  # TODO(synk): mask a ragged last row tile when h % th != 0
    t = h // th
    g = n * t

    # Fold 1/std into the conv weights (exact: the conv is linear in its input).
    w_folded = weight.astype(jnp.float32) / IMAGENET_STD.reshape(1, cin, 1, 1)
    w_mat = w_folded.reshape(cout, cin * kh * kw)

    # Mean subtraction + zero pad: the zero border of (img - mean) matches the
    # zero pad of the normalized image, so no bias correction is needed.
    x0 = img.astype(jnp.float32) - IMAGENET_MEAN.reshape(1, cin, 1, 1)
    x0p = jnp.pad(x0, ((0, 0), (0, 0), (1, 1), (1, 1)))

    # Row tiles with a 2-row halo (pure data movement, ~2/th byte overhead;
    # stays a single XLA fusion, no 9x im2col expansion).
    tiles = jnp.stack(
        [x0p[:, :, i * th:i * th + th + 2, :] for i in range(t)], axis=1)
    tiles = tiles.reshape(g, cin, th + 2, w + 2)

    flops = 2 * n * h * w * cout * cin * kh * kw
    bytes_accessed = tiles.size * 4 + w_mat.size * 4 + g * 8 * 128 * 4

    partials = pl.pallas_call(
        _dream_tile_kernel,
        out_shape=jax.ShapeDtypeStruct((g, 8, 128), jnp.float32),
        grid=(g,),
        in_specs=[
            pl.BlockSpec((1, cin, th + 2, w + 2), lambda i: (i, 0, 0, 0)),
            pl.BlockSpec((cout, cin * kh * kw), lambda i: (0, 0),
                         memory_space=pltpu.MemorySpace.SMEM),
        ],
        out_specs=pl.BlockSpec((1, 8, 128), lambda i: (i, 0, 0)),
        compiler_params=pltpu.CompilerParams(
            dimension_semantics=("parallel",),
            vmem_limit_bytes=32 * 1024 * 1024),
        cost_estimate=pl.CostEstimate(
            flops=flops, transcendentals=0, bytes_accessed=bytes_accessed),
    )(tiles, w_mat)

    # Tiny final reduction over per-tile partial losses (done in plain JAX).
    return jnp.sum(partials[:, 0, 0])


# ---------------------------------- main -----------------------------------
if __name__ == "__main__":
    key = jax.random.PRNGKey(0)
    k_img, k_w = jax.random.split(key)
    N, C, H, W = 2, 3, 16, 16
    COUT = 8

    img = jax.random.uniform(k_img, (N, C, H, W), dtype=jnp.float32)
    # Deterministic synthetic weights for the dream layer: Conv2d(3, 8, 3x3).
    weight = 0.1 * jax.random.normal(k_w, (COUT, C, 3, 3), dtype=jnp.float32)

    fwd = jax.jit(functools.partial(deepdream_forward, tile_rows=8))
    loss = fwd(img, weight)
    jax.block_until_ready(loss)

    # Pure-JAX reference (explicit normalize + NCHW conv) for validation.
    mean = IMAGENET_MEAN.reshape(1, C, 1, 1)
    std = IMAGENET_STD.reshape(1, C, 1, 1)
    xn_ref = (img - mean) / std
    act_ref = lax.conv_general_dilated(
        xn_ref, weight, window_strides=(1, 1), padding=((1, 1), (1, 1)),
        dimension_numbers=("NCHW", "OIHW", "NCHW"))
    act_ref = jnp.maximum(act_ref, 0.0)
    loss_ref = -jnp.sum(act_ref ** 2)

    assert jnp.allclose(loss, loss_ref, rtol=2e-3, atol=2e-3), (loss, loss_ref)
    print("KERNEL_OK")
</pallas_src>

<mosaic_0001>
module attributes {stable_mosaic.version = 11 : i64} {
  func.func @_dream_tile_kernel(%arg0: i32, %arg1: memref<1x3x10x18xf32, #tpu.memory_space<vmem>>, %arg2: memref<8x27xf32, #tpu.memory_space<smem>>, %arg3: memref<1x8x128xf32, #tpu.memory_space<vmem>>) attributes {dimension_semantics = [#tpu.dimension_semantics<parallel>], iteration_bounds = array<i64: 4>, scalar_prefetch = 0 : i64, scratch_operands = 0 : i64, tpu.core_type = #tpu.core_type<tc>, window_params = [{transform_indices = @transform_0, window_bounds = array<i64: 1, 3, 10, 18>}, {transform_indices = @transform_1, window_bounds = array<i64: 8, 27>}, {transform_indices = @transform_2, window_bounds = array<i64: 1, 8, 128>}]} {
    %c0 = arith.constant 0 : index
    %c0_0 = arith.constant 0 : index
    %c0_1 = arith.constant 0 : index
    %c0_2 = arith.constant 0 : index
    %0 = vector.load %arg1[%c0, %c0_0, %c0_1, %c0_2] : memref<1x3x10x18xf32, #tpu.memory_space<vmem>>, vector<1x3x10x18xf32>
    %1 = vector.shape_cast %0 : vector<1x3x10x18xf32> to vector<3x10x18xf32>
    %2 = vector.extract_strided_slice %1 {offsets = [0, 0, 0], sizes = [1, 8, 16], strides = [1, 1, 1]} : vector<3x10x18xf32> to vector<1x8x16xf32>
    %3 = vector.shape_cast %2 : vector<1x8x16xf32> to vector<8x16xf32>
    %4 = vector.extract_strided_slice %1 {offsets = [0, 0, 1], sizes = [1, 8, 16], strides = [1, 1, 1]} : vector<3x10x18xf32> to vector<1x8x16xf32>
    %5 = vector.shape_cast %4 : vector<1x8x16xf32> to vector<8x16xf32>
    %6 = vector.extract_strided_slice %1 {offsets = [0, 0, 2], sizes = [1, 8, 16], strides = [1, 1, 1]} : vector<3x10x18xf32> to vector<1x8x16xf32>
    %7 = vector.shape_cast %6 : vector<1x8x16xf32> to vector<8x16xf32>
    %8 = vector.extract_strided_slice %1 {offsets = [0, 1, 0], sizes = [1, 8, 16], strides = [1, 1, 1]} : vector<3x10x18xf32> to vector<1x8x16xf32>
    %9 = vector.shape_cast %8 : vector<1x8x16xf32> to vector<8x16xf32>
    %10 = vector.extract_strided_slice %1 {offsets = [0, 1, 1], sizes = [1, 8, 16], strides = [1, 1, 1]} : vector<3x10x18xf32> to vector<1x8x16xf32>
    %11 = vector.shape_cast %10 : vector<1x8x16xf32> to vector<8x16xf32>
    %12 = vector.extract_strided_slice %1 {offsets = [0, 1, 2], sizes = [1, 8, 16], strides = [1, 1, 1]} : vector<3x10x18xf32> to vector<1x8x16xf32>
    %13 = vector.shape_cast %12 : vector<1x8x16xf32> to vector<8x16xf32>
    %14 = vector.extract_strided_slice %1 {offsets = [0, 2, 0], sizes = [1, 8, 16], strides = [1, 1, 1]} : vector<3x10x18xf32> to vector<1x8x16xf32>
    %15 = vector.shape_cast %14 : vector<1x8x16xf32> to vector<8x16xf32>
    %16 = vector.extract_strided_slice %1 {offsets = [0, 2, 1], sizes = [1, 8, 16], strides = [1, 1, 1]} : vector<3x10x18xf32> to vector<1x8x16xf32>
    %17 = vector.shape_cast %16 : vector<1x8x16xf32> to vector<8x16xf32>
    %18 = vector.extract_strided_slice %1 {offsets = [0, 2, 2], sizes = [1, 8, 16], strides = [1, 1, 1]} : vector<3x10x18xf32> to vector<1x8x16xf32>
    %19 = vector.shape_cast %18 : vector<1x8x16xf32> to vector<8x16xf32>
    %20 = vector.extract_strided_slice %1 {offsets = [1, 0, 0], sizes = [1, 8, 16], strides = [1, 1, 1]} : vector<3x10x18xf32> to vector<1x8x16xf32>
    %21 = vector.shape_cast %20 : vector<1x8x16xf32> to vector<8x16xf32>
    %22 = vector.extract_strided_slice %1 {offsets = [1, 0, 1], sizes = [1, 8, 16], strides = [1, 1, 1]} : vector<3x10x18xf32> to vector<1x8x16xf32>
    %23 = vector.shape_cast %22 : vector<1x8x16xf32> to vector<8x16xf32>
    %24 = vector.extract_strided_slice %1 {offsets = [1, 0, 2], sizes = [1, 8, 16], strides = [1, 1, 1]} : vector<3x10x18xf32> to vector<1x8x16xf32>
    %25 = vector.shape_cast %24 : vector<1x8x16xf32> to vector<8x16xf32>
    %26 = vector.extract_strided_slice %1 {offsets = [1, 1, 0], sizes = [1, 8, 16], strides = [1, 1, 1]} : vector<3x10x18xf32> to vector<1x8x16xf32>
    %27 = vector.shape_cast %26 : vector<1x8x16xf32> to vector<8x16xf32>
    %28 = vector.extract_strided_slice %1 {offsets = [1, 1, 1], sizes = [1, 8, 16], strides = [1, 1, 1]} : vector<3x10x18xf32> to vector<1x8x16xf32>
    %29 = vector.shape_cast %28 : vector<1x8x16xf32> to vector<8x16xf32>
    %30 = vector.extract_strided_slice %1 {offsets = [1, 1, 2], sizes = [1, 8, 16], strides = [1, 1, 1]} : vector<3x10x18xf32> to vector<1x8x16xf32>
    %31 = vector.shape_cast %30 : vector<1x8x16xf32> to vector<8x16xf32>
    %32 = vector.extract_strided_slice %1 {offsets = [1, 2, 0], sizes = [1, 8, 16], strides = [1, 1, 1]} : vector<3x10x18xf32> to vector<1x8x16xf32>
    %33 = vector.shape_cast %32 : vector<1x8x16xf32> to vector<8x16xf32>
    %34 = vector.extract_strided_slice %1 {offsets = [1, 2, 1], sizes = [1, 8, 16], strides = [1, 1, 1]} : vector<3x10x18xf32> to vector<1x8x16xf32>
    %35 = vector.shape_cast %34 : vector<1x8x16xf32> to vector<8x16xf32>
    %36 = vector.extract_strided_slice %1 {offsets = [1, 2, 2], sizes = [1, 8, 16], strides = [1, 1, 1]} : vector<3x10x18xf32> to vector<1x8x16xf32>
    %37 = vector.shape_cast %36 : vector<1x8x16xf32> to vector<8x16xf32>
    %38 = vector.extract_strided_slice %1 {offsets = [2, 0, 0], sizes = [1, 8, 16], strides = [1, 1, 1]} : vector<3x10x18xf32> to vector<1x8x16xf32>
    %39 = vector.shape_cast %38 : vector<1x8x16xf32> to vector<8x16xf32>
    %40 = vector.extract_strided_slice %1 {offsets = [2, 0, 1], sizes = [1, 8, 16], strides = [1, 1, 1]} : vector<3x10x18xf32> to vector<1x8x16xf32>
    %41 = vector.shape_cast %40 : vector<1x8x16xf32> to vector<8x16xf32>
    %42 = vector.extract_strided_slice %1 {offsets = [2, 0, 2], sizes = [1, 8, 16], strides = [1, 1, 1]} : vector<3x10x18xf32> to vector<1x8x16xf32>
    %43 = vector.shape_cast %42 : vector<1x8x16xf32> to vector<8x16xf32>
    %44 = vector.extract_strided_slice %1 {offsets = [2, 1, 0], sizes = [1, 8, 16], strides = [1, 1, 1]} : vector<3x10x18xf32> to vector<1x8x16xf32>
    %45 = vector.shape_cast %44 : vector<1x8x16xf32> to vector<8x16xf32>
    %46 = vector.extract_strided_slice %1 {offsets = [2, 1, 1], sizes = [1, 8, 16], strides = [1, 1, 1]} : vector<3x10x18xf32> to vector<1x8x16xf32>
    %47 = vector.shape_cast %46 : vector<1x8x16xf32> to vector<8x16xf32>
    %48 = vector.extract_strided_slice %1 {offsets = [2, 1, 2], sizes = [1, 8, 16], strides = [1, 1, 1]} : vector<3x10x18xf32> to vector<1x8x16xf32>
    %49 = vector.shape_cast %48 : vector<1x8x16xf32> to vector<8x16xf32>
    %50 = vector.extract_strided_slice %1 {offsets = [2, 2, 0], sizes = [1, 8, 16], strides = [1, 1, 1]} : vector<3x10x18xf32> to vector<1x8x16xf32>
    %51 = vector.shape_cast %50 : vector<1x8x16xf32> to vector<8x16xf32>
    %52 = vector.extract_strided_slice %1 {offsets = [2, 2, 1], sizes = [1, 8, 16], strides = [1, 1, 1]} : vector<3x10x18xf32> to vector<1x8x16xf32>
    %53 = vector.shape_cast %52 : vector<1x8x16xf32> to vector<8x16xf32>
    %54 = vector.extract_strided_slice %1 {offsets = [2, 2, 2], sizes = [1, 8, 16], strides = [1, 1, 1]} : vector<3x10x18xf32> to vector<1x8x16xf32>
    %55 = vector.shape_cast %54 : vector<1x8x16xf32> to vector<8x16xf32>
    %cst = arith.constant 0.000000e+00 : f32
    %56 = vector.broadcast %cst : f32 to vector<8x16xf32>
    %cst_3 = arith.constant 0.000000e+00 : f32
    %57 = vector.broadcast %cst_3 : f32 to vector<8x16xf32>
    %c0_4 = arith.constant 0 : index
    %c0_5 = arith.constant 0 : index
    %58 = memref.load %arg2[%c0_4, %c0_5] : memref<8x27xf32, #tpu.memory_space<smem>>
    %59 = vector.broadcast %58 : f32 to vector<8x16xf32>
    %60 = arith.mulf %59, %3 : vector<8x16xf32>
    %61 = arith.addf %57, %60 : vector<8x16xf32>
    %c0_6 = arith.constant 0 : index
    %c1 = arith.constant 1 : index
    %62 = memref.load %arg2[%c0_6, %c1] : memref<8x27xf32, #tpu.memory_space<smem>>
    %63 = vector.broadcast %62 : f32 to vector<8x16xf32>
    %64 = arith.mulf %63, %5 : vector<8x16xf32>
    %65 = arith.addf %61, %64 : vector<8x16xf32>
    %c0_7 = arith.constant 0 : index
    %c2 = arith.constant 2 : index
    %66 = memref.load %arg2[%c0_7, %c2] : memref<8x27xf32, #tpu.memory_space<smem>>
    %67 = vector.broadcast %66 : f32 to vector<8x16xf32>
    %68 = arith.mulf %67, %7 : vector<8x16xf32>
    %69 = arith.addf %65, %68 : vector<8x16xf32>
    %c0_8 = arith.constant 0 : index
    %c3 = arith.constant 3 : index
    %70 = memref.load %arg2[%c0_8, %c3] : memref<8x27xf32, #tpu.memory_space<smem>>
    %71 = vector.broadcast %70 : f32 to vector<8x16xf32>
    %72 = arith.mulf %71, %9 : vector<8x16xf32>
    %73 = arith.addf %69, %72 : vector<8x16xf32>
    %c0_9 = arith.constant 0 : index
    %c4 = arith.constant 4 : index
    %74 = memref.load %arg2[%c0_9, %c4] : memref<8x27xf32, #tpu.memory_space<smem>>
    %75 = vector.broadcast %74 : f32 to vector<8x16xf32>
    %76 = arith.mulf %75, %11 : vector<8x16xf32>
    %77 = arith.addf %73, %76 : vector<8x16xf32>
    %c0_10 = arith.constant 0 : index
    %c5 = arith.constant 5 : index
    %78 = memref.load %arg2[%c0_10, %c5] : memref<8x27xf32, #tpu.memory_space<smem>>
    %79 = vector.broadcast %78 : f32 to vector<8x16xf32>
    %80 = arith.mulf %79, %13 : vector<8x16xf32>
    %81 = arith.addf %77, %80 : vector<8x16xf32>
    %c0_11 = arith.constant 0 : index
    %c6 = arith.constant 6 : index
    %82 = memref.load %arg2[%c0_11, %c6] : memref<8x27xf32, #tpu.memory_space<smem>>
    %83 = vector.broadcast %82 : f32 to vector<8x16xf32>
    %84 = arith.mulf %83, %15 : vector<8x16xf32>
    %85 = arith.addf %81, %84 : vector<8x16xf32>
    %c0_12 = arith.constant 0 : index
    %c7 = arith.constant 7 : index
    %86 = memref.load %arg2[%c0_12, %c7] : memref<8x27xf32, #tpu.memory_space<smem>>
    %87 = vector.broadcast %86 : f32 to vector<8x16xf32>
    %88 = arith.mulf %87, %17 : vector<8x16xf32>
    %89 = arith.addf %85, %88 : vector<8x16xf32>
    %c0_13 = arith.constant 0 : index
    %c8 = arith.constant 8 : index
    %90 = memref.load %arg2[%c0_13, %c8] : memref<8x27xf32, #tpu.memory_space<smem>>
    %91 = vector.broadcast %90 : f32 to vector<8x16xf32>
    %92 = arith.mulf %91, %19 : vector<8x16xf32>
    %93 = arith.addf %89, %92 : vector<8x16xf32>
    %c0_14 = arith.constant 0 : index
    %c9 = arith.constant 9 : index
    %94 = memref.load %arg2[%c0_14, %c9] : memref<8x27xf32, #tpu.memory_space<smem>>
    %95 = vector.broadcast %94 : f32 to vector<8x16xf32>
    %96 = arith.mulf %95, %21 : vector<8x16xf32>
    %97 = arith.addf %93, %96 : vector<8x16xf32>
    %c0_15 = arith.constant 0 : index
    %c10 = arith.constant 10 : index
    %98 = memref.load %arg2[%c0_15, %c10] : memref<8x27xf32, #tpu.memory_space<smem>>
    %99 = vector.broadcast %98 : f32 to vector<8x16xf32>
    %100 = arith.mulf %99, %23 : vector<8x16xf32>
    %101 = arith.addf %97, %100 : vector<8x16xf32>
    %c0_16 = arith.constant 0 : index
    %c11 = arith.constant 11 : index
    %102 = memref.load %arg2[%c0_16, %c11] : memref<8x27xf32, #tpu.memory_space<smem>>
    %103 = vector.broadcast %102 : f32 to vector<8x16xf32>
    %104 = arith.mulf %103, %25 : vector<8x16xf32>
    %105 = arith.addf %101, %104 : vector<8x16xf32>
    %c0_17 = arith.constant 0 : index
    %c12 = arith.constant 12 : index
    %106 = memref.load %arg2[%c0_17, %c12] : memref<8x27xf32, #tpu.memory_space<smem>>
    %107 = vector.broadcast %106 : f32 to vector<8x16xf32>
    %108 = arith.mulf %107, %27 : vector<8x16xf32>
    %109 = arith.addf %105, %108 : vector<8x16xf32>
    %c0_18 = arith.constant 0 : index
    %c13 = arith.constant 13 : index
    %110 = memref.load %arg2[%c0_18, %c13] : memref<8x27xf32, #tpu.memory_space<smem>>
    %111 = vector.broadcast %110 : f32 to vector<8x16xf32>
    %112 = arith.mulf %111, %29 : vector<8x16xf32>
    %113 = arith.addf %109, %112 : vector<8x16xf32>
    %c0_19 = arith.constant 0 : index
    %c14 = arith.constant 14 : index
    %114 = memref.load %arg2[%c0_19, %c14] : memref<8x27xf32, #tpu.memory_space<smem>>
    %115 = vector.broadcast %114 : f32 to vector<8x16xf32>
    %116 = arith.mulf %115, %31 : vector<8x16xf32>
    %117 = arith.addf %113, %116 : vector<8x16xf32>
    %c0_20 = arith.constant 0 : index
    %c15 = arith.constant 15 : index
    %118 = memref.load %arg2[%c0_20, %c15] : memref<8x27xf32, #tpu.memory_space<smem>>
    %119 = vector.broadcast %118 : f32 to vector<8x16xf32>
    %120 = arith.mulf %119, %33 : vector<8x16xf32>
    %121 = arith.addf %117, %120 : vector<8x16xf32>
    %c0_21 = arith.constant 0 : index
    %c16 = arith.constant 16 : index
    %122 = memref.load %arg2[%c0_21, %c16] : memref<8x27xf32, #tpu.memory_space<smem>>
    %123 = vector.broadcast %122 : f32 to vector<8x16xf32>
    %124 = arith.mulf %123, %35 : vector<8x16xf32>
    %125 = arith.addf %121, %124 : vector<8x16xf32>
    %c0_22 = arith.constant 0 : index
    %c17 = arith.constant 17 : index
    %126 = memref.load %arg2[%c0_22, %c17] : memref<8x27xf32, #tpu.memory_space<smem>>
    %127 = vector.broadcast %126 : f32 to vector<8x16xf32>
    %128 = arith.mulf %127, %37 : vector<8x16xf32>
    %129 = arith.addf %125, %128 : vector<8x16xf32>
    %c0_23 = arith.constant 0 : index
    %c18 = arith.constant 18 : index
    %130 = memref.load %arg2[%c0_23, %c18] : memref<8x27xf32, #tpu.memory_space<smem>>
    %131 = vector.broadcast %130 : f32 to vector<8x16xf32>
    %132 = arith.mulf %131, %39 : vector<8x16xf32>
    %133 = arith.addf %129, %132 : vector<8x16xf32>
    %c0_24 = arith.constant 0 : index
    %c19 = arith.constant 19 : index
    %134 = memref.load %arg2[%c0_24, %c19] : memref<8x27xf32, #tpu.memory_space<smem>>
    %135 = vector.broadcast %134 : f32 to vector<8x16xf32>
    %136 = arith.mulf %135, %41 : vector<8x16xf32>
    %137 = arith.addf %133, %136 : vector<8x16xf32>
    %c0_25 = arith.constant 0 : index
    %c20 = arith.constant 20 : index
    %138 = memref.load %arg2[%c0_25, %c20] : memref<8x27xf32, #tpu.memory_space<smem>>
    %139 = vector.broadcast %138 : f32 to vector<8x16xf32>
    %140 = arith.mulf %139, %43 : vector<8x16xf32>
    %141 = arith.addf %137, %140 : vector<8x16xf32>
    %c0_26 = arith.constant 0 : index
    %c21 = arith.constant 21 : index
    %142 = memref.load %arg2[%c0_26, %c21] : memref<8x27xf32, #tpu.memory_space<smem>>
    %143 = vector.broadcast %142 : f32 to vector<8x16xf32>
    %144 = arith.mulf %143, %45 : vector<8x16xf32>
    %145 = arith.addf %141, %144 : vector<8x16xf32>
    %c0_27 = arith.constant 0 : index
    %c22 = arith.constant 22 : index
    %146 = memref.load %arg2[%c0_27, %c22] : memref<8x27xf32, #tpu.memory_space<smem>>
    %147 = vector.broadcast %146 : f32 to vector<8x16xf32>
    %148 = arith.mulf %147, %47 : vector<8x16xf32>
    %149 = arith.addf %145, %148 : vector<8x16xf32>
    %c0_28 = arith.constant 0 : index
    %c23 = arith.constant 23 : index
    %150 = memref.load %arg2[%c0_28, %c23] : memref<8x27xf32, #tpu.memory_space<smem>>
    %151 = vector.broadcast %150 : f32 to vector<8x16xf32>
    %152 = arith.mulf %151, %49 : vector<8x16xf32>
    %153 = arith.addf %149, %152 : vector<8x16xf32>
    %c0_29 = arith.constant 0 : index
    %c24 = arith.constant 24 : index
    %154 = memref.load %arg2[%c0_29, %c24] : memref<8x27xf32, #tpu.memory_space<smem>>
    %155 = vector.broadcast %154 : f32 to vector<8x16xf32>
    %156 = arith.mulf %155, %51 : vector<8x16xf32>
    %157 = arith.addf %153, %156 : vector<8x16xf32>
    %c0_30 = arith.constant 0 : index
    %c25 = arith.constant 25 : index
    %158 = memref.load %arg2[%c0_30, %c25] : memref<8x27xf32, #tpu.memory_space<smem>>
    %159 = vector.broadcast %158 : f32 to vector<8x16xf32>
    %160 = arith.mulf %159, %53 : vector<8x16xf32>
    %161 = arith.addf %157, %160 : vector<8x16xf32>
    %c0_31 = arith.constant 0 : index
    %c26 = arith.constant 26 : index
    %162 = memref.load %arg2[%c0_31, %c26] : memref<8x27xf32, #tpu.memory_space<smem>>
    %163 = vector.broadcast %162 : f32 to vector<8x16xf32>
    %164 = arith.mulf %163, %55 : vector<8x16xf32>
    %165 = arith.addf %161, %164 : vector<8x16xf32>
    %cst_32 = arith.constant 0.000000e+00 : f32
    %166 = vector.broadcast %cst_32 : f32 to vector<8x16xf32>
    %167 = arith.maximumf %165, %166 : vector<8x16xf32>
    %168 = arith.mulf %167, %167 : vector<8x16xf32>
    %169 = arith.addf %56, %168 : vector<8x16xf32>
    %cst_33 = arith.constant 0.000000e+00 : f32
    %170 = vector.broadcast %cst_33 : f32 to vector<8x16xf32>
    %c1_34 = arith.constant 1 : index
    %c0_35 = arith.constant 0 : index
    %171 = memref.load %arg2[%c1_34, %c0_35] : memref<8x27xf32, #tpu.memory_space<smem>>
    %172 = vector.broadcast %171 : f32 to vector<8x16xf32>
    %173 = arith.mulf %172, %3 : vector<8x16xf32>
    %174 = arith.addf %170, %173 : vector<8x16xf32>
    %c1_36 = arith.constant 1 : index
    %c1_37 = arith.constant 1 : index
    %175 = memref.load %arg2[%c1_36, %c1_37] : memref<8x27xf32, #tpu.memory_space<smem>>
    %176 = vector.broadcast %175 : f32 to vector<8x16xf32>
    %177 = arith.mulf %176, %5 : vector<8x16xf32>
    %178 = arith.addf %174, %177 : vector<8x16xf32>
    %c1_38 = arith.constant 1 : index
    %c2_39 = arith.constant 2 : index
    %179 = memref.load %arg2[%c1_38, %c2_39] : memref<8x27xf32, #tpu.memory_space<smem>>
    %180 = vector.broadcast %179 : f32 to vector<8x16xf32>
    %181 = arith.mulf %180, %7 : vector<8x16xf32>
    %182 = arith.addf %178, %181 : vector<8x16xf32>
    %c1_40 = arith.constant 1 : index
    %c3_41 = arith.constant 3 : index
    %183 = memref.load %arg2[%c1_40, %c3_41] : memref<8x27xf32, #tpu.memory_space<smem>>
    %184 = vector.broadcast %183 : f32 to vector<8x16xf32>
    %185 = arith.mulf %184, %9 : vector<8x16xf32>
    %186 = arith.addf %182, %185 : vector<8x16xf32>
    %c1_42 = arith.constant 1 : index
    %c4_43 = arith.constant 4 : index
    %187 = memref.load %arg2[%c1_42, %c4_43] : memref<8x27xf32, #tpu.memory_space<smem>>
    %188 = vector.broadcast %187 : f32 to vector<8x16xf32>
    %189 = arith.mulf %188, %11 : vector<8x16xf32>
    %190 = arith.addf %186, %189 : vector<8x16xf32>
    %c1_44 = arith.constant 1 : index
    %c5_45 = arith.constant 5 : index
    %191 = memref.load %arg2[%c1_44, %c5_45] : memref<8x27xf32, #tpu.memory_space<smem>>
    %192 = vector.broadcast %191 : f32 to vector<8x16xf32>
    %193 = arith.mulf %192, %13 : vector<8x16xf32>
    %194 = arith.addf %190, %193 : vector<8x16xf32>
    %c1_46 = arith.constant 1 : index
    %c6_47 = arith.constant 6 : index
    %195 = memref.load %arg2[%c1_46, %c6_47] : memref<8x27xf32, #tpu.memory_space<smem>>
    %196 = vector.broadcast %195 : f32 to vector<8x16xf32>
    %197 = arith.mulf %196, %15 : vector<8x16xf32>
    %198 = arith.addf %194, %197 : vector<8x16xf32>
    %c1_48 = arith.constant 1 : index
    %c7_49 = arith.constant 7 : index
    %199 = memref.load %arg2[%c1_48, %c7_49] : memref<8x27xf32, #tpu.memory_space<smem>>
    %200 = vector.broadcast %199 : f32 to vector<8x16xf32>
    %201 = arith.mulf %200, %17 : vector<8x16xf32>
    %202 = arith.addf %198, %201 : vector<8x16xf32>
    %c1_50 = arith.constant 1 : index
    %c8_51 = arith.constant 8 : index
    %203 = memref.load %arg2[%c1_50, %c8_51] : memref<8x27xf32, #tpu.memory_space<smem>>
    %204 = vector.broadcast %203 : f32 to vector<8x16xf32>
    %205 = arith.mulf %204, %19 : vector<8x16xf32>
    %206 = arith.addf %202, %205 : vector<8x16xf32>
    %c1_52 = arith.constant 1 : index
    %c9_53 = arith.constant 9 : index
    %207 = memref.load %arg2[%c1_52, %c9_53] : memref<8x27xf32, #tpu.memory_space<smem>>
    %208 = vector.broadcast %207 : f32 to vector<8x16xf32>
    %209 = arith.mulf %208, %21 : vector<8x16xf32>
    %210 = arith.addf %206, %209 : vector<8x16xf32>
    %c1_54 = arith.constant 1 : index
    %c10_55 = arith.constant 10 : index
    %211 = memref.load %arg2[%c1_54, %c10_55] : memref<8x27xf32, #tpu.memory_space<smem>>
    %212 = vector.broadcast %211 : f32 to vector<8x16xf32>
    %213 = arith.mulf %212, %23 : vector<8x16xf32>
    %214 = arith.addf %210, %213 : vector<8x16xf32>
    %c1_56 = arith.constant 1 : index
    %c11_57 = arith.constant 11 : index
    %215 = memref.load %arg2[%c1_56, %c11_57] : memref<8x27xf32, #tpu.memory_space<smem>>
    %216 = vector.broadcast %215 : f32 to vector<8x16xf32>
    %217 = arith.mulf %216, %25 : vector<8x16xf32>
    %218 = arith.addf %214, %217 : vector<8x16xf32>
    %c1_58 = arith.constant 1 : index
    %c12_59 = arith.constant 12 : index
    %219 = memref.load %arg2[%c1_58, %c12_59] : memref<8x27xf32, #tpu.memory_space<smem>>
    %220 = vector.broadcast %219 : f32 to vector<8x16xf32>
    %221 = arith.mulf %220, %27 : vector<8x16xf32>
    %222 = arith.addf %218, %221 : vector<8x16xf32>
    %c1_60 = arith.constant 1 : index
    %c13_61 = arith.constant 13 : index
    %223 = memref.load %arg2[%c1_60, %c13_61] : memref<8x27xf32, #tpu.memory_space<smem>>
    %224 = vector.broadcast %223 : f32 to vector<8x16xf32>
    %225 = arith.mulf %224, %29 : vector<8x16xf32>
    %226 = arith.addf %222, %225 : vector<8x16xf32>
    %c1_62 = arith.constant 1 : index
    %c14_63 = arith.constant 14 : index
    %227 = memref.load %arg2[%c1_62, %c14_63] : memref<8x27xf32, #tpu.memory_space<smem>>
    %228 = vector.broadcast %227 : f32 to vector<8x16xf32>
    %229 = arith.mulf %228, %31 : vector<8x16xf32>
    %230 = arith.addf %226, %229 : vector<8x16xf32>
    %c1_64 = arith.constant 1 : index
    %c15_65 = arith.constant 15 : index
    %231 = memref.load %arg2[%c1_64, %c15_65] : memref<8x27xf32, #tpu.memory_space<smem>>
    %232 = vector.broadcast %231 : f32 to vector<8x16xf32>
    %233 = arith.mulf %232, %33 : vector<8x16xf32>
    %234 = arith.addf %230, %233 : vector<8x16xf32>
    %c1_66 = arith.constant 1 : index
    %c16_67 = arith.constant 16 : index
    %235 = memref.load %arg2[%c1_66, %c16_67] : memref<8x27xf32, #tpu.memory_space<smem>>
    %236 = vector.broadcast %235 : f32 to vector<8x16xf32>
    %237 = arith.mulf %236, %35 : vector<8x16xf32>
    %238 = arith.addf %234, %237 : vector<8x16xf32>
    %c1_68 = arith.constant 1 : index
    %c17_69 = arith.constant 17 : index
    %239 = memref.load %arg2[%c1_68, %c17_69] : memref<8x27xf32, #tpu.memory_space<smem>>
    %240 = vector.broadcast %239 : f32 to vector<8x16xf32>
    %241 = arith.mulf %240, %37 : vector<8x16xf32>
    %242 = arith.addf %238, %241 : vector<8x16xf32>
    %c1_70 = arith.constant 1 : index
    %c18_71 = arith.constant 18 : index
    %243 = memref.load %arg2[%c1_70, %c18_71] : memref<8x27xf32, #tpu.memory_space<smem>>
    %244 = vector.broadcast %243 : f32 to vector<8x16xf32>
    %245 = arith.mulf %244, %39 : vector<8x16xf32>
    %246 = arith.addf %242, %245 : vector<8x16xf32>
    %c1_72 = arith.constant 1 : index
    %c19_73 = arith.constant 19 : index
    %247 = memref.load %arg2[%c1_72, %c19_73] : memref<8x27xf32, #tpu.memory_space<smem>>
    %248 = vector.broadcast %247 : f32 to vector<8x16xf32>
    %249 = arith.mulf %248, %41 : vector<8x16xf32>
    %250 = arith.addf %246, %249 : vector<8x16xf32>
    %c1_74 = arith.constant 1 : index
    %c20_75 = arith.constant 20 : index
    %251 = memref.load %arg2[%c1_74, %c20_75] : memref<8x27xf32, #tpu.memory_space<smem>>
    %252 = vector.broadcast %251 : f32 to vector<8x16xf32>
    %253 = arith.mulf %252, %43 : vector<8x16xf32>
    %254 = arith.addf %250, %253 : vector<8x16xf32>
    %c1_76 = arith.constant 1 : index
    %c21_77 = arith.constant 21 : index
    %255 = memref.load %arg2[%c1_76, %c21_77] : memref<8x27xf32, #tpu.memory_space<smem>>
    %256 = vector.broadcast %255 : f32 to vector<8x16xf32>
    %257 = arith.mulf %256, %45 : vector<8x16xf32>
    %258 = arith.addf %254, %257 : vector<8x16xf32>
    %c1_78 = arith.constant 1 : index
    %c22_79 = arith.constant 22 : index
    %259 = memref.load %arg2[%c1_78, %c22_79] : memref<8x27xf32, #tpu.memory_space<smem>>
    %260 = vector.broadcast %259 : f32 to vector<8x16xf32>
    %261 = arith.mulf %260, %47 : vector<8x16xf32>
    %262 = arith.addf %258, %261 : vector<8x16xf32>
    %c1_80 = arith.constant 1 : index
    %c23_81 = arith.constant 23 : index
    %263 = memref.load %arg2[%c1_80, %c23_81] : memref<8x27xf32, #tpu.memory_space<smem>>
    %264 = vector.broadcast %263 : f32 to vector<8x16xf32>
    %265 = arith.mulf %264, %49 : vector<8x16xf32>
    %266 = arith.addf %262, %265 : vector<8x16xf32>
    %c1_82 = arith.constant 1 : index
    %c24_83 = arith.constant 24 : index
    %267 = memref.load %arg2[%c1_82, %c24_83] : memref<8x27xf32, #tpu.memory_space<smem>>
    %268 = vector.broadcast %267 : f32 to vector<8x16xf32>
    %269 = arith.mulf %268, %51 : vector<8x16xf32>
    %270 = arith.addf %266, %269 : vector<8x16xf32>
    %c1_84 = arith.constant 1 : index
    %c25_85 = arith.constant 25 : index
    %271 = memref.load %arg2[%c1_84, %c25_85] : memref<8x27xf32, #tpu.memory_space<smem>>
    %272 = vector.broadcast %271 : f32 to vector<8x16xf32>
    %273 = arith.mulf %272, %53 : vector<8x16xf32>
    %274 = arith.addf %270, %273 : vector<8x16xf32>
    %c1_86 = arith.constant 1 : index
    %c26_87 = arith.constant 26 : index
    %275 = memref.load %arg2[%c1_86, %c26_87] : memref<8x27xf32, #tpu.memory_space<smem>>
    %276 = vector.broadcast %275 : f32 to vector<8x16xf32>
    %277 = arith.mulf %276, %55 : vector<8x16xf32>
    %278 = arith.addf %274, %277 : vector<8x16xf32>
    %cst_88 = arith.constant 0.000000e+00 : f32
    %279 = vector.broadcast %cst_88 : f32 to vector<8x16xf32>
    %280 = arith.maximumf %278, %279 : vector<8x16xf32>
    %281 = arith.mulf %280, %280 : vector<8x16xf32>
    %282 = arith.addf %169, %281 : vector<8x16xf32>
    %cst_89 = arith.constant 0.000000e+00 : f32
    %283 = vector.broadcast %cst_89 : f32 to vector<8x16xf32>
    %c2_90 = arith.constant 2 : index
    %c0_91 = arith.constant 0 : index
    %284 = memref.load %arg2[%c2_90, %c0_91] : memref<8x27xf32, #tpu.memory_space<smem>>
    %285 = vector.broadcast %284 : f32 to vector<8x16xf32>
    %286 = arith.mulf %285, %3 : vector<8x16xf32>
    %287 = arith.addf %283, %286 : vector<8x16xf32>
    %c2_92 = arith.constant 2 : index
    %c1_93 = arith.constant 1 : index
    %288 = memref.load %arg2[%c2_92, %c1_93] : memref<8x27xf32, #tpu.memory_space<smem>>
    %289 = vector.broadcast %288 : f32 to vector<8x16xf32>
    %290 = arith.mulf %289, %5 : vector<8x16xf32>
    %291 = arith.addf %287, %290 : vector<8x16xf32>
    %c2_94 = arith.constant 2 : index
    %c2_95 = arith.constant 2 : index
    %292 = memref.load %arg2[%c2_94, %c2_95] : memref<8x27xf32, #tpu.memory_space<smem>>
    %293 = vector.broadcast %292 : f32 to vector<8x16xf32>
    %294 = arith.mulf %293, %7 : vector<8x16xf32>
    %295 = arith.addf %291, %294 : vector<8x16xf32>
    %c2_96 = arith.constant 2 : index
    %c3_97 = arith.constant 3 : index
    %296 = memref.load %arg2[%c2_96, %c3_97] : memref<8x27xf32, #tpu.memory_space<smem>>
    %297 = vector.broadcast %296 : f32 to vector<8x16xf32>
    %298 = arith.mulf %297, %9 : vector<8x16xf32>
    %299 = arith.addf %295, %298 : vector<8x16xf32>
    %c2_98 = arith.constant 2 : index
    %c4_99 = arith.constant 4 : index
    %300 = memref.load %arg2[%c2_98, %c4_99] : memref<8x27xf32, #tpu.memory_space<smem>>
    %301 = vector.broadcast %300 : f32 to vector<8x16xf32>
    %302 = arith.mulf %301, %11 : vector<8x16xf32>
    %303 = arith.addf %299, %302 : vector<8x16xf32>
    %c2_100 = arith.constant 2 : index
    %c5_101 = arith.constant 5 : index
    %304 = memref.load %arg2[%c2_100, %c5_101] : memref<8x27xf32, #tpu.memory_space<smem>>
    %305 = vector.broadcast %304 : f32 to vector<8x16xf32>
    %306 = arith.mulf %305, %13 : vector<8x16xf32>
    %307 = arith.addf %303, %306 : vector<8x16xf32>
    %c2_102 = arith.constant 2 : index
    %c6_103 = arith.constant 6 : index
    %308 = memref.load %arg2[%c2_102, %c6_103] : memref<8x27xf32, #tpu.memory_space<smem>>
    %309 = vector.broadcast %308 : f32 to vector<8x16xf32>
    %310 = arith.mulf %309, %15 : vector<8x16xf32>
    %311 = arith.addf %307, %310 : vector<8x16xf32>
    %c2_104 = arith.constant 2 : index
    %c7_105 = arith.constant 7 : index
    %312 = memref.load %arg2[%c2_104, %c7_105] : memref<8x27xf32, #tpu.memory_space<smem>>
    %313 = vector.broadcast %312 : f32 to vector<8x16xf32>
    %314 = arith.mulf %313, %17 : vector<8x16xf32>
    %315 = arith.addf %311, %314 : vector<8x16xf32>
    %c2_106 = arith.constant 2 : index
    %c8_107 = arith.constant 8 : index
    %316 = memref.load %arg2[%c2_106, %c8_107] : memref<8x27xf32, #tpu.memory_space<smem>>
    %317 = vector.broadcast %316 : f32 to vector<8x16xf32>
    %318 = arith.mulf %317, %19 : vector<8x16xf32>
    %319 = arith.addf %315, %318 : vector<8x16xf32>
    %c2_108 = arith.constant 2 : index
    %c9_109 = arith.constant 9 : index
    %320 = memref.load %arg2[%c2_108, %c9_109] : memref<8x27xf32, #tpu.memory_space<smem>>
    %321 = vector.broadcast %320 : f32 to vector<8x16xf32>
    %322 = arith.mulf %321, %21 : vector<8x16xf32>
    %323 = arith.addf %319, %322 : vector<8x16xf32>
    %c2_110 = arith.constant 2 : index
    %c10_111 = arith.constant 10 : index
    %324 = memref.load %arg2[%c2_110, %c10_111] : memref<8x27xf32, #tpu.memory_space<smem>>
    %325 = vector.broadcast %324 : f32 to vector<8x16xf32>
    %326 = arith.mulf %325, %23 : vector<8x16xf32>
    %327 = arith.addf %323, %326 : vector<8x16xf32>
    %c2_112 = arith.constant 2 : index
    %c11_113 = arith.constant 11 : index
    %328 = memref.load %arg2[%c2_112, %c11_113] : memref<8x27xf32, #tpu.memory_space<smem>>
    %329 = vector.broadcast %328 : f32 to vector<8x16xf32>
    %330 = arith.mulf %329, %25 : vector<8x16xf32>
    %331 = arith.addf %327, %330 : vector<8x16xf32>
    %c2_114 = arith.constant 2 : index
    %c12_115 = arith.constant 12 : index
    %332 = memref.load %arg2[%c2_114, %c12_115] : memref<8x27xf32, #tpu.memory_space<smem>>
    %333 = vector.broadcast %332 : f32 to vector<8x16xf32>
    %334 = arith.mulf %333, %27 : vector<8x16xf32>
    %335 = arith.addf %331, %334 : vector<8x16xf32>
    %c2_116 = arith.constant 2 : index
    %c13_117 = arith.constant 13 : index
    %336 = memref.load %arg2[%c2_116, %c13_117] : memref<8x27xf32, #tpu.memory_space<smem>>
    %337 = vector.broadcast %336 : f32 to vector<8x16xf32>
    %338 = arith.mulf %337, %29 : vector<8x16xf32>
    %339 = arith.addf %335, %338 : vector<8x16xf32>
    %c2_118 = arith.constant 2 : index
    %c14_119 = arith.constant 14 : index
    %340 = memref.load %arg2[%c2_118, %c14_119] : memref<8x27xf32, #tpu.memory_space<smem>>
    %341 = vector.broadcast %340 : f32 to vector<8x16xf32>
    %342 = arith.mulf %341, %31 : vector<8x16xf32>
    %343 = arith.addf %339, %342 : vector<8x16xf32>
    %c2_120 = arith.constant 2 : index
    %c15_121 = arith.constant 15 : index
    %344 = memref.load %arg2[%c2_120, %c15_121] : memref<8x27xf32, #tpu.memory_space<smem>>
    %345 = vector.broadcast %344 : f32 to vector<8x16xf32>
    %346 = arith.mulf %345, %33 : vector<8x16xf32>
    %347 = arith.addf %343, %346 : vector<8x16xf32>
    %c2_122 = arith.constant 2 : index
    %c16_123 = arith.constant 16 : index
    %348 = memref.load %arg2[%c2_122, %c16_123] : memref<8x27xf32, #tpu.memory_space<smem>>
    %349 = vector.broadcast %348 : f32 to vector<8x16xf32>
    %350 = arith.mulf %349, %35 : vector<8x16xf32>
    %351 = arith.addf %347, %350 : vector<8x16xf32>
    %c2_124 = arith.constant 2 : index
    %c17_125 = arith.constant 17 : index
    %352 = memref.load %arg2[%c2_124, %c17_125] : memref<8x27xf32, #tpu.memory_space<smem>>
    %353 = vector.broadcast %352 : f32 to vector<8x16xf32>
    %354 = arith.mulf %353, %37 : vector<8x16xf32>
    %355 = arith.addf %351, %354 : vector<8x16xf32>
    %c2_126 = arith.constant 2 : index
    %c18_127 = arith.constant 18 : index
    %356 = memref.load %arg2[%c2_126, %c18_127] : memref<8x27xf32, #tpu.memory_space<smem>>
    %357 = vector.broadcast %356 : f32 to vector<8x16xf32>
    %358 = arith.mulf %357, %39 : vector<8x16xf32>
    %359 = arith.addf %355, %358 : vector<8x16xf32>
    %c2_128 = arith.constant 2 : index
    %c19_129 = arith.constant 19 : index
    %360 = memref.load %arg2[%c2_128, %c19_129] : memref<8x27xf32, #tpu.memory_space<smem>>
    %361 = vector.broadcast %360 : f32 to vector<8x16xf32>
    %362 = arith.mulf %361, %41 : vector<8x16xf32>
    %363 = arith.addf %359, %362 : vector<8x16xf32>
    %c2_130 = arith.constant 2 : index
    %c20_131 = arith.constant 20 : index
    %364 = memref.load %arg2[%c2_130, %c20_131] : memref<8x27xf32, #tpu.memory_space<smem>>
    %365 = vector.broadcast %364 : f32 to vector<8x16xf32>
    %366 = arith.mulf %365, %43 : vector<8x16xf32>
    %367 = arith.addf %363, %366 : vector<8x16xf32>
    %c2_132 = arith.constant 2 : index
    %c21_133 = arith.constant 21 : index
    %368 = memref.load %arg2[%c2_132, %c21_133] : memref<8x27xf32, #tpu.memory_space<smem>>
    %369 = vector.broadcast %368 : f32 to vector<8x16xf32>
    %370 = arith.mulf %369, %45 : vector<8x16xf32>
    %371 = arith.addf %367, %370 : vector<8x16xf32>
    %c2_134 = arith.constant 2 : index
    %c22_135 = arith.constant 22 : index
    %372 = memref.load %arg2[%c2_134, %c22_135] : memref<8x27xf32, #tpu.memory_space<smem>>
    %373 = vector.broadcast %372 : f32 to vector<8x16xf32>
    %374 = arith.mulf %373, %47 : vector<8x16xf32>
    %375 = arith.addf %371, %374 : vector<8x16xf32>
    %c2_136 = arith.constant 2 : index
    %c23_137 = arith.constant 23 : index
    %376 = memref.load %arg2[%c2_136, %c23_137] : memref<8x27xf32, #tpu.memory_space<smem>>
    %377 = vector.broadcast %376 : f32 to vector<8x16xf32>
    %378 = arith.mulf %377, %49 : vector<8x16xf32>
    %379 = arith.addf %375, %378 : vector<8x16xf32>
    %c2_138 = arith.constant 2 : index
    %c24_139 = arith.constant 24 : index
    %380 = memref.load %arg2[%c2_138, %c24_139] : memref<8x27xf32, #tpu.memory_space<smem>>
    %381 = vector.broadcast %380 : f32 to vector<8x16xf32>
    %382 = arith.mulf %381, %51 : vector<8x16xf32>
    %383 = arith.addf %379, %382 : vector<8x16xf32>
    %c2_140 = arith.constant 2 : index
    %c25_141 = arith.constant 25 : index
    %384 = memref.load %arg2[%c2_140, %c25_141] : memref<8x27xf32, #tpu.memory_space<smem>>
    %385 = vector.broadcast %384 : f32 to vector<8x16xf32>
    %386 = arith.mulf %385, %53 : vector<8x16xf32>
    %387 = arith.addf %383, %386 : vector<8x16xf32>
    %c2_142 = arith.constant 2 : index
    %c26_143 = arith.constant 26 : index
    %388 = memref.load %arg2[%c2_142, %c26_143] : memref<8x27xf32, #tpu.memory_space<smem>>
    %389 = vector.broadcast %388 : f32 to vector<8x16xf32>
    %390 = arith.mulf %389, %55 : vector<8x16xf32>
    %391 = arith.addf %387, %390 : vector<8x16xf32>
    %cst_144 = arith.constant 0.000000e+00 : f32
    %392 = vector.broadcast %cst_144 : f32 to vector<8x16xf32>
    %393 = arith.maximumf %391, %392 : vector<8x16xf32>
    %394 = arith.mulf %393, %393 : vector<8x16xf32>
    %395 = arith.addf %282, %394 : vector<8x16xf32>
    %cst_145 = arith.constant 0.000000e+00 : f32
    %396 = vector.broadcast %cst_145 : f32 to vector<8x16xf32>
    %c3_146 = arith.constant 3 : index
    %c0_147 = arith.constant 0 : index
    %397 = memref.load %arg2[%c3_146, %c0_147] : memref<8x27xf32, #tpu.memory_space<smem>>
    %398 = vector.broadcast %397 : f32 to vector<8x16xf32>
    %399 = arith.mulf %398, %3 : vector<8x16xf32>
    %400 = arith.addf %396, %399 : vector<8x16xf32>
    %c3_148 = arith.constant 3 : index
    %c1_149 = arith.constant 1 : index
    %401 = memref.load %arg2[%c3_148, %c1_149] : memref<8x27xf32, #tpu.memory_space<smem>>
    %402 = vector.broadcast %401 : f32 to vector<8x16xf32>
    %403 = arith.mulf %402, %5 : vector<8x16xf32>
    %404 = arith.addf %400, %403 : vector<8x16xf32>
    %c3_150 = arith.constant 3 : index
    %c2_151 = arith.constant 2 : index
    %405 = memref.load %arg2[%c3_150, %c2_151] : memref<8x27xf32, #tpu.memory_space<smem>>
    %406 = vector.broadcast %405 : f32 to vector<8x16xf32>
    %407 = arith.mulf %406, %7 : vector<8x16xf32>
    %408 = arith.addf %404, %407 : vector<8x16xf32>
    %c3_152 = arith.constant 3 : index
    %c3_153 = arith.constant 3 : index
    %409 = memref.load %arg2[%c3_152, %c3_153] : memref<8x27xf32, #tpu.memory_space<smem>>
    %410 = vector.broadcast %409 : f32 to vector<8x16xf32>
    %411 = arith.mulf %410, %9 : vector<8x16xf32>
    %412 = arith.addf %408, %411 : vector<8x16xf32>
    %c3_154 = arith.constant 3 : index
    %c4_155 = arith.constant 4 : index
    %413 = memref.load %arg2[%c3_154, %c4_155] : memref<8x27xf32, #tpu.memory_space<smem>>
    %414 = vector.broadcast %413 : f32 to vector<8x16xf32>
    %415 = arith.mulf %414, %11 : vector<8x16xf32>
    %416 = arith.addf %412, %415 : vector<8x16xf32>
    %c3_156 = arith.constant 3 : index
    %c5_157 = arith.constant 5 : index
    %417 = memref.load %arg2[%c3_156, %c5_157] : memref<8x27xf32, #tpu.memory_space<smem>>
    %418 = vector.broadcast %417 : f32 to vector<8x16xf32>
    %419 = arith.mulf %418, %13 : vector<8x16xf32>
    %420 = arith.addf %416, %419 : vector<8x16xf32>
    %c3_158 = arith.constant 3 : index
    %c6_159 = arith.constant 6 : index
    %421 = memref.load %arg2[%c3_158, %c6_159] : memref<8x27xf32, #tpu.memory_space<smem>>
    %422 = vector.broadcast %421 : f32 to vector<8x16xf32>
    %423 = arith.mulf %422, %15 : vector<8x16xf32>
    %424 = arith.addf %420, %423 : vector<8x16xf32>
    %c3_160 = arith.constant 3 : index
    %c7_161 = arith.constant 7 : index
    %425 = memref.load %arg2[%c3_160, %c7_161] : memref<8x27xf32, #tpu.memory_space<smem>>
    %426 = vector.broadcast %425 : f32 to vector<8x16xf32>
    %427 = arith.mulf %426, %17 : vector<8x16xf32>
    %428 = arith.addf %424, %427 : vector<8x16xf32>
    %c3_162 = arith.constant 3 : index
    %c8_163 = arith.constant 8 : index
    %429 = memref.load %arg2[%c3_162, %c8_163] : memref<8x27xf32, #tpu.memory_space<smem>>
    %430 = vector.broadcast %429 : f32 to vector<8x16xf32>
    %431 = arith.mulf %430, %19 : vector<8x16xf32>
    %432 = arith.addf %428, %431 : vector<8x16xf32>
    %c3_164 = arith.constant 3 : index
    %c9_165 = arith.constant 9 : index
    %433 = memref.load %arg2[%c3_164, %c9_165] : memref<8x27xf32, #tpu.memory_space<smem>>
    %434 = vector.broadcast %433 : f32 to vector<8x16xf32>
    %435 = arith.mulf %434, %21 : vector<8x16xf32>
    %436 = arith.addf %432, %435 : vector<8x16xf32>
    %c3_166 = arith.constant 3 : index
    %c10_167 = arith.constant 10 : index
    %437 = memref.load %arg2[%c3_166, %c10_167] : memref<8x27xf32, #tpu.memory_space<smem>>
    %438 = vector.broadcast %437 : f32 to vector<8x16xf32>
    %439 = arith.mulf %438, %23 : vector<8x16xf32>
    %440 = arith.addf %436, %439 : vector<8x16xf32>
    %c3_168 = arith.constant 3 : index
    %c11_169 = arith.constant 11 : index
    %441 = memref.load %arg2[%c3_168, %c11_169] : memref<8x27xf32, #tpu.memory_space<smem>>
    %442 = vector.broadcast %441 : f32 to vector<8x16xf32>
    %443 = arith.mulf %442, %25 : vector<8x16xf32>
    %444 = arith.addf %440, %443 : vector<8x16xf32>
    %c3_170 = arith.constant 3 : index
    %c12_171 = arith.constant 12 : index
    %445 = memref.load %arg2[%c3_170, %c12_171] : memref<8x27xf32, #tpu.memory_space<smem>>
    %446 = vector.broadcast %445 : f32 to vector<8x16xf32>
    %447 = arith.mulf %446, %27 : vector<8x16xf32>
    %448 = arith.addf %444, %447 : vector<8x16xf32>
    %c3_172 = arith.constant 3 : index
    %c13_173 = arith.constant 13 : index
    %449 = memref.load %arg2[%c3_172, %c13_173] : memref<8x27xf32, #tpu.memory_space<smem>>
    %450 = vector.broadcast %449 : f32 to vector<8x16xf32>
    %451 = arith.mulf %450, %29 : vector<8x16xf32>
    %452 = arith.addf %448, %451 : vector<8x16xf32>
    %c3_174 = arith.constant 3 : index
    %c14_175 = arith.constant 14 : index
    %453 = memref.load %arg2[%c3_174, %c14_175] : memref<8x27xf32, #tpu.memory_space<smem>>
    %454 = vector.broadcast %453 : f32 to vector<8x16xf32>
    %455 = arith.mulf %454, %31 : vector<8x16xf32>
    %456 = arith.addf %452, %455 : vector<8x16xf32>
    %c3_176 = arith.constant 3 : index
    %c15_177 = arith.constant 15 : index
    %457 = memref.load %arg2[%c3_176, %c15_177] : memref<8x27xf32, #tpu.memory_space<smem>>
    %458 = vector.broadcast %457 : f32 to vector<8x16xf32>
    %459 = arith.mulf %458, %33 : vector<8x16xf32>
    %460 = arith.addf %456, %459 : vector<8x16xf32>
    %c3_178 = arith.constant 3 : index
    %c16_179 = arith.constant 16 : index
    %461 = memref.load %arg2[%c3_178, %c16_179] : memref<8x27xf32, #tpu.memory_space<smem>>
    %462 = vector.broadcast %461 : f32 to vector<8x16xf32>
    %463 = arith.mulf %462, %35 : vector<8x16xf32>
    %464 = arith.addf %460, %463 : vector<8x16xf32>
    %c3_180 = arith.constant 3 : index
    %c17_181 = arith.constant 17 : index
    %465 = memref.load %arg2[%c3_180, %c17_181] : memref<8x27xf32, #tpu.memory_space<smem>>
    %466 = vector.broadcast %465 : f32 to vector<8x16xf32>
    %467 = arith.mulf %466, %37 : vector<8x16xf32>
    %468 = arith.addf %464, %467 : vector<8x16xf32>
    %c3_182 = arith.constant 3 : index
    %c18_183 = arith.constant 18 : index
    %469 = memref.load %arg2[%c3_182, %c18_183] : memref<8x27xf32, #tpu.memory_space<smem>>
    %470 = vector.broadcast %469 : f32 to vector<8x16xf32>
    %471 = arith.mulf %470, %39 : vector<8x16xf32>
    %472 = arith.addf %468, %471 : vector<8x16xf32>
    %c3_184 = arith.constant 3 : index
    %c19_185 = arith.constant 19 : index
    %473 = memref.load %arg2[%c3_184, %c19_185] : memref<8x27xf32, #tpu.memory_space<smem>>
    %474 = vector.broadcast %473 : f32 to vector<8x16xf32>
    %475 = arith.mulf %474, %41 : vector<8x16xf32>
    %476 = arith.addf %472, %475 : vector<8x16xf32>
    %c3_186 = arith.constant 3 : index
    %c20_187 = arith.constant 20 : index
    %477 = memref.load %arg2[%c3_186, %c20_187] : memref<8x27xf32, #tpu.memory_space<smem>>
    %478 = vector.broadcast %477 : f32 to vector<8x16xf32>
    %479 = arith.mulf %478, %43 : vector<8x16xf32>
    %480 = arith.addf %476, %479 : vector<8x16xf32>
    %c3_188 = arith.constant 3 : index
    %c21_189 = arith.constant 21 : index
    %481 = memref.load %arg2[%c3_188, %c21_189] : memref<8x27xf32, #tpu.memory_space<smem>>
    %482 = vector.broadcast %481 : f32 to vector<8x16xf32>
    %483 = arith.mulf %482, %45 : vector<8x16xf32>
    %484 = arith.addf %480, %483 : vector<8x16xf32>
    %c3_190 = arith.constant 3 : index
    %c22_191 = arith.constant 22 : index
    %485 = memref.load %arg2[%c3_190, %c22_191] : memref<8x27xf32, #tpu.memory_space<smem>>
    %486 = vector.broadcast %485 : f32 to vector<8x16xf32>
    %487 = arith.mulf %486, %47 : vector<8x16xf32>
    %488 = arith.addf %484, %487 : vector<8x16xf32>
    %c3_192 = arith.constant 3 : index
    %c23_193 = arith.constant 23 : index
    %489 = memref.load %arg2[%c3_192, %c23_193] : memref<8x27xf32, #tpu.memory_space<smem>>
    %490 = vector.broadcast %489 : f32 to vector<8x16xf32>
    %491 = arith.mulf %490, %49 : vector<8x16xf32>
    %492 = arith.addf %488, %491 : vector<8x16xf32>
    %c3_194 = arith.constant 3 : index
    %c24_195 = arith.constant 24 : index
    %493 = memref.load %arg2[%c3_194, %c24_195] : memref<8x27xf32, #tpu.memory_space<smem>>
    %494 = vector.broadcast %493 : f32 to vector<8x16xf32>
    %495 = arith.mulf %494, %51 : vector<8x16xf32>
    %496 = arith.addf %492, %495 : vector<8x16xf32>
    %c3_196 = arith.constant 3 : index
    %c25_197 = arith.constant 25 : index
    %497 = memref.load %arg2[%c3_196, %c25_197] : memref<8x27xf32, #tpu.memory_space<smem>>
    %498 = vector.broadcast %497 : f32 to vector<8x16xf32>
    %499 = arith.mulf %498, %53 : vector<8x16xf32>
    %500 = arith.addf %496, %499 : vector<8x16xf32>
    %c3_198 = arith.constant 3 : index
    %c26_199 = arith.constant 26 : index
    %501 = memref.load %arg2[%c3_198, %c26_199] : memref<8x27xf32, #tpu.memory_space<smem>>
    %502 = vector.broadcast %501 : f32 to vector<8x16xf32>
    %503 = arith.mulf %502, %55 : vector<8x16xf32>
    %504 = arith.addf %500, %503 : vector<8x16xf32>
    %cst_200 = arith.constant 0.000000e+00 : f32
    %505 = vector.broadcast %cst_200 : f32 to vector<8x16xf32>
    %506 = arith.maximumf %504, %505 : vector<8x16xf32>
    %507 = arith.mulf %506, %506 : vector<8x16xf32>
    %508 = arith.addf %395, %507 : vector<8x16xf32>
    %cst_201 = arith.constant 0.000000e+00 : f32
    %509 = vector.broadcast %cst_201 : f32 to vector<8x16xf32>
    %c4_202 = arith.constant 4 : index
    %c0_203 = arith.constant 0 : index
    %510 = memref.load %arg2[%c4_202, %c0_203] : memref<8x27xf32, #tpu.memory_space<smem>>
    %511 = vector.broadcast %510 : f32 to vector<8x16xf32>
    %512 = arith.mulf %511, %3 : vector<8x16xf32>
    %513 = arith.addf %509, %512 : vector<8x16xf32>
    %c4_204 = arith.constant 4 : index
    %c1_205 = arith.constant 1 : index
    %514 = memref.load %arg2[%c4_204, %c1_205] : memref<8x27xf32, #tpu.memory_space<smem>>
    %515 = vector.broadcast %514 : f32 to vector<8x16xf32>
    %516 = arith.mulf %515, %5 : vector<8x16xf32>
    %517 = arith.addf %513, %516 : vector<8x16xf32>
    %c4_206 = arith.constant 4 : index
    %c2_207 = arith.constant 2 : index
    %518 = memref.load %arg2[%c4_206, %c2_207] : memref<8x27xf32, #tpu.memory_space<smem>>
    %519 = vector.broadcast %518 : f32 to vector<8x16xf32>
    %520 = arith.mulf %519, %7 : vector<8x16xf32>
    %521 = arith.addf %517, %520 : vector<8x16xf32>
    %c4_208 = arith.constant 4 : index
    %c3_209 = arith.constant 3 : index
    %522 = memref.load %arg2[%c4_208, %c3_209] : memref<8x27xf32, #tpu.memory_space<smem>>
    %523 = vector.broadcast %522 : f32 to vector<8x16xf32>
    %524 = arith.mulf %523, %9 : vector<8x16xf32>
    %525 = arith.addf %521, %524 : vector<8x16xf32>
    %c4_210 = arith.constant 4 : index
    %c4_211 = arith.constant 4 : index
    %526 = memref.load %arg2[%c4_210, %c4_211] : memref<8x27xf32, #tpu.memory_space<smem>>
    %527 = vector.broadcast %526 : f32 to vector<8x16xf32>
    %528 = arith.mulf %527, %11 : vector<8x16xf32>
    %529 = arith.addf %525, %528 : vector<8x16xf32>
    %c4_212 = arith.constant 4 : index
    %c5_213 = arith.constant 5 : index
    %530 = memref.load %arg2[%c4_212, %c5_213] : memref<8x27xf32, #tpu.memory_space<smem>>
    %531 = vector.broadcast %530 : f32 to vector<8x16xf32>
    %532 = arith.mulf %531, %13 : vector<8x16xf32>
    %533 = arith.addf %529, %532 : vector<8x16xf32>
    %c4_214 = arith.constant 4 : index
    %c6_215 = arith.constant 6 : index
    %534 = memref.load %arg2[%c4_214, %c6_215] : memref<8x27xf32, #tpu.memory_space<smem>>
    %535 = vector.broadcast %534 : f32 to vector<8x16xf32>
    %536 = arith.mulf %535, %15 : vector<8x16xf32>
    %537 = arith.addf %533, %536 : vector<8x16xf32>
    %c4_216 = arith.constant 4 : index
    %c7_217 = arith.constant 7 : index
    %538 = memref.load %arg2[%c4_216, %c7_217] : memref<8x27xf32, #tpu.memory_space<smem>>
    %539 = vector.broadcast %538 : f32 to vector<8x16xf32>
    %540 = arith.mulf %539, %17 : vector<8x16xf32>
    %541 = arith.addf %537, %540 : vector<8x16xf32>
    %c4_218 = arith.constant 4 : index
    %c8_219 = arith.constant 8 : index
    %542 = memref.load %arg2[%c4_218, %c8_219] : memref<8x27xf32, #tpu.memory_space<smem>>
    %543 = vector.broadcast %542 : f32 to vector<8x16xf32>
    %544 = arith.mulf %543, %19 : vector<8x16xf32>
    %545 = arith.addf %541, %544 : vector<8x16xf32>
    %c4_220 = arith.constant 4 : index
    %c9_221 = arith.constant 9 : index
    %546 = memref.load %arg2[%c4_220, %c9_221] : memref<8x27xf32, #tpu.memory_space<smem>>
    %547 = vector.broadcast %546 : f32 to vector<8x16xf32>
    %548 = arith.mulf %547, %21 : vector<8x16xf32>
    %549 = arith.addf %545, %548 : vector<8x16xf32>
    %c4_222 = arith.constant 4 : index
    %c10_223 = arith.constant 10 : index
    %550 = memref.load %arg2[%c4_222, %c10_223] : memref<8x27xf32, #tpu.memory_space<smem>>
    %551 = vector.broadcast %550 : f32 to vector<8x16xf32>
    %552 = arith.mulf %551, %23 : vector<8x16xf32>
    %553 = arith.addf %549, %552 : vector<8x16xf32>
    %c4_224 = arith.constant 4 : index
    %c11_225 = arith.constant 11 : index
    %554 = memref.load %arg2[%c4_224, %c11_225] : memref<8x27xf32, #tpu.memory_space<smem>>
    %555 = vector.broadcast %554 : f32 to vector<8x16xf32>
    %556 = arith.mulf %555, %25 : vector<8x16xf32>
    %557 = arith.addf %553, %556 : vector<8x16xf32>
    %c4_226 = arith.constant 4 : index
    %c12_227 = arith.constant 12 : index
    %558 = memref.load %arg2[%c4_226, %c12_227] : memref<8x27xf32, #tpu.memory_space<smem>>
    %559 = vector.broadcast %558 : f32 to vector<8x16xf32>
    %560 = arith.mulf %559, %27 : vector<8x16xf32>
    %561 = arith.addf %557, %560 : vector<8x16xf32>
    %c4_228 = arith.constant 4 : index
    %c13_229 = arith.constant 13 : index
    %562 = memref.load %arg2[%c4_228, %c13_229] : memref<8x27xf32, #tpu.memory_space<smem>>
    %563 = vector.broadcast %562 : f32 to vector<8x16xf32>
    %564 = arith.mulf %563, %29 : vector<8x16xf32>
    %565 = arith.addf %561, %564 : vector<8x16xf32>
    %c4_230 = arith.constant 4 : index
    %c14_231 = arith.constant 14 : index
    %566 = memref.load %arg2[%c4_230, %c14_231] : memref<8x27xf32, #tpu.memory_space<smem>>
    %567 = vector.broadcast %566 : f32 to vector<8x16xf32>
    %568 = arith.mulf %567, %31 : vector<8x16xf32>
    %569 = arith.addf %565, %568 : vector<8x16xf32>
    %c4_232 = arith.constant 4 : index
    %c15_233 = arith.constant 15 : index
    %570 = memref.load %arg2[%c4_232, %c15_233] : memref<8x27xf32, #tpu.memory_space<smem>>
    %571 = vector.broadcast %570 : f32 to vector<8x16xf32>
    %572 = arith.mulf %571, %33 : vector<8x16xf32>
    %573 = arith.addf %569, %572 : vector<8x16xf32>
    %c4_234 = arith.constant 4 : index
    %c16_235 = arith.constant 16 : index
    %574 = memref.load %arg2[%c4_234, %c16_235] : memref<8x27xf32, #tpu.memory_space<smem>>
    %575 = vector.broadcast %574 : f32 to vector<8x16xf32>
    %576 = arith.mulf %575, %35 : vector<8x16xf32>
    %577 = arith.addf %573, %576 : vector<8x16xf32>
    %c4_236 = arith.constant 4 : index
    %c17_237 = arith.constant 17 : index
    %578 = memref.load %arg2[%c4_236, %c17_237] : memref<8x27xf32, #tpu.memory_space<smem>>
    %579 = vector.broadcast %578 : f32 to vector<8x16xf32>
    %580 = arith.mulf %579, %37 : vector<8x16xf32>
    %581 = arith.addf %577, %580 : vector<8x16xf32>
    %c4_238 = arith.constant 4 : index
    %c18_239 = arith.constant 18 : index
    %582 = memref.load %arg2[%c4_238, %c18_239] : memref<8x27xf32, #tpu.memory_space<smem>>
    %583 = vector.broadcast %582 : f32 to vector<8x16xf32>
    %584 = arith.mulf %583, %39 : vector<8x16xf32>
    %585 = arith.addf %581, %584 : vector<8x16xf32>
    %c4_240 = arith.constant 4 : index
    %c19_241 = arith.constant 19 : index
    %586 = memref.load %arg2[%c4_240, %c19_241] : memref<8x27xf32, #tpu.memory_space<smem>>
    %587 = vector.broadcast %586 : f32 to vector<8x16xf32>
    %588 = arith.mulf %587, %41 : vector<8x16xf32>
    %589 = arith.addf %585, %588 : vector<8x16xf32>
    %c4_242 = arith.constant 4 : index
    %c20_243 = arith.constant 20 : index
    %590 = memref.load %arg2[%c4_242, %c20_243] : memref<8x27xf32, #tpu.memory_space<smem>>
    %591 = vector.broadcast %590 : f32 to vector<8x16xf32>
    %592 = arith.mulf %591, %43 : vector<8x16xf32>
    %593 = arith.addf %589, %592 : vector<8x16xf32>
    %c4_244 = arith.constant 4 : index
    %c21_245 = arith.constant 21 : index
    %594 = memref.load %arg2[%c4_244, %c21_245] : memref<8x27xf32, #tpu.memory_space<smem>>
    %595 = vector.broadcast %594 : f32 to vector<8x16xf32>
    %596 = arith.mulf %595, %45 : vector<8x16xf32>
    %597 = arith.addf %593, %596 : vector<8x16xf32>
    %c4_246 = arith.constant 4 : index
    %c22_247 = arith.constant 22 : index
    %598 = memref.load %arg2[%c4_246, %c22_247] : memref<8x27xf32, #tpu.memory_space<smem>>
    %599 = vector.broadcast %598 : f32 to vector<8x16xf32>
    %600 = arith.mulf %599, %47 : vector<8x16xf32>
    %601 = arith.addf %597, %600 : vector<8x16xf32>
    %c4_248 = arith.constant 4 : index
    %c23_249 = arith.constant 23 : index
    %602 = memref.load %arg2[%c4_248, %c23_249] : memref<8x27xf32, #tpu.memory_space<smem>>
    %603 = vector.broadcast %602 : f32 to vector<8x16xf32>
    %604 = arith.mulf %603, %49 : vector<8x16xf32>
    %605 = arith.addf %601, %604 : vector<8x16xf32>
    %c4_250 = arith.constant 4 : index
    %c24_251 = arith.constant 24 : index
    %606 = memref.load %arg2[%c4_250, %c24_251] : memref<8x27xf32, #tpu.memory_space<smem>>
    %607 = vector.broadcast %606 : f32 to vector<8x16xf32>
    %608 = arith.mulf %607, %51 : vector<8x16xf32>
    %609 = arith.addf %605, %608 : vector<8x16xf32>
    %c4_252 = arith.constant 4 : index
    %c25_253 = arith.constant 25 : index
    %610 = memref.load %arg2[%c4_252, %c25_253] : memref<8x27xf32, #tpu.memory_space<smem>>
    %611 = vector.broadcast %610 : f32 to vector<8x16xf32>
    %612 = arith.mulf %611, %53 : vector<8x16xf32>
    %613 = arith.addf %609, %612 : vector<8x16xf32>
    %c4_254 = arith.constant 4 : index
    %c26_255 = arith.constant 26 : index
    %614 = memref.load %arg2[%c4_254, %c26_255] : memref<8x27xf32, #tpu.memory_space<smem>>
    %615 = vector.broadcast %614 : f32 to vector<8x16xf32>
    %616 = arith.mulf %615, %55 : vector<8x16xf32>
    %617 = arith.addf %613, %616 : vector<8x16xf32>
    %cst_256 = arith.constant 0.000000e+00 : f32
    %618 = vector.broadcast %cst_256 : f32 to vector<8x16xf32>
    %619 = arith.maximumf %617, %618 : vector<8x16xf32>
    %620 = arith.mulf %619, %619 : vector<8x16xf32>
    %621 = arith.addf %508, %620 : vector<8x16xf32>
    %cst_257 = arith.constant 0.000000e+00 : f32
    %622 = vector.broadcast %cst_257 : f32 to vector<8x16xf32>
    %c5_258 = arith.constant 5 : index
    %c0_259 = arith.constant 0 : index
    %623 = memref.load %arg2[%c5_258, %c0_259] : memref<8x27xf32, #tpu.memory_space<smem>>
    %624 = vector.broadcast %623 : f32 to vector<8x16xf32>
    %625 = arith.mulf %624, %3 : vector<8x16xf32>
    %626 = arith.addf %622, %625 : vector<8x16xf32>
    %c5_260 = arith.constant 5 : index
    %c1_261 = arith.constant 1 : index
    %627 = memref.load %arg2[%c5_260, %c1_261] : memref<8x27xf32, #tpu.memory_space<smem>>
    %628 = vector.broadcast %627 : f32 to vector<8x16xf32>
    %629 = arith.mulf %628, %5 : vector<8x16xf32>
    %630 = arith.addf %626, %629 : vector<8x16xf32>
    %c5_262 = arith.constant 5 : index
    %c2_263 = arith.constant 2 : index
    %631 = memref.load %arg2[%c5_262, %c2_263] : memref<8x27xf32, #tpu.memory_space<smem>>
    %632 = vector.broadcast %631 : f32 to vector<8x16xf32>
    %633 = arith.mulf %632, %7 : vector<8x16xf32>
    %634 = arith.addf %630, %633 : vector<8x16xf32>
    %c5_264 = arith.constant 5 : index
    %c3_265 = arith.constant 3 : index
    %635 = memref.load %arg2[%c5_264, %c3_265] : memref<8x27xf32, #tpu.memory_space<smem>>
    %636 = vector.broadcast %635 : f32 to vector<8x16xf32>
    %637 = arith.mulf %636, %9 : vector<8x16xf32>
    %638 = arith.addf %634, %637 : vector<8x16xf32>
    %c5_266 = arith.constant 5 : index
    %c4_267 = arith.constant 4 : index
    %639 = memref.load %arg2[%c5_266, %c4_267] : memref<8x27xf32, #tpu.memory_space<smem>>
    %640 = vector.broadcast %639 : f32 to vector<8x16xf32>
    %641 = arith.mulf %640, %11 : vector<8x16xf32>
    %642 = arith.addf %638, %641 : vector<8x16xf32>
    %c5_268 = arith.constant 5 : index
    %c5_269 = arith.constant 5 : index
    %643 = memref.load %arg2[%c5_268, %c5_269] : memref<8x27xf32, #tpu.memory_space<smem>>
    %644 = vector.broadcast %643 : f32 to vector<8x16xf32>
    %645 = arith.mulf %644, %13 : vector<8x16xf32>
    %646 = arith.addf %642, %645 : vector<8x16xf32>
    %c5_270 = arith.constant 5 : index
    %c6_271 = arith.constant 6 : index
    %647 = memref.load %arg2[%c5_270, %c6_271] : memref<8x27xf32, #tpu.memory_space<smem>>
    %648 = vector.broadcast %647 : f32 to vector<8x16xf32>
    %649 = arith.mulf %648, %15 : vector<8x16xf32>
    %650 = arith.addf %646, %649 : vector<8x16xf32>
    %c5_272 = arith.constant 5 : index
    %c7_273 = arith.constant 7 : index
    %651 = memref.load %arg2[%c5_272, %c7_273] : memref<8x27xf32, #tpu.memory_space<smem>>
    %652 = vector.broadcast %651 : f32 to vector<8x16xf32>
    %653 = arith.mulf %652, %17 : vector<8x16xf32>
    %654 = arith.addf %650, %653 : vector<8x16xf32>
    %c5_274 = arith.constant 5 : index
    %c8_275 = arith.constant 8 : index
    %655 = memref.load %arg2[%c5_274, %c8_275] : memref<8x27xf32, #tpu.memory_space<smem>>
    %656 = vector.broadcast %655 : f32 to vector<8x16xf32>
    %657 = arith.mulf %656, %19 : vector<8x16xf32>
    %658 = arith.addf %654, %657 : vector<8x16xf32>
    %c5_276 = arith.constant 5 : index
    %c9_277 = arith.constant 9 : index
    %659 = memref.load %arg2[%c5_276, %c9_277] : memref<8x27xf32, #tpu.memory_space<smem>>
    %660 = vector.broadcast %659 : f32 to vector<8x16xf32>
    %661 = arith.mulf %660, %21 : vector<8x16xf32>
    %662 = arith.addf %658, %661 : vector<8x16xf32>
    %c5_278 = arith.constant 5 : index
    %c10_279 = arith.constant 10 : index
    %663 = memref.load %arg2[%c5_278, %c10_279] : memref<8x27xf32, #tpu.memory_space<smem>>
    %664 = vector.broadcast %663 : f32 to vector<8x16xf32>
    %665 = arith.mulf %664, %23 : vector<8x16xf32>
    %666 = arith.addf %662, %665 : vector<8x16xf32>
    %c5_280 = arith.constant 5 : index
    %c11_281 = arith.constant 11 : index
    %667 = memref.load %arg2[%c5_280, %c11_281] : memref<8x27xf32, #tpu.memory_space<smem>>
    %668 = vector.broadcast %667 : f32 to vector<8x16xf32>
    %669 = arith.mulf %668, %25 : vector<8x16xf32>
    %670 = arith.addf %666, %669 : vector<8x16xf32>
    %c5_282 = arith.constant 5 : index
    %c12_283 = arith.constant 12 : index
    %671 = memref.load %arg2[%c5_282, %c12_283] : memref<8x27xf32, #tpu.memory_space<smem>>
    %672 = vector.broadcast %671 : f32 to vector<8x16xf32>
    %673 = arith.mulf %672, %27 : vector<8x16xf32>
    %674 = arith.addf %670, %673 : vector<8x16xf32>
    %c5_284 = arith.constant 5 : index
    %c13_285 = arith.constant 13 : index
    %675 = memref.load %arg2[%c5_284, %c13_285] : memref<8x27xf32, #tpu.memory_space<smem>>
    %676 = vector.broadcast %675 : f32 to vector<8x16xf32>
    %677 = arith.mulf %676, %29 : vector<8x16xf32>
    %678 = arith.addf %674, %677 : vector<8x16xf32>
    %c5_286 = arith.constant 5 : index
    %c14_287 = arith.constant 14 : index
    %679 = memref.load %arg2[%c5_286, %c14_287] : memref<8x27xf32, #tpu.memory_space<smem>>
    %680 = vector.broadcast %679 : f32 to vector<8x16xf32>
    %681 = arith.mulf %680, %31 : vector<8x16xf32>
    %682 = arith.addf %678, %681 : vector<8x16xf32>
    %c5_288 = arith.constant 5 : index
    %c15_289 = arith.constant 15 : index
    %683 = memref.load %arg2[%c5_288, %c15_289] : memref<8x27xf32, #tpu.memory_space<smem>>
    %684 = vector.broadcast %683 : f32 to vector<8x16xf32>
    %685 = arith.mulf %684, %33 : vector<8x16xf32>
    %686 = arith.addf %682, %685 : vector<8x16xf32>
    %c5_290 = arith.constant 5 : index
    %c16_291 = arith.constant 16 : index
    %687 = memref.load %arg2[%c5_290, %c16_291] : memref<8x27xf32, #tpu.memory_space<smem>>
    %688 = vector.broadcast %687 : f32 to vector<8x16xf32>
    %689 = arith.mulf %688, %35 : vector<8x16xf32>
    %690 = arith.addf %686, %689 : vector<8x16xf32>
    %c5_292 = arith.constant 5 : index
    %c17_293 = arith.constant 17 : index
    %691 = memref.load %arg2[%c5_292, %c17_293] : memref<8x27xf32, #tpu.memory_space<smem>>
    %692 = vector.broadcast %691 : f32 to vector<8x16xf32>
    %693 = arith.mulf %692, %37 : vector<8x16xf32>
    %694 = arith.addf %690, %693 : vector<8x16xf32>
    %c5_294 = arith.constant 5 : index
    %c18_295 = arith.constant 18 : index
    %695 = memref.load %arg2[%c5_294, %c18_295] : memref<8x27xf32, #tpu.memory_space<smem>>
    %696 = vector.broadcast %695 : f32 to vector<8x16xf32>
    %697 = arith.mulf %696, %39 : vector<8x16xf32>
    %698 = arith.addf %694, %697 : vector<8x16xf32>
    %c5_296 = arith.constant 5 : index
    %c19_297 = arith.constant 19 : index
    %699 = memref.load %arg2[%c5_296, %c19_297] : memref<8x27xf32, #tpu.memory_space<smem>>
    %700 = vector.broadcast %699 : f32 to vector<8x16xf32>
    %701 = arith.mulf %700, %41 : vector<8x16xf32>
    %702 = arith.addf %698, %701 : vector<8x16xf32>
    %c5_298 = arith.constant 5 : index
    %c20_299 = arith.constant 20 : index
    %703 = memref.load %arg2[%c5_298, %c20_299] : memref<8x27xf32, #tpu.memory_space<smem>>
    %704 = vector.broadcast %703 : f32 to vector<8x16xf32>
    %705 = arith.mulf %704, %43 : vector<8x16xf32>
    %706 = arith.addf %702, %705 : vector<8x16xf32>
    %c5_300 = arith.constant 5 : index
    %c21_301 = arith.constant 21 : index
    %707 = memref.load %arg2[%c5_300, %c21_301] : memref<8x27xf32, #tpu.memory_space<smem>>
    %708 = vector.broadcast %707 : f32 to vector<8x16xf32>
    %709 = arith.mulf %708, %45 : vector<8x16xf32>
    %710 = arith.addf %706, %709 : vector<8x16xf32>
    %c5_302 = arith.constant 5 : index
    %c22_303 = arith.constant 22 : index
    %711 = memref.load %arg2[%c5_302, %c22_303] : memref<8x27xf32, #tpu.memory_space<smem>>
    %712 = vector.broadcast %711 : f32 to vector<8x16xf32>
    %713 = arith.mulf %712, %47 : vector<8x16xf32>
    %714 = arith.addf %710, %713 : vector<8x16xf32>
    %c5_304 = arith.constant 5 : index
    %c23_305 = arith.constant 23 : index
    %715 = memref.load %arg2[%c5_304, %c23_305] : memref<8x27xf32, #tpu.memory_space<smem>>
    %716 = vector.broadcast %715 : f32 to vector<8x16xf32>
    %717 = arith.mulf %716, %49 : vector<8x16xf32>
    %718 = arith.addf %714, %717 : vector<8x16xf32>
    %c5_306 = arith.constant 5 : index
    %c24_307 = arith.constant 24 : index
    %719 = memref.load %arg2[%c5_306, %c24_307] : memref<8x27xf32, #tpu.memory_space<smem>>
    %720 = vector.broadcast %719 : f32 to vector<8x16xf32>
    %721 = arith.mulf %720, %51 : vector<8x16xf32>
    %722 = arith.addf %718, %721 : vector<8x16xf32>
    %c5_308 = arith.constant 5 : index
    %c25_309 = arith.constant 25 : index
    %723 = memref.load %arg2[%c5_308, %c25_309] : memref<8x27xf32, #tpu.memory_space<smem>>
    %724 = vector.broadcast %723 : f32 to vector<8x16xf32>
    %725 = arith.mulf %724, %53 : vector<8x16xf32>
    %726 = arith.addf %722, %725 : vector<8x16xf32>
    %c5_310 = arith.constant 5 : index
    %c26_311 = arith.constant 26 : index
    %727 = memref.load %arg2[%c5_310, %c26_311] : memref<8x27xf32, #tpu.memory_space<smem>>
    %728 = vector.broadcast %727 : f32 to vector<8x16xf32>
    %729 = arith.mulf %728, %55 : vector<8x16xf32>
    %730 = arith.addf %726, %729 : vector<8x16xf32>
    %cst_312 = arith.constant 0.000000e+00 : f32
    %731 = vector.broadcast %cst_312 : f32 to vector<8x16xf32>
    %732 = arith.maximumf %730, %731 : vector<8x16xf32>
    %733 = arith.mulf %732, %732 : vector<8x16xf32>
    %734 = arith.addf %621, %733 : vector<8x16xf32>
    %cst_313 = arith.constant 0.000000e+00 : f32
    %735 = vector.broadcast %cst_313 : f32 to vector<8x16xf32>
    %c6_314 = arith.constant 6 : index
    %c0_315 = arith.constant 0 : index
    %736 = memref.load %arg2[%c6_314, %c0_315] : memref<8x27xf32, #tpu.memory_space<smem>>
    %737 = vector.broadcast %736 : f32 to vector<8x16xf32>
    %738 = arith.mulf %737, %3 : vector<8x16xf32>
    %739 = arith.addf %735, %738 : vector<8x16xf32>
    %c6_316 = arith.constant 6 : index
    %c1_317 = arith.constant 1 : index
    %740 = memref.load %arg2[%c6_316, %c1_317] : memref<8x27xf32, #tpu.memory_space<smem>>
    %741 = vector.broadcast %740 : f32 to vector<8x16xf32>
    %742 = arith.mulf %741, %5 : vector<8x16xf32>
    %743 = arith.addf %739, %742 : vector<8x16xf32>
    %c6_318 = arith.constant 6 : index
    %c2_319 = arith.constant 2 : index
    %744 = memref.load %arg2[%c6_318, %c2_319] : memref<8x27xf32, #tpu.memory_space<smem>>
    %745 = vector.broadcast %744 : f32 to vector<8x16xf32>
    %746 = arith.mulf %745, %7 : vector<8x16xf32>
    %747 = arith.addf %743, %746 : vector<8x16xf32>
    %c6_320 = arith.constant 6 : index
    %c3_321 = arith.constant 3 : index
    %748 = memref.load %arg2[%c6_320, %c3_321] : memref<8x27xf32, #tpu.memory_space<smem>>
    %749 = vector.broadcast %748 : f32 to vector<8x16xf32>
    %750 = arith.mulf %749, %9 : vector<8x16xf32>
    %751 = arith.addf %747, %750 : vector<8x16xf32>
    %c6_322 = arith.constant 6 : index
    %c4_323 = arith.constant 4 : index
    %752 = memref.load %arg2[%c6_322, %c4_323] : memref<8x27xf32, #tpu.memory_space<smem>>
    %753 = vector.broadcast %752 : f32 to vector<8x16xf32>
    %754 = arith.mulf %753, %11 : vector<8x16xf32>
    %755 = arith.addf %751, %754 : vector<8x16xf32>
    %c6_324 = arith.constant 6 : index
    %c5_325 = arith.constant 5 : index
    %756 = memref.load %arg2[%c6_324, %c5_325] : memref<8x27xf32, #tpu.memory_space<smem>>
    %757 = vector.broadcast %756 : f32 to vector<8x16xf32>
    %758 = arith.mulf %757, %13 : vector<8x16xf32>
    %759 = arith.addf %755, %758 : vector<8x16xf32>
    %c6_326 = arith.constant 6 : index
    %c6_327 = arith.constant 6 : index
    %760 = memref.load %arg2[%c6_326, %c6_327] : memref<8x27xf32, #tpu.memory_space<smem>>
    %761 = vector.broadcast %760 : f32 to vector<8x16xf32>
    %762 = arith.mulf %761, %15 : vector<8x16xf32>
    %763 = arith.addf %759, %762 : vector<8x16xf32>
    %c6_328 = arith.constant 6 : index
    %c7_329 = arith.constant 7 : index
    %764 = memref.load %arg2[%c6_328, %c7_329] : memref<8x27xf32, #tpu.memory_space<smem>>
    %765 = vector.broadcast %764 : f32 to vector<8x16xf32>
    %766 = arith.mulf %765, %17 : vector<8x16xf32>
    %767 = arith.addf %763, %766 : vector<8x16xf32>
    %c6_330 = arith.constant 6 : index
    %c8_331 = arith.constant 8 : index
    %768 = memref.load %arg2[%c6_330, %c8_331] : memref<8x27xf32, #tpu.memory_space<smem>>
    %769 = vector.broadcast %768 : f32 to vector<8x16xf32>
    %770 = arith.mulf %769, %19 : vector<8x16xf32>
    %771 = arith.addf %767, %770 : vector<8x16xf32>
    %c6_332 = arith.constant 6 : index
    %c9_333 = arith.constant 9 : index
    %772 = memref.load %arg2[%c6_332, %c9_333] : memref<8x27xf32, #tpu.memory_space<smem>>
    %773 = vector.broadcast %772 : f32 to vector<8x16xf32>
    %774 = arith.mulf %773, %21 : vector<8x16xf32>
    %775 = arith.addf %771, %774 : vector<8x16xf32>
    %c6_334 = arith.constant 6 : index
    %c10_335 = arith.constant 10 : index
    %776 = memref.load %arg2[%c6_334, %c10_335] : memref<8x27xf32, #tpu.memory_space<smem>>
    %777 = vector.broadcast %776 : f32 to vector<8x16xf32>
    %778 = arith.mulf %777, %23 : vector<8x16xf32>
    %779 = arith.addf %775, %778 : vector<8x16xf32>
    %c6_336 = arith.constant 6 : index
    %c11_337 = arith.constant 11 : index
    %780 = memref.load %arg2[%c6_336, %c11_337] : memref<8x27xf32, #tpu.memory_space<smem>>
    %781 = vector.broadcast %780 : f32 to vector<8x16xf32>
    %782 = arith.mulf %781, %25 : vector<8x16xf32>
    %783 = arith.addf %779, %782 : vector<8x16xf32>
    %c6_338 = arith.constant 6 : index
    %c12_339 = arith.constant 12 : index
    %784 = memref.load %arg2[%c6_338, %c12_339] : memref<8x27xf32, #tpu.memory_space<smem>>
    %785 = vector.broadcast %784 : f32 to vector<8x16xf32>
    %786 = arith.mulf %785, %27 : vector<8x16xf32>
    %787 = arith.addf %783, %786 : vector<8x16xf32>
    %c6_340 = arith.constant 6 : index
    %c13_341 = arith.constant 13 : index
    %788 = memref.load %arg2[%c6_340, %c13_341] : memref<8x27xf32, #tpu.memory_space<smem>>
    %789 = vector.broadcast %788 : f32 to vector<8x16xf32>
    %790 = arith.mulf %789, %29 : vector<8x16xf32>
    %791 = arith.addf %787, %790 : vector<8x16xf32>
    %c6_342 = arith.constant 6 : index
    %c14_343 = arith.constant 14 : index
    %792 = memref.load %arg2[%c6_342, %c14_343] : memref<8x27xf32, #tpu.memory_space<smem>>
    %793 = vector.broadcast %792 : f32 to vector<8x16xf32>
    %794 = arith.mulf %793, %31 : vector<8x16xf32>
    %795 = arith.addf %791, %794 : vector<8x16xf32>
    %c6_344 = arith.constant 6 : index
    %c15_345 = arith.constant 15 : index
    %796 = memref.load %arg2[%c6_344, %c15_345] : memref<8x27xf32, #tpu.memory_space<smem>>
    %797 = vector.broadcast %796 : f32 to vector<8x16xf32>
    %798 = arith.mulf %797, %33 : vector<8x16xf32>
    %799 = arith.addf %795, %798 : vector<8x16xf32>
    %c6_346 = arith.constant 6 : index
    %c16_347 = arith.constant 16 : index
    %800 = memref.load %arg2[%c6_346, %c16_347] : memref<8x27xf32, #tpu.memory_space<smem>>
    %801 = vector.broadcast %800 : f32 to vector<8x16xf32>
    %802 = arith.mulf %801, %35 : vector<8x16xf32>
    %803 = arith.addf %799, %802 : vector<8x16xf32>
    %c6_348 = arith.constant 6 : index
    %c17_349 = arith.constant 17 : index
    %804 = memref.load %arg2[%c6_348, %c17_349] : memref<8x27xf32, #tpu.memory_space<smem>>
    %805 = vector.broadcast %804 : f32 to vector<8x16xf32>
    %806 = arith.mulf %805, %37 : vector<8x16xf32>
    %807 = arith.addf %803, %806 : vector<8x16xf32>
    %c6_350 = arith.constant 6 : index
    %c18_351 = arith.constant 18 : index
    %808 = memref.load %arg2[%c6_350, %c18_351] : memref<8x27xf32, #tpu.memory_space<smem>>
    %809 = vector.broadcast %808 : f32 to vector<8x16xf32>
    %810 = arith.mulf %809, %39 : vector<8x16xf32>
    %811 = arith.addf %807, %810 : vector<8x16xf32>
    %c6_352 = arith.constant 6 : index
    %c19_353 = arith.constant 19 : index
    %812 = memref.load %arg2[%c6_352, %c19_353] : memref<8x27xf32, #tpu.memory_space<smem>>
    %813 = vector.broadcast %812 : f32 to vector<8x16xf32>
    %814 = arith.mulf %813, %41 : vector<8x16xf32>
    %815 = arith.addf %811, %814 : vector<8x16xf32>
    %c6_354 = arith.constant 6 : index
    %c20_355 = arith.constant 20 : index
    %816 = memref.load %arg2[%c6_354, %c20_355] : memref<8x27xf32, #tpu.memory_space<smem>>
    %817 = vector.broadcast %816 : f32 to vector<8x16xf32>
    %818 = arith.mulf %817, %43 : vector<8x16xf32>
    %819 = arith.addf %815, %818 : vector<8x16xf32>
    %c6_356 = arith.constant 6 : index
    %c21_357 = arith.constant 21 : index
    %820 = memref.load %arg2[%c6_356, %c21_357] : memref<8x27xf32, #tpu.memory_space<smem>>
    %821 = vector.broadcast %820 : f32 to vector<8x16xf32>
    %822 = arith.mulf %821, %45 : vector<8x16xf32>
    %823 = arith.addf %819, %822 : vector<8x16xf32>
    %c6_358 = arith.constant 6 : index
    %c22_359 = arith.constant 22 : index
    %824 = memref.load %arg2[%c6_358, %c22_359] : memref<8x27xf32, #tpu.memory_space<smem>>
    %825 = vector.broadcast %824 : f32 to vector<8x16xf32>
    %826 = arith.mulf %825, %47 : vector<8x16xf32>
    %827 = arith.addf %823, %826 : vector<8x16xf32>
    %c6_360 = arith.constant 6 : index
    %c23_361 = arith.constant 23 : index
    %828 = memref.load %arg2[%c6_360, %c23_361] : memref<8x27xf32, #tpu.memory_space<smem>>
    %829 = vector.broadcast %828 : f32 to vector<8x16xf32>
    %830 = arith.mulf %829, %49 : vector<8x16xf32>
    %831 = arith.addf %827, %830 : vector<8x16xf32>
    %c6_362 = arith.constant 6 : index
    %c24_363 = arith.constant 24 : index
    %832 = memref.load %arg2[%c6_362, %c24_363] : memref<8x27xf32, #tpu.memory_space<smem>>
    %833 = vector.broadcast %832 : f32 to vector<8x16xf32>
    %834 = arith.mulf %833, %51 : vector<8x16xf32>
    %835 = arith.addf %831, %834 : vector<8x16xf32>
    %c6_364 = arith.constant 6 : index
    %c25_365 = arith.constant 25 : index
    %836 = memref.load %arg2[%c6_364, %c25_365] : memref<8x27xf32, #tpu.memory_space<smem>>
    %837 = vector.broadcast %836 : f32 to vector<8x16xf32>
    %838 = arith.mulf %837, %53 : vector<8x16xf32>
    %839 = arith.addf %835, %838 : vector<8x16xf32>
    %c6_366 = arith.constant 6 : index
    %c26_367 = arith.constant 26 : index
    %840 = memref.load %arg2[%c6_366, %c26_367] : memref<8x27xf32, #tpu.memory_space<smem>>
    %841 = vector.broadcast %840 : f32 to vector<8x16xf32>
    %842 = arith.mulf %841, %55 : vector<8x16xf32>
    %843 = arith.addf %839, %842 : vector<8x16xf32>
    %cst_368 = arith.constant 0.000000e+00 : f32
    %844 = vector.broadcast %cst_368 : f32 to vector<8x16xf32>
    %845 = arith.maximumf %843, %844 : vector<8x16xf32>
    %846 = arith.mulf %845, %845 : vector<8x16xf32>
    %847 = arith.addf %734, %846 : vector<8x16xf32>
    %cst_369 = arith.constant 0.000000e+00 : f32
    %848 = vector.broadcast %cst_369 : f32 to vector<8x16xf32>
    %c7_370 = arith.constant 7 : index
    %c0_371 = arith.constant 0 : index
    %849 = memref.load %arg2[%c7_370, %c0_371] : memref<8x27xf32, #tpu.memory_space<smem>>
    %850 = vector.broadcast %849 : f32 to vector<8x16xf32>
    %851 = arith.mulf %850, %3 : vector<8x16xf32>
    %852 = arith.addf %848, %851 : vector<8x16xf32>
    %c7_372 = arith.constant 7 : index
    %c1_373 = arith.constant 1 : index
    %853 = memref.load %arg2[%c7_372, %c1_373] : memref<8x27xf32, #tpu.memory_space<smem>>
    %854 = vector.broadcast %853 : f32 to vector<8x16xf32>
    %855 = arith.mulf %854, %5 : vector<8x16xf32>
    %856 = arith.addf %852, %855 : vector<8x16xf32>
    %c7_374 = arith.constant 7 : index
    %c2_375 = arith.constant 2 : index
    %857 = memref.load %arg2[%c7_374, %c2_375] : memref<8x27xf32, #tpu.memory_space<smem>>
    %858 = vector.broadcast %857 : f32 to vector<8x16xf32>
    %859 = arith.mulf %858, %7 : vector<8x16xf32>
    %860 = arith.addf %856, %859 : vector<8x16xf32>
    %c7_376 = arith.constant 7 : index
    %c3_377 = arith.constant 3 : index
    %861 = memref.load %arg2[%c7_376, %c3_377] : memref<8x27xf32, #tpu.memory_space<smem>>
    %862 = vector.broadcast %861 : f32 to vector<8x16xf32>
    %863 = arith.mulf %862, %9 : vector<8x16xf32>
    %864 = arith.addf %860, %863 : vector<8x16xf32>
    %c7_378 = arith.constant 7 : index
    %c4_379 = arith.constant 4 : index
    %865 = memref.load %arg2[%c7_378, %c4_379] : memref<8x27xf32, #tpu.memory_space<smem>>
    %866 = vector.broadcast %865 : f32 to vector<8x16xf32>
    %867 = arith.mulf %866, %11 : vector<8x16xf32>
    %868 = arith.addf %864, %867 : vector<8x16xf32>
    %c7_380 = arith.constant 7 : index
    %c5_381 = arith.constant 5 : index
    %869 = memref.load %arg2[%c7_380, %c5_381] : memref<8x27xf32, #tpu.memory_space<smem>>
    %870 = vector.broadcast %869 : f32 to vector<8x16xf32>
    %871 = arith.mulf %870, %13 : vector<8x16xf32>
    %872 = arith.addf %868, %871 : vector<8x16xf32>
    %c7_382 = arith.constant 7 : index
    %c6_383 = arith.constant 6 : index
    %873 = memref.load %arg2[%c7_382, %c6_383] : memref<8x27xf32, #tpu.memory_space<smem>>
    %874 = vector.broadcast %873 : f32 to vector<8x16xf32>
    %875 = arith.mulf %874, %15 : vector<8x16xf32>
    %876 = arith.addf %872, %875 : vector<8x16xf32>
    %c7_384 = arith.constant 7 : index
    %c7_385 = arith.constant 7 : index
    %877 = memref.load %arg2[%c7_384, %c7_385] : memref<8x27xf32, #tpu.memory_space<smem>>
    %878 = vector.broadcast %877 : f32 to vector<8x16xf32>
    %879 = arith.mulf %878, %17 : vector<8x16xf32>
    %880 = arith.addf %876, %879 : vector<8x16xf32>
    %c7_386 = arith.constant 7 : index
    %c8_387 = arith.constant 8 : index
    %881 = memref.load %arg2[%c7_386, %c8_387] : memref<8x27xf32, #tpu.memory_space<smem>>
    %882 = vector.broadcast %881 : f32 to vector<8x16xf32>
    %883 = arith.mulf %882, %19 : vector<8x16xf32>
    %884 = arith.addf %880, %883 : vector<8x16xf32>
    %c7_388 = arith.constant 7 : index
    %c9_389 = arith.constant 9 : index
    %885 = memref.load %arg2[%c7_388, %c9_389] : memref<8x27xf32, #tpu.memory_space<smem>>
    %886 = vector.broadcast %885 : f32 to vector<8x16xf32>
    %887 = arith.mulf %886, %21 : vector<8x16xf32>
    %888 = arith.addf %884, %887 : vector<8x16xf32>
    %c7_390 = arith.constant 7 : index
    %c10_391 = arith.constant 10 : index
    %889 = memref.load %arg2[%c7_390, %c10_391] : memref<8x27xf32, #tpu.memory_space<smem>>
    %890 = vector.broadcast %889 : f32 to vector<8x16xf32>
    %891 = arith.mulf %890, %23 : vector<8x16xf32>
    %892 = arith.addf %888, %891 : vector<8x16xf32>
    %c7_392 = arith.constant 7 : index
    %c11_393 = arith.constant 11 : index
    %893 = memref.load %arg2[%c7_392, %c11_393] : memref<8x27xf32, #tpu.memory_space<smem>>
    %894 = vector.broadcast %893 : f32 to vector<8x16xf32>
    %895 = arith.mulf %894, %25 : vector<8x16xf32>
    %896 = arith.addf %892, %895 : vector<8x16xf32>
    %c7_394 = arith.constant 7 : index
    %c12_395 = arith.constant 12 : index
    %897 = memref.load %arg2[%c7_394, %c12_395] : memref<8x27xf32, #tpu.memory_space<smem>>
    %898 = vector.broadcast %897 : f32 to vector<8x16xf32>
    %899 = arith.mulf %898, %27 : vector<8x16xf32>
    %900 = arith.addf %896, %899 : vector<8x16xf32>
    %c7_396 = arith.constant 7 : index
    %c13_397 = arith.constant 13 : index
    %901 = memref.load %arg2[%c7_396, %c13_397] : memref<8x27xf32, #tpu.memory_space<smem>>
    %902 = vector.broadcast %901 : f32 to vector<8x16xf32>
    %903 = arith.mulf %902, %29 : vector<8x16xf32>
    %904 = arith.addf %900, %903 : vector<8x16xf32>
    %c7_398 = arith.constant 7 : index
    %c14_399 = arith.constant 14 : index
    %905 = memref.load %arg2[%c7_398, %c14_399] : memref<8x27xf32, #tpu.memory_space<smem>>
    %906 = vector.broadcast %905 : f32 to vector<8x16xf32>
    %907 = arith.mulf %906, %31 : vector<8x16xf32>
    %908 = arith.addf %904, %907 : vector<8x16xf32>
    %c7_400 = arith.constant 7 : index
    %c15_401 = arith.constant 15 : index
    %909 = memref.load %arg2[%c7_400, %c15_401] : memref<8x27xf32, #tpu.memory_space<smem>>
    %910 = vector.broadcast %909 : f32 to vector<8x16xf32>
    %911 = arith.mulf %910, %33 : vector<8x16xf32>
    %912 = arith.addf %908, %911 : vector<8x16xf32>
    %c7_402 = arith.constant 7 : index
    %c16_403 = arith.constant 16 : index
    %913 = memref.load %arg2[%c7_402, %c16_403] : memref<8x27xf32, #tpu.memory_space<smem>>
    %914 = vector.broadcast %913 : f32 to vector<8x16xf32>
    %915 = arith.mulf %914, %35 : vector<8x16xf32>
    %916 = arith.addf %912, %915 : vector<8x16xf32>
    %c7_404 = arith.constant 7 : index
    %c17_405 = arith.constant 17 : index
    %917 = memref.load %arg2[%c7_404, %c17_405] : memref<8x27xf32, #tpu.memory_space<smem>>
    %918 = vector.broadcast %917 : f32 to vector<8x16xf32>
    %919 = arith.mulf %918, %37 : vector<8x16xf32>
    %920 = arith.addf %916, %919 : vector<8x16xf32>
    %c7_406 = arith.constant 7 : index
    %c18_407 = arith.constant 18 : index
    %921 = memref.load %arg2[%c7_406, %c18_407] : memref<8x27xf32, #tpu.memory_space<smem>>
    %922 = vector.broadcast %921 : f32 to vector<8x16xf32>
    %923 = arith.mulf %922, %39 : vector<8x16xf32>
    %924 = arith.addf %920, %923 : vector<8x16xf32>
    %c7_408 = arith.constant 7 : index
    %c19_409 = arith.constant 19 : index
    %925 = memref.load %arg2[%c7_408, %c19_409] : memref<8x27xf32, #tpu.memory_space<smem>>
    %926 = vector.broadcast %925 : f32 to vector<8x16xf32>
    %927 = arith.mulf %926, %41 : vector<8x16xf32>
    %928 = arith.addf %924, %927 : vector<8x16xf32>
    %c7_410 = arith.constant 7 : index
    %c20_411 = arith.constant 20 : index
    %929 = memref.load %arg2[%c7_410, %c20_411] : memref<8x27xf32, #tpu.memory_space<smem>>
    %930 = vector.broadcast %929 : f32 to vector<8x16xf32>
    %931 = arith.mulf %930, %43 : vector<8x16xf32>
    %932 = arith.addf %928, %931 : vector<8x16xf32>
    %c7_412 = arith.constant 7 : index
    %c21_413 = arith.constant 21 : index
    %933 = memref.load %arg2[%c7_412, %c21_413] : memref<8x27xf32, #tpu.memory_space<smem>>
    %934 = vector.broadcast %933 : f32 to vector<8x16xf32>
    %935 = arith.mulf %934, %45 : vector<8x16xf32>
    %936 = arith.addf %932, %935 : vector<8x16xf32>
    %c7_414 = arith.constant 7 : index
    %c22_415 = arith.constant 22 : index
    %937 = memref.load %arg2[%c7_414, %c22_415] : memref<8x27xf32, #tpu.memory_space<smem>>
    %938 = vector.broadcast %937 : f32 to vector<8x16xf32>
    %939 = arith.mulf %938, %47 : vector<8x16xf32>
    %940 = arith.addf %936, %939 : vector<8x16xf32>
    %c7_416 = arith.constant 7 : index
    %c23_417 = arith.constant 23 : index
    %941 = memref.load %arg2[%c7_416, %c23_417] : memref<8x27xf32, #tpu.memory_space<smem>>
    %942 = vector.broadcast %941 : f32 to vector<8x16xf32>
    %943 = arith.mulf %942, %49 : vector<8x16xf32>
    %944 = arith.addf %940, %943 : vector<8x16xf32>
    %c7_418 = arith.constant 7 : index
    %c24_419 = arith.constant 24 : index
    %945 = memref.load %arg2[%c7_418, %c24_419] : memref<8x27xf32, #tpu.memory_space<smem>>
    %946 = vector.broadcast %945 : f32 to vector<8x16xf32>
    %947 = arith.mulf %946, %51 : vector<8x16xf32>
    %948 = arith.addf %944, %947 : vector<8x16xf32>
    %c7_420 = arith.constant 7 : index
    %c25_421 = arith.constant 25 : index
    %949 = memref.load %arg2[%c7_420, %c25_421] : memref<8x27xf32, #tpu.memory_space<smem>>
    %950 = vector.broadcast %949 : f32 to vector<8x16xf32>
    %951 = arith.mulf %950, %53 : vector<8x16xf32>
    %952 = arith.addf %948, %951 : vector<8x16xf32>
    %c7_422 = arith.constant 7 : index
    %c26_423 = arith.constant 26 : index
    %953 = memref.load %arg2[%c7_422, %c26_423] : memref<8x27xf32, #tpu.memory_space<smem>>
    %954 = vector.broadcast %953 : f32 to vector<8x16xf32>
    %955 = arith.mulf %954, %55 : vector<8x16xf32>
    %956 = arith.addf %952, %955 : vector<8x16xf32>
    %cst_424 = arith.constant 0.000000e+00 : f32
    %957 = vector.broadcast %cst_424 : f32 to vector<8x16xf32>
    %958 = arith.maximumf %956, %957 : vector<8x16xf32>
    %959 = arith.mulf %958, %958 : vector<8x16xf32>
    %960 = arith.addf %847, %959 : vector<8x16xf32>
    %961 = vector.shape_cast %960 : vector<8x16xf32> to vector<1x8x16xf32>
    %cst_425 = arith.constant dense<0.000000e+00> : vector<1xf32>
    %962 = vector.multi_reduction <add>, %961, %cst_425 [1, 2] : vector<1x8x16xf32> to vector<1xf32>
    %963 = vector.shape_cast %962 : vector<1xf32> to vector<1x1x1xf32>
    %964 = vector.extract %963[0, 0, 0] : f32 from vector<1x1x1xf32>
    %cst_426 = arith.constant 0.000000e+00 : f32
    %965 = arith.subf %cst_426, %964 : f32
    %966 = vector.broadcast %965 : f32 to vector<1x8x128xf32>
    %c0_427 = arith.constant 0 : index
    %c0_428 = arith.constant 0 : index
    %c0_429 = arith.constant 0 : index
    %967 = vector.load %arg3[%c0_427, %c0_428, %c0_429] : memref<1x8x128xf32, #tpu.memory_space<vmem>>, vector<1x8x128xf32>
    tpu.vector_store %arg3[%c0_427, %c0_428, %c0_429], %966 {strides = array<i32>} : memref<1x8x128xf32, #tpu.memory_space<vmem>>, vector<1x8x128xf32>,
    return
  }
  func.func @transform_0(%arg0: i32) -> (i32, i32, i32, i32) {
    %c0_i32 = arith.constant 0 : i32
    %c0_i32_0 = arith.constant 0 : i32
    %c0_i32_1 = arith.constant 0 : i32
    %c0_i32_2 = arith.constant 0 : i32
    return %arg0, %c0_i32, %c0_i32_0, %c0_i32_1 : i32, i32, i32, i32
  }
  func.func @transform_1(%arg0: i32) -> (i32, i32) {
    %c0_i32 = arith.constant 0 : i32
    %c0_i32_0 = arith.constant 0 : i32
    %c0_i32_1 = arith.constant 0 : i32
    return %c0_i32, %c0_i32_0 : i32, i32
  }
  func.func @transform_2(%arg0: i32) -> (i32, i32, i32) {
    %c0_i32 = arith.constant 0 : i32
    %c0_i32_0 = arith.constant 0 : i32
    %c0_i32_1 = arith.constant 0 : i32
    return %arg0, %c0_i32, %c0_i32_0 : i32, i32, i32
  }
}

</mosaic_0001>

<bundles_post_ra>
// kernel: deepdream_forward.1
= control target key start
LH: loop header
LB: loop body
LE: loop exit
PB: predicated region body
PF: predicated region fallthrough
CT: control target
= control target key end

     0   :  { %7 = vsyncpa [#allocation3], 0  ;;  %s2832_s9 = smov 0   ;;  %s4270_s0 = inlined_call_operand.vmem [shape: f32[4,3,10,18], index: 0, kind: input, shape index: {}]   ;;  %s4271_s1 = inlined_call_operand.vmem [shape: f32[8,27], index: 1, kind: input, shape index: {}]   ;;  %s4272_s2 = inlined_call_operand.vmem [shape: f32[4,8,128], index: 2, kind: output, shape index: {}]  }
   0x1 LB: > { %s2523_s10 = sadd.s32 4294967295, %s2812_s9   ;;  %p2525_p0 = scmp.ge.s32.totalorder %s2812_s9, 1  ;;  %s2812_s9 = sphi %s2832_s9, %s13_s9  }
   0x2   : > { %p91_p1 = scmp.lt.s32.totalorder %s2812_s9, 5  ;;  %s103_s13 = sshll.u32 %s4271_s1, 4  ;;  %s104_s13 = int_to_ptr.vmem [resolvable:$true] %s103_s13 }
   0x3   : > { %p2760_p3 = scmp.eq.s32.totalorder %s2523_s10, 0  ;;  %s2814_s14 = smov [#allocation2]  }
   0x4   : > { %p92_p2 = pnand %p2525_p0, %p91_p1 }
   0x6   : > { %p2756_p4 = pneg %p92_p2  ;;  %124 = sbr.rel (%p92_p2) target bundleno = 712 (0x2c8), region = 28 }
   0x8   : > { %p2757_p5 = pnand %p2760_p3, %p2756_p4 }
   0xa   : > { %2759 = dma.vmem_to_smem (!%p2757_p5), %s104_s13, 128, %s2814_s14, [#allocation3]  }
   0xb   : > { %2807 = dma.done.wait (%p2760_p3), [#allocation3], 128  }
   0xc   : > { %2809 = vsyncadd (%p2760_p3), [#allocation3], 4294967168 }
   0xd   : > { %131 = sfence }
   0xe   : > { %p147_p6 = scmp.lt.s32.totalorder %s2523_s10, 3  ;;  %s2532_s15 = sld [smem:[#allocation2 + $0x1]]  ;;  %vm226_vm0 = vcmask 1045504   ;;  %vm188_vm1 = vcmask 1046528   ;;  %vm2444_vm2 = vcmask 130048  }
   0xf   : > { %s2538_s16 = sld [smem:[#allocation2 + $0x7]]  ;;  %s2815_s26 = smov 127  }
  0x10   : > { %s4274_s10 = smov (!%p147_p6, %s2523_s10), 3  ;;  %s2535_s17 = sld [smem:[#allocation2 + $0x4]] }
  0x11   : > { %s2749_s18 = smul.u32 48, %s4274_s10  ;;  %s2846_s19 = sld [smem:[#allocation2 + $0x2]] }
  0x12   : > { %s2539_s20 = sld [smem:[#allocation2 + $0x8]]  ;;  %s2816_s4 = smov 126  }
  0x13   : > { %s2851_s23 = scalar_lea.vmem %s4270_s0, %s2749_s18  ;;  %s2853_s24 = sld [smem:[#allocation2 + $0x5]] }
  0x14   : > { %v167_v0 = vstv %s2532_s15  ;;  %v2856_v1 = vld [vmem:[%s2851_s23] sm:$0xff]  ;;  %v2859_v2 = vld [vmem:[%s2851_s23 + $0x8] sm:$0x3]  ;;  %s2864_s25 = sld [smem:[#allocation2 + $0xd]]  ;;  %v2884_v24 = vld [vmem:[%s2851_s23 + $0x10] sm:$0xff] }
  0x15   : > { %v233_v3 = vstv %s2538_s16  ;;  %v168_v4 = vmul.f32 %v167_v0, %v2856_v1  ;;  %s2870_s27 = sld [smem:[#allocation2 + $0xa]]  ;;  %v2888_v27 = vld [vmem:[%s2851_s23 + $0x18] sm:$0x3]  ;;  %v2914_v56 = vld [vmem:[%s2851_s23 + $0x20] sm:$0xff]  ;;  %v2917_v57 = vld [vmem:[%s2851_s23 + $0x28] sm:$0x3] }
  0x16   : > { %v234_v5 = vmul.f32 %v233_v3, %v2856_v1  ;;  %v235_v6 = vmul.f32 %v233_v3, %v2859_v2  ;;  %v195_v7 = vstv %s2535_s17  ;;  %s2873_s28 = sld [smem:[#allocation2 + $0xe]] }
  0x17   : > { %170 = vrot.lane.b32.xlu0 %v168_v4, %s2815_s26  ;;  %v196_v10 = vmul.f32 %v195_v7, %v2856_v1  ;;  %v197_v11 = vmul.f32 %v195_v7, %v2859_v2  ;;  %v175_v12 = vstv %s2846_s19  ;;  %s2548_s29 = sld [smem:[#allocation2 + $0x11]] }
  0x18   : > { %v238_v8 = vrot.slane %v234_v5, 2  ;;  %v239_v9 = vrot.slane %v235_v6, 2  ;;  %v246_v13 = vstv %s2539_s20  ;;  %v176_v21 = vmul.f32 %v175_v12, %v2856_v1  ;;  %s2542_s30 = sld [smem:[#allocation2 + $0xb]] }
  0x19   : > { %v200_v15 = vrot.slane %v196_v10, 1  ;;  %v201_v16 = vrot.slane %v197_v11, 1  ;;  %v247_v17 = vmul.f32 %v246_v13, %v2856_v1  ;;  %v248_v18 = vmul.f32 %v246_v13, %v2859_v2  ;;  %s2547_s3 = sld [smem:[#allocation2 + $0x10]] }
  0x1a   : > { %v240_v14 = vsel %vm226_vm0, %v238_v8, %v239_v9  ;;  %v208_v19 = vstv %s2853_s24  ;;  %v290_v28 = vstv %s2864_s25  ;;  %s2553_s5 = sld [smem:[#allocation2 + $0x16]] }
  0x1b   : > { %241 = vrot.lane.b32.xlu2 %v240_v14, %s2815_s26  ;;  %v202_v20 = vsel %vm188_vm1, %v200_v15, %v201_v16  ;;  %v209_v22 = vmul.f32 %v208_v19, %v2856_v1  ;;  %v210_v23 = vmul.f32 %v208_v19, %v2859_v2  ;;  %v251_v25 = vrot.slane %v247_v17, 2  ;;  %s2550_s6 = sld [smem:[#allocation2 + $0x13]] }
  0x1c   : > { %203 = vrot.lane.b32.xlu1 %v202_v20, %s2815_s26  ;;  %v252_v26 = vrot.slane %v248_v18, 2  ;;  %v291_v32 = vmul.f32 %v290_v28, %v2884_v24  ;;  %v292_v33 = vmul.f32 %v290_v28, %v2888_v27  ;;  %v263_v34 = vstv %s2870_s27  ;;  %s2554_s7 = sld [smem:[#allocation2 + $0x17]] }
  0x1d   : > { %v213_v29 = vrot.slane %v209_v22, 1  ;;  %v214_v30 = vrot.slane %v210_v23, 1  ;;  %v303_v36 = vstv %s2873_s28  ;;  %v264_v37 = vmul.f32 %v263_v34, %v2884_v24  ;;  %s2557_s8 = sld [smem:[#allocation2 + $0x1a]] }
  0x1e   : > { %v253_v31 = vsel %vm226_vm0, %v251_v25, %v252_v26  ;;  %v295_v38 = vrot.slane %v291_v32, 1  ;;  %v296_v39 = vrot.slane %v292_v33, 1  ;;  %v304_v40 = vmul.f32 %v303_v36, %v2884_v24  ;;  %s2551_s11 = sld [smem:[#allocation2 + $0x14]] }
  0x1f   : > { %178 = vrot.lane.b32.xlu0 %v176_v21, %s2816_s4  ;;  %v215_v35 = vsel %vm188_vm1, %v213_v29, %v214_v30  ;;  %v305_v41 = vmul.f32 %v303_v36, %v2888_v27  ;;  %v340_v42 = vstv %s2548_s29  ;;  %v271_v43 = vstv %s2542_s30  ;;  %s2556_s12 = sld [smem:[#allocation2 + $0x19]] }
  0x20   : > { %v327_v44 = vstv %s2547_s3  ;;  %v297_v45 = vsel %vm188_vm1, %v295_v38, %v296_v39  ;;  %v341_v46 = vmul.f32 %v340_v42, %v2884_v24  ;;  %v342_v47 = vmul.f32 %v340_v42, %v2888_v27  ;;  %s2562_s13 = sld [smem:[#allocation2 + $0x84]] }
  0x21   : > { %v272_v48 = vmul.f32 %v271_v43, %v2884_v24  ;;  %v308_v49 = vrot.slane %v304_v40, 1  ;;  %v309_v50 = vrot.slane %v305_v41, 1  ;;  %v328_v51 = vmul.f32 %v327_v44, %v2884_v24  ;;  %s2559_s14 = sld [smem:[#allocation2 + $0x81]] }
  0x22   : > { %v329_v52 = vmul.f32 %v327_v44, %v2888_v27  ;;  %v345_v53 = vrot.slane %v341_v46, 2  ;;  %v346_v54 = vrot.slane %v342_v47, 2  ;;  %v384_v58 = vstv %s2553_s5  ;;  %s2563_s15 = sld [smem:[#allocation2 + $0x85]] }
  0x23   : > { %254 = vrot.lane.b32.xlu2 %v253_v31, %s2816_s4  ;;  %v310_v55 = vsel %vm188_vm1, %v308_v49, %v309_v50  ;;  %v332_v59 = vrot.slane %v328_v51, 2  ;;  %v385_v62 = vmul.f32 %v384_v58, %v2914_v56  ;;  %v386_v63 = vmul.f32 %v384_v58, %v2917_v57  ;;  %s2566_s16 = sld [smem:[#allocation2 + $0x88]] }
  0x24   : > { %216 = vrot.lane.b32.xlu1 %v215_v35, %s2816_s4  ;;  %v333_v60 = vrot.slane %v329_v52, 2  ;;  %v347_v61 = vsel %vm226_vm0, %v345_v53, %v346_v54  ;;  %v357_v0 = vstv %s2550_s6  ;;  %v397_v4 = vstv %s2554_s7  ;;  %s2560_s17 = sld [smem:[#allocation2 + $0x82]] }
  0x25   : > { %v358_v5 = vmul.f32 %v357_v0, %v2914_v56  ;;  %v389_v6 = vrot.slane %v385_v62, 1  ;;  %v390_v7 = vrot.slane %v386_v63, 1  ;;  %v398_v8 = vmul.f32 %v397_v4, %v2914_v56  ;;  %s2565_s18 = sld [smem:[#allocation2 + $0x87]] }
  0x26   : > { %v334_v3 = vsel %vm226_vm0, %v332_v59, %v333_v60  ;;  %v399_v9 = vmul.f32 %v397_v4, %v2917_v57  ;;  %v434_v10 = vstv %s2557_s8  ;;  %v365_v11 = vstv %s2551_s11  ;;  %s2571_s19 = sld [smem:[#allocation2 + $0x8d]] }
  0x27   : > { %266 = vrot.lane.b32.xlu0 %v264_v37, %s2815_s26  ;;  %v421_v12 = vstv %s2556_s12  ;;  %v391_v13 = vsel %vm188_vm1, %v389_v6, %v390_v7  ;;  %v435_v14 = vmul.f32 %v434_v10, %v2914_v56  ;;  %v436_v15 = vmul.f32 %v434_v10, %v2917_v57  ;;  %s2568_s20 = sld [smem:[#allocation2 + $0x8a]] }
  0x28   : > { %v366_v16 = vmul.f32 %v365_v11, %v2914_v56  ;;  %v402_v17 = vrot.slane %v398_v8, 1  ;;  %v403_v18 = vrot.slane %v399_v9, 1  ;;  %v422_v19 = vmul.f32 %v421_v12, %v2914_v56  ;;  %s2572_s21 = sld [smem:[#allocation2 + $0x8e]] }
  0x29   : > { %v423_v20 = vmul.f32 %v421_v12, %v2917_v57  ;;  %v439_v21 = vrot.slane %v435_v14, 2  ;;  %v440_v22 = vrot.slane %v436_v15, 2  ;;  %v481_v25 = vstv %s2562_s13  ;;  %s2575_s22 = sld [smem:[#allocation2 + $0x91]] }
  0x2a   : > { %v404_v23 = vsel %vm188_vm1, %v402_v17, %v403_v18  ;;  %v426_v26 = vrot.slane %v422_v19, 2  ;;  %v482_v30 = vmul.f32 %v481_v25, %v2856_v1  ;;  %v483_v31 = vmul.f32 %v481_v25, %v2859_v2  ;;  %s2569_s24 = sld [smem:[#allocation2 + $0x8b]] }
  0x2b   : > { %298 = vrot.lane.b32.xlu2 %v297_v45, %s2815_s26  ;;  %v427_v28 = vrot.slane %v423_v20, 2  ;;  %v441_v29 = vsel %vm226_vm0, %v439_v21, %v440_v22  ;;  %v454_v32 = vstv %s2559_s14  ;;  %v494_v34 = vstv %s2563_s15  ;;  %s2574_s25 = sld [smem:[#allocation2 + $0x90]] }
  0x2c   : > { %274 = vrot.lane.b32.xlu1 %v272_v48, %s2816_s4  ;;  %v455_v35 = vmul.f32 %v454_v32, %v2856_v1  ;;  %v486_v36 = vrot.slane %v482_v30, 1  ;;  %v487_v37 = vrot.slane %v483_v31, 1  ;;  %v495_v38 = vmul.f32 %v494_v34, %v2856_v1  ;;  %s2580_s27 = sld [smem:[#allocation2 + $0x96]] }
  0x2d   : > { %v428_v33 = vsel %vm226_vm0, %v426_v26, %v427_v28  ;;  %v496_v39 = vmul.f32 %v494_v34, %v2859_v2  ;;  %v531_v40 = vstv %s2566_s16  ;;  %v462_v41 = vstv %s2560_s17  ;;  %s2577_s28 = sld [smem:[#allocation2 + $0x93]] }
  0x2e   : > { %v518_v42 = vstv %s2565_s18  ;;  %v488_v43 = vsel %vm188_vm1, %v486_v36, %v487_v37  ;;  %v532_v44 = vmul.f32 %v531_v40, %v2856_v1  ;;  %v533_v45 = vmul.f32 %v531_v40, %v2859_v2  ;;  %s2581_s29 = sld [smem:[#allocation2 + $0x97]] }
  0x2f   : > { %311 = vrot.lane.b32.xlu0 %v310_v55, %s2816_s4  ;;  %v463_v46 = vmul.f32 %v462_v41, %v2856_v1  ;;  %v499_v47 = vrot.slane %v495_v38, 1  ;;  %v500_v48 = vrot.slane %v496_v39, 1  ;;  %v519_v49 = vmul.f32 %v518_v42, %v2856_v1  ;;  %s2584_s30 = sld [smem:[#allocation2 + $0x9a]] }
  0x30   : > { %v520_v50 = vmul.f32 %v518_v42, %v2859_v2  ;;  %v536_v51 = vrot.slane %v532_v44, 2  ;;  %v537_v52 = vrot.slane %v533_v45, 2  ;;  %v575_v54 = vstv %s2571_s19  ;;  %s2578_s3 = sld [smem:[#allocation2 + $0x94]] }
  0x31   : > { %v501_v53 = vsel %vm188_vm1, %v499_v47, %v500_v48  ;;  %v523_v55 = vrot.slane %v519_v49, 2  ;;  %v576_v60 = vmul.f32 %v575_v54, %v2884_v24  ;;  %v548_v62 = vstv %s2568_s20  ;;  %s2583_s5 = sld [smem:[#allocation2 + $0x99]] }
  0x32   : > { %v524_v58 = vrot.slane %v520_v50, 2  ;;  %v538_v59 = vsel %vm226_vm0, %v536_v51, %v537_v52  ;;  %v588_v0 = vstv %s2572_s21  ;;  %v625_v8 = vstv %s2575_s22  ;;  %s2589_s6 = sld [smem:[#allocation2 + $0x104]] }
  0x33   : > { %348 = vrot.lane.b32.xlu2 %v347_v61, %s2816_s4  ;;  %v577_v61 = vmul.f32 %v575_v54, %v2888_v27  ;;  %v580_v4 = vrot.slane %v576_v60, 1  ;;  %v589_v6 = vmul.f32 %v588_v0, %v2884_v24  ;;  %v590_v7 = vmul.f32 %v588_v0, %v2888_v27  ;;  %s2586_s7 = sld [smem:[#allocation2 + $0x101]] }
  0x34   : > { %335 = vrot.lane.b32.xlu1 %v334_v3, %s2815_s26  ;;  %v525_v63 = vsel %vm226_vm0, %v523_v55, %v524_v58  ;;  %v549_v3 = vmul.f32 %v548_v62, %v2884_v24  ;;  %v556_v9 = vstv %s2569_s24  ;;  %v612_v10 = vstv %s2574_s25  ;;  %s2590_s8 = sld [smem:[#allocation2 + $0x105]] }
  0x35   : > { %v626_v12 = vmul.f32 %v625_v8, %v2884_v24  ;;  %v557_v14 = vmul.f32 %v556_v9, %v2884_v24  ;;  %v593_v15 = vrot.slane %v589_v6, 1  ;;  %v613_v17 = vmul.f32 %v612_v10, %v2884_v24  ;;  %s2593_s11 = sld [smem:[#allocation2 + $0x108]] }
  0x36   : > { %v614_v18 = vmul.f32 %v612_v10, %v2888_v27  ;;  %v669_v22 = vstv %s2580_s27  ;;  %v642_v30 = vstv %s2577_s28  ;;  %v682_v32 = vstv %s2581_s29  ;;  %s2587_s12 = sld [smem:[#allocation2 + $0x102]] }
  0x37   : > { %360 = vrot.lane.b32.xlu0 %v358_v5, %s2815_s26  ;;  %v581_v5 = vrot.slane %v577_v61, 1  ;;  %v630_v19 = vrot.slane %v626_v12, 2  ;;  %v670_v28 = vmul.f32 %v669_v22, %v2914_v56  ;;  %v683_v36 = vmul.f32 %v682_v32, %v2914_v56  ;;  %s2592_s13 = sld [smem:[#allocation2 + $0x107]] }
  0x38   : > { %v618_v25 = vrot.slane %v614_v18, 2  ;;  %v684_v37 = vmul.f32 %v682_v32, %v2917_v57  ;;  %v719_v38 = vstv %s2584_s30  ;;  %v650_v39 = vstv %s2578_s3  ;;  %s2598_s14 = sld [smem:[#allocation2 + $0x10d]] }
  0x39   : > { %v582_v11 = vsel %vm188_vm1, %v580_v4, %v581_v5  ;;  %v674_v34 = vrot.slane %v670_v28, 1  ;;  %v706_v40 = vstv %s2583_s5  ;;  %v720_v42 = vmul.f32 %v719_v38, %v2914_v56  ;;  %s2595_s15 = sld [smem:[#allocation2 + $0x10a]] }
  0x3a   : > { %v651_v44 = vmul.f32 %v650_v39, %v2914_v56  ;;  %v687_v45 = vrot.slane %v683_v36, 1  ;;  %v707_v47 = vmul.f32 %v706_v40, %v2914_v56  ;;  %v708_v48 = vmul.f32 %v706_v40, %v2917_v57  ;;  %s2599_s16 = sld [smem:[#allocation2 + $0x10e]] }
  0x3b   : > { %392 = vrot.lane.b32.xlu2 %v391_v13, %s2815_s26  ;;  %v627_v13 = vmul.f32 %v625_v8, %v2888_v27  ;;  %v724_v49 = vrot.slane %v720_v42, 2  ;;  %v766_v52 = vstv %s2589_s6  ;;  %v739_v60 = vstv %s2586_s7  ;;  %s3019_s17 = sld [smem:[#allocation2 + $0x10b]] }
  0x3c   : > { %368 = vrot.lane.b32.xlu1 %v366_v16, %s2816_s4  ;;  %v594_v16 = vrot.slane %v590_v7, 1  ;;  %v712_v54 = vrot.slane %v708_v48, 2  ;;  %v767_v58 = vmul.f32 %v766_v52, %v2856_v1  ;;  %v779_v62 = vstv %s2590_s8  ;;  %s2602_s18 = sld [smem:[#allocation2 + $0x111]] }
  0x3d   : > { %v631_v20 = vrot.slane %v627_v13, 2  ;;  %v780_v5 = vmul.f32 %v779_v62, %v2856_v1  ;;  %v781_v6 = vmul.f32 %v779_v62, %v2859_v2  ;;  %v816_v7 = vstv %s2593_s11  ;;  %s3025_s19 = sld [smem:[#allocation2 + $0x3]] }
  0x3e   : > { %v595_v21 = vsel %vm188_vm1, %v593_v15, %v594_v16  ;;  %v771_v0 = vrot.slane %v767_v58, 1  ;;  %v747_v8 = vstv %s2587_s12  ;;  %v803_v9 = vstv %s2592_s13  ;;  %s3027_s20 = sld [smem:[#allocation2 + $0x110]] }
  0x3f   : > { %405 = vrot.lane.b32.xlu0 %v404_v23, %s2816_s4  ;;  %v617_v23 = vrot.slane %v613_v17, 2  ;;  %v632_v26 = vsel %vm226_vm0, %v630_v19, %v631_v20  ;;  %v818_v12 = vmul.f32 %v816_v7, %v2859_v2  ;;  %v748_v13 = vmul.f32 %v747_v8, %v2856_v1  ;;  %s3033_s21 = sld [smem:[#allocation2]] }
  0x40   : > { %v785_v15 = vrot.slane %v781_v6, 1  ;;  %v804_v16 = vmul.f32 %v803_v9, %v2856_v1  ;;  %v805_v17 = vmul.f32 %v803_v9, %v2859_v2  ;;  %v873_v32 = vstv %s2599_s16  ;;  %s3038_s22 = sld [smem:[#allocation2 + $0x6]] }
  0x41   : > { %v619_v31 = vsel %vm226_vm0, %v617_v23, %v618_v25  ;;  %v822_v19 = vrot.slane %v818_v12, 2  ;;  %s3045_s24 = sld [smem:[#allocation2 + $0x116]]  ;;  %v841_v40 = vstv %s3019_s17 }
  0x42   : > { %v808_v23 = vrot.slane %v804_v16, 2  ;;  %v809_v25 = vrot.slane %v805_v17, 2  ;;  %v910_v39 = vstv %s2602_s18  ;;  %s3056_s25 = sld [smem:[#allocation2 + $0x113]] }
  0x43   : > { %442 = vrot.lane.b32.xlu2 %v441_v29, %s2816_s4  ;;  %v671_v29 = vmul.f32 %v669_v22, %v2917_v57  ;;  %v860_v22 = vstv %s2598_s14  ;;  %s3062_s27 = sld [smem:[#allocation2 + $0x117]] }
  0x44   : > { %429 = vrot.lane.b32.xlu1 %v428_v33, %s2815_s26  ;;  %v643_v33 = vmul.f32 %v642_v30, %v2914_v56  ;;  %v861_v28 = vmul.f32 %v860_v22, %v2884_v24  ;;  %v833_v30 = vstv %s2595_s15  ;;  %v897_v42 = vstv %s3027_s20  ;;  %s3066_s28 = sld [smem:[#allocation2 + $0x11a]] }
  0x45   : > { %s3074_s29 = sld [smem:[#allocation2 + $0x114]] }
  0x46   : > { %s3078_s30 = sld [smem:[#allocation2 + $0x119]] }
  0x47   : > { %457 = vrot.lane.b32.xlu0 %v455_v35, %s2815_s26  ;;  %v675_v35 = vrot.slane %v671_v29, 1  ;;  %v862_v29 = vmul.f32 %v860_v22, %v2888_v27  ;;  %s3085_s3 = sld [smem:[#allocation2 + $0xc]] }
  0x48   : > { %s3089_s5 = sld [smem:[#allocation2 + $0x9]] }
  0x49   : > { %v676_v41 = vsel %vm188_vm1, %v674_v34, %v675_v35  ;;  %v865_v34 = vrot.slane %v861_v28, 1  ;;  %v866_v35 = vrot.slane %v862_v29, 1  ;;  %s3101_s6 = sld [smem:[#allocation2 + $0x184]] }
  0x4a   : > { %v1004_v28 = vstv %s3066_s28  ;;  %s3106_s7 = sld [smem:[#allocation2 + $0xf]] }
  0x4b   : > { %489 = vrot.lane.b32.xlu2 %v488_v43, %s2815_s26  ;;  %v721_v43 = vmul.f32 %v719_v38, %v2917_v57  ;;  %v875_v38 = vmul.f32 %v873_v32, %v2888_v27  ;;  %s3113_s8 = sld [smem:[#allocation2 + $0x181]] }
  0x4c   : > { %465 = vrot.lane.b32.xlu1 %v463_v46, %s2816_s4  ;;  %v688_v46 = vrot.slane %v684_v37, 1  ;;  %v874_v37 = vmul.f32 %v873_v32, %v2884_v24  ;;  %s3118_s11 = sld [smem:[#allocation2 + $0x185]] }
  0x4d   : > { %v725_v50 = vrot.slane %v721_v43, 2  ;;  %v867_v43 = vsel %vm188_vm1, %v865_v34, %v866_v35  ;;  %s3130_s12 = sld [smem:[#allocation2 + $0x188]] }
  0x4e   : > { %v689_v51 = vsel %vm188_vm1, %v687_v45, %v688_v46  ;;  %v912_v45 = vmul.f32 %v910_v39, %v2888_v27  ;;  %v163_v46 = vstv %s3033_s21  ;;  %v878_v48 = vrot.slane %v874_v37, 1  ;;  %s3132_s13 = sld [smem:[#allocation2 + $0x182]] }
  0x4f   : > { %502 = vrot.lane.b32.xlu0 %v501_v53, %s2816_s4  ;;  %v711_v53 = vrot.slane %v707_v47, 2  ;;  %v726_v55 = vsel %vm226_vm0, %v724_v49, %v725_v50  ;;  %v842_v47 = vmul.f32 %v841_v40, %v2884_v24  ;;  %v879_v49 = vrot.slane %v875_v38, 1  ;;  %s3137_s14 = sld [smem:[#allocation2 + $0x187]] }
  0x50   : > { %v916_v58 = vrot.slane %v912_v45, 2  ;;  %v1005_v37 = vmul.f32 %v1004_v28, %v2914_v56  ;;  %v1006_v38 = vmul.f32 %v1004_v28, %v2917_v57  ;;  %s3146_s15 = sld [smem:[#allocation2 + $0x15]] }
  0x51   : > { %v713_v61 = vsel %vm226_vm0, %v711_v53, %v712_v54  ;;  %v898_v53 = vmul.f32 %v897_v42, %v2884_v24  ;;  %v899_v54 = vmul.f32 %v897_v42, %v2888_v27  ;;  %v880_v62 = vsel %vm188_vm1, %v878_v48, %v879_v49  ;;  %s3150_s16 = sld [smem:[#allocation2 + $0x18d]] }
  0x52   : > { %s3154_s17 = sld [smem:[#allocation2 + $0x12]] }
  0x53   : > { %539 = vrot.lane.b32.xlu2 %v538_v59, %s2816_s4  ;;  %v768_v59 = vmul.f32 %v766_v52, %v2859_v2  ;;  %v903_v6 = vrot.slane %v899_v54, 2  ;;  %s3164_s18 = sld [smem:[#allocation2 + $0x18a]] }
  0x54   : > { %526 = vrot.lane.b32.xlu1 %v525_v63, %s2815_s26  ;;  %v740_v63 = vmul.f32 %v739_v60, %v2856_v1  ;;  %v164_v60 = vmul.f32 %v163_v46, %v2856_v1  ;;  %s3174_s20 = sld [smem:[#allocation2 + $0x18e]] }
  0x55   : > { %s3180_s21 = sld [smem:[#allocation2 + $0x80]] }
  0x56   : > { %s3210_s28 = sld [smem:[#allocation2 + $0x86]] }
  0x57   : > { %551 = vrot.lane.b32.xlu0 %v549_v3, %s2815_s26  ;;  %v772_v3 = vrot.slane %v768_v59, 1  ;;  %v221_v59 = vstv %s3038_s22  ;;  %s3184_s22 = sld [smem:[#allocation2 + $0x83]] }
  0x58   : > { %v222_v8 = vmul.f32 %v221_v59, %v2856_v1  ;;  %v223_v9 = vmul.f32 %v221_v59, %v2859_v2 }
  0x59   : > { %v773_v10 = vsel %vm188_vm1, %v771_v0, %v772_v3 }
  0x5a   : > { %v228_v22 = vrot.slane %v223_v9, 2 }
  0x5b   : > { %583 = vrot.lane.b32.xlu2 %v582_v11, %s2815_s26  ;;  %v817_v11 = vmul.f32 %v816_v7, %v2856_v1 }
  0x5c   : > { %559 = vrot.lane.b32.xlu1 %v557_v14, %s2816_s4  ;;  %v784_v14 = vrot.slane %v780_v5, 1  ;;  %v902_v5 = vrot.slane %v898_v53, 2  ;;  %v1010_v53 = vrot.slane %v1006_v38, 2  ;;  %v1088_v38 = vstv %s3137_s14  ;;  %s3317_s14 = sld [smem:[#allocation2 + $0x201]] }
  0x5d   : > { %v821_v18 = vrot.slane %v817_v11, 2 }
  0x5e   : > { %v904_v17 = vsel %vm226_vm0, %v902_v5, %v903_v6 }
  0x5f   : > { %596 = vrot.lane.b32.xlu0 %v595_v21, %s2816_s4  ;;  %v786_v21 = vsel %vm188_vm1, %v784_v14, %v785_v15  ;;  %v927_v14 = vstv %s3056_s25  ;;  %s3195_s25 = sld [smem:[#allocation2 + $0x18b]] }
  0x63   : > { %633 = vrot.lane.b32.xlu2 %v632_v26, %s2816_s4  ;;  %v823_v26 = vsel %vm226_vm0, %v821_v18, %v822_v19  ;;  %v967_v18 = vstv %s3062_s27  ;;  %s3201_s27 = sld [smem:[#allocation2 + $0x190]] }
  0x64   : > { %620 = vrot.lane.b32.xlu1 %v619_v31, %s2815_s26  ;;  %v810_v31 = vsel %vm226_vm0, %v808_v23, %v809_v25  ;;  %v928_v23 = vmul.f32 %v927_v14, %v2914_v56  ;;  %v968_v32 = vmul.f32 %v967_v18, %v2914_v56 }
  0x66   : > { %v972_v45 = vrot.slane %v968_v32, 1 }
  0x67   : > { %645 = vrot.lane.b32.xlu0 %v643_v33, %s2815_s26  ;;  %v834_v33 = vmul.f32 %v833_v30, %v2884_v24 }
  0x6b   : > { %677 = vrot.lane.b32.xlu2 %v676_v41, %s2815_s26  ;;  %v183_v41 = vstv %s3025_s19  ;;  %s3170_s19 = sld [smem:[#allocation2 + $0x18]] }
  0x6c   : > { %653 = vrot.lane.b32.xlu1 %v651_v44, %s2816_s4  ;;  %v911_v44 = vmul.f32 %v910_v39, %v2884_v24  ;;  %v185_v52 = vmul.f32 %v183_v41, %v2859_v2  ;;  %v991_v39 = vstv %s3078_s30  ;;  %s3241_s30 = sld [smem:[#allocation2 + $0x193]] }
  0x6d   : > { %v992_v49 = vmul.f32 %v991_v39, %v2914_v56 }
  0x6e   : > { %v190_v3 = vrot.slane %v185_v52, 1  ;;  %v1009_v52 = vrot.slane %v1005_v37, 2 }
  0x6f   : > { %690 = vrot.lane.b32.xlu0 %v689_v51, %s2816_s4  ;;  %v184_v51 = vmul.f32 %v183_v41, %v2856_v1 }
  0x71   : > { %v189_v0 = vrot.slane %v184_v51, 1 }
  0x73   : > { %727 = vrot.lane.b32.xlu2 %v726_v55, %s2816_s4  ;;  %v915_v55 = vrot.slane %v911_v44, 2  ;;  %v191_v15 = vsel %vm188_vm1, %v189_v0, %v190_v3  ;;  %v279_v44 = vstv %s3085_s3  ;;  %v996_v0 = vrot.slane %v992_v49, 2  ;;  %s3247_s3 = sld [smem:[#allocation2 + $0x197]] }
  0x74   : > { %714 = vrot.lane.b32.xlu1 %v713_v61, %s2815_s26  ;;  %v280_v54 = vmul.f32 %v279_v44, %v2884_v24  ;;  %v1089_v49 = vmul.f32 %v1088_v38, %v2856_v1 }
  0x75   : > { %v3007_v4 = vpop.permute.xlu2 %241 }
  0x77   : > { %742 = vrot.lane.b32.xlu0 %v740_v63, %s2815_s26  ;;  %v954_v63 = vstv %s3045_s24  ;;  %s3187_s24 = sld [smem:[#allocation2 + $0x191]] }
  0x78   : > { %v955_v11 = vmul.f32 %v954_v63, %v2914_v56  ;;  %v956_v12 = vmul.f32 %v954_v63, %v2917_v57  ;;  %v1051_v63 = vstv %s3101_s6  ;;  %s3255_s6 = sld [smem:[#allocation2 + $0x19a]] }
  0x7a   : > { %v959_v25 = vrot.slane %v955_v11, 1  ;;  %v1053_v11 = vmul.f32 %v1051_v63, %v2859_v2 }
  0x7b   : > { %774 = vrot.lane.b32.xlu2 %v773_v10, %s2815_s26  ;;  %v917_v10 = vsel %vm226_vm0, %v915_v55, %v916_v58  ;;  %v281_v55 = vmul.f32 %v279_v44, %v2888_v27 }
  0x7c   : > { %750 = vrot.lane.b32.xlu1 %v748_v13, %s2816_s4 }
  0x7d   : > { %v3022_v20 = vpop.permute.xlu2 %254  ;;  %v285_v9 = vrot.slane %v281_v55, 1 }
  0x7f   : > { %787 = vrot.lane.b32.xlu0 %v786_v21, %s2816_s4  ;;  %v227_v21 = vrot.slane %v222_v8, 2  ;;  %v284_v8 = vrot.slane %v280_v54, 1 }
  0x81   : > { %v229_v40 = vsel %vm226_vm0, %v227_v21, %v228_v22 }
  0x83   : > { %824 = vrot.lane.b32.xlu2 %v823_v26, %s2816_s4  ;;  %v960_v26 = vrot.slane %v956_v12, 1 }
  0x84   : > { %811 = vrot.lane.b32.xlu1 %v810_v31, %s2815_s26  ;;  %v935_v31 = vstv %s3074_s29  ;;  %s3225_s29 = sld [smem:[#allocation2 + $0x196]] }
  0x85   : > { %v3041_v36 = vpop.permute.xlu2 %298  ;;  %v961_v41 = vsel %vm188_vm1, %v959_v25, %v960_v26  ;;  %v936_v42 = vmul.f32 %v935_v31, %v2914_v56  ;;  %v1101_v31 = vstv %s3130_s12  ;;  %s3282_s12 = sld [smem:[#allocation2 + $0x8f]] }
  0x87   : > { %836 = vrot.lane.b32.xlu0 %v834_v33, %s2815_s26  ;;  %v969_v33 = vmul.f32 %v967_v18, %v2917_v57 }
  0x89   : > { %v171_v50 = vpop.permute.xlu0 %170  ;;  %v973_v46 = vrot.slane %v969_v33, 1 }
  0x8a   : > { %v173_v13 = vadd.f32 %v171_v50, %v164_v60  ;;  %v993_v50 = vmul.f32 %v991_v39, %v2917_v57 }
  0x8b   : > { %868 = vrot.lane.b32.xlu2 %v867_v43, %s2815_s26 }
  0x8c   : > { %844 = vrot.lane.b32.xlu1 %v842_v47, %s2816_s4  ;;  %v259_v47 = vstv %s3089_s5  ;;  %v997_v3 = vrot.slane %v993_v50, 2  ;;  %v1090_v50 = vmul.f32 %v1088_v38, %v2859_v2  ;;  %s3251_s5 = sld [smem:[#allocation2 + $0x89]] }
  0x8d   : > { %v3070_v61 = vpop.permute.xlu2 %348  ;;  %v260_v59 = vmul.f32 %v259_v47, %v2884_v24 }
  0x8e   : > { %v204_v7 = vpop.permute.xlu1 %203 }
  0x8f   : > { %881 = vrot.lane.b32.xlu0 %v880_v62, %s2816_s4  ;;  %v974_v62 = vsel %vm188_vm1, %v972_v45, %v973_v46 }
  0x91   : > { %v179_v16 = vpop.permute.xlu0 %178 }
  0x92   : > { %v181_v19 = vadd.f32 %v179_v16, %v173_v13  ;;  %v1024_v13 = vstv %s3113_s8  ;;  %s3265_s8 = sld [smem:[#allocation2 + $0x8c]] }
  0x93   : > { %918 = vrot.lane.b32.xlu2 %v917_v10, %s2816_s4  ;;  %v1052_v10 = vmul.f32 %v1051_v63, %v2856_v1  ;;  %v1025_v21 = vmul.f32 %v1024_v13, %v2856_v1  ;;  %v1094_v63 = vrot.slane %v1090_v50, 2  ;;  %v1158_v13 = vstv %s3174_s20  ;;  %s3348_s20 = sld [smem:[#allocation2 + $0x92]] }
  0x94   : > { %v193_v29 = vadd.f32 %v191_v15, %v181_v19  ;;  %905 = vrot.lane.b32.xlu1 %v904_v17, %s2815_s26  ;;  %v1064_v17 = vstv %s3118_s11  ;;  %v286_v19 = vsel %vm188_vm1, %v284_v8, %v285_v9  ;;  %v410_v9 = vstv %s3170_s19  ;;  %s3269_s11 = sld [smem:[#allocation2 + $0x199]] }
  0x95   : > { %v3096_v30 = vpop.permute.xlu2 %392  ;;  %v1056_v22 = vrot.slane %v1052_v10, 1  ;;  %v1065_v28 = vmul.f32 %v1064_v17, %v2856_v1  ;;  %s3344_s19 = sld [smem:[#allocation2 + $0x95]] }
  0x96   : > { %v217_v34 = vpop.permute.xlu1 %216  ;;  %v206_v35 = vadd.f32 %v204_v7, %v193_v29  ;;  %v316_v7 = vstv %s3106_s7  ;;  %v1066_v29 = vmul.f32 %v1064_v17, %v2859_v2  ;;  %s3263_s7 = sld [smem:[#allocation2 + $0x194]] }
  0x97   : > { %930 = vrot.lane.b32.xlu0 %v928_v23, %s2815_s26  ;;  %v317_v15 = vmul.f32 %v316_v7, %v2884_v24  ;;  %v318_v16 = vmul.f32 %v316_v7, %v2888_v27  ;;  %v1057_v23 = vrot.slane %v1053_v11, 1  ;;  %v1069_v44 = vrot.slane %v1065_v28, 1 }
  0x98   : > { %v219_v43 = vadd.f32 %v217_v34, %v206_v35  ;;  %v1032_v34 = vstv %s3132_s13  ;;  %v1070_v45 = vrot.slane %v1066_v29, 1  ;;  %v1118_v7 = vstv %s3164_s18  ;;  %s3286_s13 = sld [smem:[#allocation2 + $0x204]] }
  0x99   : > { %v267_v48 = vpop.permute.xlu0 %266  ;;  %v321_v32 = vrot.slane %v317_v15, 2  ;;  %v322_v33 = vrot.slane %v318_v16, 2  ;;  %v1058_v39 = vsel %vm188_vm1, %v1056_v22, %v1057_v23  ;;  %v1119_v15 = vmul.f32 %v1118_v7, %v2884_v24  ;;  %s3340_s18 = sld [smem:[#allocation2 + $0x207]] }
  0x9a   : > { %v231_v51 = vadd.f32 %v229_v40, %v219_v43  ;;  %v1102_v40 = vmul.f32 %v1101_v31, %v2856_v1  ;;  %v1033_v43 = vmul.f32 %v1032_v34, %v2856_v1  ;;  %v412_v22 = vmul.f32 %v410_v9, %v2917_v57  ;;  %v3228_v34 = vld [vmem:[%s2851_s23] sm:$0xff] }
  0x9b   : > { %962 = vrot.lane.b32.xlu2 %v961_v41, %s2815_s26  ;;  %v1103_v41 = vmul.f32 %v1101_v31, %v2859_v2  ;;  %v323_v46 = vsel %vm226_vm0, %v321_v32, %v322_v33  ;;  %v1159_v23 = vmul.f32 %v1158_v13, %v2884_v24  ;;  %v1195_v28 = vstv %s3187_s24  ;;  %s3380_s24 = sld [smem:[#allocation2 + $0x281]] }
  0x9c   : > { %v244_v58 = vadd.f32 %v3007_v4, %v231_v51  ;;  %938 = vrot.lane.b32.xlu1 %v936_v42, %s2816_s4  ;;  %v1011_v4 = vsel %vm226_vm0, %v1009_v52, %v1010_v53  ;;  %v353_v52 = vstv %s3154_s17  ;;  %v1106_v53 = vrot.slane %v1102_v40, 2  ;;  %s3334_s17 = sld [smem:[#allocation2 + $0x202]] }
  0x9d   : > { %v3126_v60 = vpop.permute.xlu2 %442  ;;  %v1107_v54 = vrot.slane %v1103_v41, 2  ;;  %v1126_v33 = vstv %s3195_s25  ;;  %s3383_s25 = sld [smem:[#allocation2 + $0x103]] }
  0x9e   : > { %v257_v5 = vadd.f32 %v3022_v20, %v244_v58  ;;  %v275_v6 = vpop.permute.xlu1 %274  ;;  %v998_v20 = vsel %vm226_vm0, %v996_v0, %v997_v3 }
  0x9f   : > { %975 = vrot.lane.b32.xlu0 %v974_v62, %s2816_s4  ;;  %v1093_v62 = vrot.slane %v1089_v49, 2  ;;  %v1108_v8 = vsel %vm226_vm0, %v1106_v53, %v1107_v54 }
  0xa0   : > { %v261_v12 = vadd.f32 %v260_v59, %v257_v5  ;;  %v1071_v59 = vsel %vm188_vm1, %v1069_v44, %v1070_v45  ;;  %v1197_v44 = vmul.f32 %v1195_v28, %v2888_v27  ;;  %v1182_v45 = vstv %s3201_s27  ;;  %s3389_s27 = sld [smem:[#allocation2 + $0x100]] }
  0xa1   : > { %v312_v14 = vpop.permute.xlu0 %311  ;;  %v1183_v53 = vmul.f32 %v1182_v45, %v2884_v24  ;;  %v1184_v54 = vmul.f32 %v1182_v45, %v2888_v27  ;;  %v1276_v45 = vstv %s3269_s11  ;;  %s3435_s11 = sld [smem:[#allocation2 + $0x382]] }
  0xa2   : > { %v269_v18 = vadd.f32 %v267_v48, %v261_v12  ;;  %v373_v48 = vstv %s3146_s15  ;;  %s3322_s15 = sld [smem:[#allocation2 + $0x205]] }
  0xa3   : > { %1012 = vrot.lane.b32.xlu2 %v1011_v4, %s2816_s4  ;;  %v374_v2 = vmul.f32 %v373_v48, %v2914_v56  ;;  %v375_v58 = vmul.f32 %v373_v48, %v2917_v57  ;;  %v1163_v48 = vrot.slane %v1159_v23, 1  ;;  %v1188_v7 = vrot.slane %v1184_v54, 2 }
  0xa4   : > { %v277_v25 = vadd.f32 %v275_v6, %v269_v18  ;;  %999 = vrot.lane.b32.xlu1 %v998_v20, %s2815_s26  ;;  %v354_v6 = vmul.f32 %v353_v52, %v2914_v56  ;;  %v1095_v20 = vsel %vm226_vm0, %v1093_v62, %v1094_v63  ;;  %v1201_v62 = vrot.slane %v1197_v44, 2 }
  0xa5   : > { %v3157_v26 = vpop.permute.xlu2 %489  ;;  %v378_v11 = vrot.slane %v374_v2, 1  ;;  %v379_v12 = vrot.slane %v375_v58, 1 }
  0xa6   : > { %v288_v35 = vadd.f32 %v286_v19, %v277_v25  ;;  %v336_v37 = vpop.permute.xlu1 %335  ;;  %v450_v19 = vstv %s3180_s21  ;;  %v1160_v25 = vmul.f32 %v1158_v13, %v2888_v27  ;;  %v1212_v13 = vstv %s3241_s30  ;;  %s3362_s21 = sld [smem:[#allocation2 + $0x98]] }
  0xa7   : > { %1027 = vrot.lane.b32.xlu0 %v1025_v21, %s2815_s26  ;;  %v470_v21 = vstv %s3184_s22  ;;  %v380_v31 = vsel %vm188_vm1, %v378_v11, %v379_v12  ;;  %v1213_v23 = vmul.f32 %v1212_v13, %v2914_v56  ;;  %s3373_s22 = sld [smem:[#allocation2 + $0x20a]] }
  0xa8   : > { %v301_v42 = vadd.f32 %v3041_v36, %v288_v35  ;;  %v1145_v36 = vstv %s3150_s16  ;;  %v451_v35 = vmul.f32 %v3228_v34, %v450_v19  ;;  %v471_v38 = vmul.f32 %v3228_v34, %v470_v21  ;;  %s3332_s16 = sld [smem:[#allocation2 + $0x208]] }
  0xa9   : > { %v361_v47 = vpop.permute.xlu0 %360  ;;  %v1146_v0 = vmul.f32 %v1145_v36, %v2884_v24  ;;  %v1147_v3 = vmul.f32 %v1145_v36, %v2888_v27  ;;  %v1164_v49 = vrot.slane %v1160_v25, 1  ;;  %s3399_s30 = sld [smem:[#allocation2 + $0x282]] }
  0xaa   : > { %v314_v51 = vadd.f32 %v312_v14, %v301_v42  ;;  %v475_v52 = vrot.slane %v471_v38, 1 }
  0xab   : > { %1059 = vrot.lane.b32.xlu2 %v1058_v39, %s2815_s26  ;;  %v1150_v16 = vrot.slane %v1146_v0, 1  ;;  %v1151_v17 = vrot.slane %v1147_v3, 1  ;;  %v3234_v39 = vld [vmem:[%s2851_s23 + $0x8] sm:$0x3] }
  0xac   : > { %v325_v55 = vadd.f32 %v323_v46, %v314_v51  ;;  %1035 = vrot.lane.b32.xlu1 %v1033_v43, %s2816_s4  ;;  %v472_v40 = vmul.f32 %v3234_v39, %v470_v21  ;;  %v1196_v43 = vmul.f32 %v1195_v28, %v2884_v24  ;;  %v1127_v51 = vmul.f32 %v1126_v33, %v2884_v24 }
  0xad   : > { %v3190_v1 = vpop.permute.xlu2 %539  ;;  %v1165_v24 = vsel %vm188_vm1, %v1163_v48, %v1164_v49  ;;  %v1252_v21 = vstv %s3247_s3  ;;  %v3310_v49 = vld [vmem:[%s2851_s23 + $0x10] sm:$0xff]  ;;  %s3407_s3 = sld [smem:[#allocation2 + $0x302]] }
  0xae   : > { %v338_v5 = vadd.f32 %v336_v37, %v325_v55  ;;  %v369_v4 = vpop.permute.xlu1 %368  ;;  %v1152_v37 = vsel %vm188_vm1, %v1150_v16, %v1151_v17  ;;  %v507_v55 = vstv %s3210_s28  ;;  %v476_v58 = vrot.slane %v472_v40, 1  ;;  %s3393_s28 = sld [smem:[#allocation2 + $0x20b]] }
  0xaf   : > { %1072 = vrot.lane.b32.xlu0 %v1071_v59, %s2816_s4  ;;  %v1200_v59 = vrot.slane %v1196_v43, 2  ;;  %v1254_v38 = vmul.f32 %v1252_v21, %v2917_v57  ;;  %v564_v40 = vstv %s3265_s8  ;;  %v3298_v43 = vld [vmem:[%s2851_s23 + $0x20] sm:$0xff]  ;;  %s3431_s8 = sld [smem:[#allocation2 + $0x109]] }
  0xb0   : > { %v351_v10 = vadd.f32 %v3070_v61, %v338_v5  ;;  %v411_v61 = vmul.f32 %v410_v9, %v2914_v56  ;;  %v509_v5 = vmul.f32 %v3234_v39, %v507_v55  ;;  %v477_v9 = vsel %vm188_vm1, %v475_v52, %v476_v58 }
  0xb1   : > { %v406_v14 = vpop.permute.xlu0 %405  ;;  %v1202_v11 = vsel %vm226_vm0, %v1200_v59, %v1201_v62  ;;  %v1277_v58 = vmul.f32 %v3298_v43, %v1276_v45 }
  0xb2   : > { %v355_v18 = vadd.f32 %v354_v6, %v351_v10  ;;  %v415_v46 = vrot.slane %v411_v61, 2  ;;  %v1239_v6 = vstv %s3225_s29  ;;  %v513_v17 = vrot.slane %v509_v5, 2  ;;  %s3395_s29 = sld [smem:[#allocation2 + $0x106]] }
  0xb3   : > { %1109 = vrot.lane.b32.xlu2 %v1108_v8, %s2816_s4 }
  0xb4   : > { %v363_v29 = vadd.f32 %v361_v47, %v355_v18  ;;  %1096 = vrot.lane.b32.xlu1 %v1095_v20, %s2815_s26  ;;  %v416_v47 = vrot.slane %v412_v22, 2  ;;  %v1241_v20 = vmul.f32 %v1239_v6, %v2917_v57 }
  0xb5   : > { %v3222_v32 = vpop.permute.xlu2 %583 }
  0xb6   : > { %v371_v41 = vadd.f32 %v369_v4, %v363_v29  ;;  %v430_v42 = vpop.permute.xlu1 %429  ;;  %v417_v63 = vsel %vm226_vm0, %v415_v46, %v416_v47  ;;  %v1187_v4 = vrot.slane %v1183_v53, 2  ;;  %v1245_v29 = vrot.slane %v1241_v20, 1 }
  0xb7   : > { %1121 = vrot.lane.b32.xlu0 %v1119_v15, %s2815_s26  ;;  %v1258_v53 = vrot.slane %v1254_v38, 1  ;;  %v1386_v38 = vstv %s3332_s16  ;;  %s3464_s16 = sld [smem:[#allocation2 + $0x384]] }
  0xb8   : > { %v382_v50 = vadd.f32 %v380_v31, %v371_v41  ;;  %v1189_v19 = vsel %vm226_vm0, %v1187_v4, %v1188_v7  ;;  %v1289_v31 = vstv %s3255_s6  ;;  %s3419_s6 = sld [smem:[#allocation2 + $0x301]] }
  0xb9   : > { %v458_v36 = vpop.permute.xlu0 %457  ;;  %v1290_v44 = vmul.f32 %v3298_v43, %v1289_v31 }
  0xba   : > { %v395_v2 = vadd.f32 %v3096_v30, %v382_v50  ;;  %v460_v0 = vadd.f32 %v458_v36, %v451_v35  ;;  %v508_v30 = vmul.f32 %v3228_v34, %v507_v55  ;;  %v1220_v35 = vstv %s3263_s7  ;;  %s3425_s7 = sld [smem:[#allocation2 + $0x381]] }
  0xbb   : > { %1153 = vrot.lane.b32.xlu2 %v1152_v37, %s2815_s26  ;;  %v1253_v37 = vmul.f32 %v1252_v21, %v2914_v56  ;;  %v1221_v48 = vmul.f32 %v3298_v43, %v1220_v35  ;;  %v565_v50 = vmul.f32 %v3310_v49, %v564_v40  ;;  %v1294_v62 = vrot.slane %v1290_v44, 2 }
  0xbc   : > { %v408_v27 = vadd.f32 %v406_v14, %v395_v2  ;;  %1129 = vrot.lane.b32.xlu1 %v1127_v51, %s2816_s4  ;;  %v1240_v14 = vmul.f32 %v1239_v6, %v2914_v56  ;;  %v512_v16 = vrot.slane %v508_v30, 2  ;;  %v3306_v56 = vld [vmem:[%s2851_s23 + $0x28] sm:$0x3]  ;;  %v3314_v51 = vld [vmem:[%s2851_s23 + $0x18] sm:$0x3] }
  0xbd   : > { %v3258_v3 = vpop.permute.xlu2 %633  ;;  %v1291_v57 = vmul.f32 %v3306_v56, %v1289_v31  ;;  %v566_v36 = vmul.f32 %v3314_v51, %v564_v40  ;;  %v1257_v52 = vrot.slane %v1253_v37, 1  ;;  %v1278_v59 = vmul.f32 %v3306_v56, %v1276_v45 }
  0xbe   : > { %v419_v8 = vadd.f32 %v417_v63, %v408_v27  ;;  %v466_v10 = vpop.permute.xlu1 %465  ;;  %v1244_v28 = vrot.slane %v1240_v14, 1  ;;  %v514_v33 = vsel %vm226_vm0, %v512_v16, %v513_v17  ;;  %v1336_v27 = vstv %s3286_s13  ;;  %s3443_s13 = sld [smem:[#allocation2 + $0x305]] }
  0xbf   : > { %v468_v12 = vadd.f32 %v466_v10, %v460_v0  ;;  %1166 = vrot.lane.b32.xlu0 %v1165_v24, %s2816_s4  ;;  %v1295_v0 = vrot.slane %v1291_v57, 2  ;;  %v601_v24 = vstv %s3282_s12  ;;  %v569_v5 = vrot.slane %v565_v50, 1  ;;  %s3439_s12 = sld [smem:[#allocation2 + $0x285]] }
  0xc0   : > { %v432_v15 = vadd.f32 %v430_v42, %v419_v8  ;;  %v544_v42 = vstv %s3251_s5  ;;  %v1246_v47 = vsel %vm188_vm1, %v1244_v28, %v1245_v29  ;;  %v570_v6 = vrot.slane %v566_v36, 1  ;;  %s3412_s5 = sld [smem:[#allocation2 + $0x284]] }
  0xc1   : > { %v479_v18 = vadd.f32 %v477_v9, %v468_v12  ;;  %v503_v61 = vpop.permute.xlu0 %502  ;;  %v545_v55 = vmul.f32 %v3310_v49, %v544_v42  ;;  %v1259_v4 = vsel %vm188_vm1, %v1257_v52, %v1258_v53  ;;  %v1281_v8 = vrot.slane %v1277_v58, 2 }
  0xc2   : > { %v3278_v22 = vadd.f32 %v3126_v60, %v432_v15  ;;  %v1282_v9 = vrot.slane %v1278_v59, 2  ;;  %v602_v10 = vmul.f32 %v3310_v49, %v601_v24  ;;  %v1337_v12 = vmul.f32 %v3228_v34, %v1336_v27 }
  0xc3   : > { %1203 = vrot.lane.b32.xlu2 %v1202_v11, %s2816_s4  ;;  %v492_v25 = vadd.f32 %v3157_v26, %v479_v18  ;;  %v603_v11 = vmul.f32 %v3314_v51, %v601_v24  ;;  %v1338_v13 = vmul.f32 %v3234_v39, %v1336_v27  ;;  %v1296_v20 = vsel %vm226_vm0, %v1294_v62, %v1295_v0 }
  0xc4   : > { %1190 = vrot.lane.b32.xlu1 %v1189_v19, %s2815_s26  ;;  %v571_v15 = vsel %vm188_vm1, %v569_v5, %v570_v6  ;;  %v1309_v16 = vstv %s3317_s14  ;;  %v1349_v19 = vstv %s3322_s15  ;;  %v606_v21 = vrot.slane %v602_v10, 2  ;;  %s3447_s14 = sld [smem:[#allocation2 + $0x10c]] }
  0xc5   : > { %v3289_v60 = vpop.permute.xlu2 %677  ;;  %v505_v26 = vadd.f32 %v503_v61, %v492_v25  ;;  %v1283_v61 = vsel %vm226_vm0, %v1281_v8, %v1282_v9  ;;  %v1341_v25 = vrot.slane %v1337_v12, 1  ;;  %v1342_v28 = vrot.slane %v1338_v13, 1  ;;  %s3453_s15 = sld [smem:[#allocation2 + $0x304]] }
  0xc6   : > { %v527_v41 = vpop.permute.xlu1 %526  ;;  %v1310_v31 = vmul.f32 %v3228_v34, %v1309_v16  ;;  %v1350_v35 = vmul.f32 %v3228_v34, %v1349_v19  ;;  %v1351_v37 = vmul.f32 %v3234_v39, %v1349_v19  ;;  %v1317_v40 = vstv %s3334_s17  ;;  %s3472_s17 = sld [smem:[#allocation2 + $0x10f]] }
  0xc7   : > { %v516_v46 = vadd.f32 %v514_v33, %v505_v26  ;;  %1215 = vrot.lane.b32.xlu0 %v1213_v23, %s2815_s26  ;;  %v607_v23 = vrot.slane %v603_v11, 2  ;;  %v1343_v44 = vsel %vm188_vm1, %v1341_v25, %v1342_v28  ;;  %v1373_v45 = vstv %s3340_s18  ;;  %s3476_s18 = sld [smem:[#allocation2 + $0x385]] }
  0xc8   : > { %v1388_v57 = vmul.f32 %v3234_v39, %v1386_v38  ;;  %v638_v50 = vstv %s3348_s20  ;;  %v1354_v36 = vrot.slane %v1350_v35, 1  ;;  %v1355_v52 = vrot.slane %v1351_v37, 1  ;;  %s3500_s20 = sld [smem:[#allocation2 + $0x288]] }
  0xc9   : > { %v529_v54 = vadd.f32 %v527_v41, %v516_v46  ;;  %v552_v2 = vpop.permute.xlu0 %551  ;;  %v608_v41 = vsel %vm226_vm0, %v606_v21, %v607_v23  ;;  %v695_v8 = vstv %s3362_s21  ;;  %v1594_v19 = vstv %s3380_s24  ;;  %s3513_s21 = sld [smem:[#allocation2 + $0x308]] }
  0xca   : > { %v1392_v24 = vrot.slane %v1388_v57, 2  ;;  %v1356_v5 = vsel %vm188_vm1, %v1354_v36, %v1355_v52  ;;  %v697_v13 = vmul.f32 %v3306_v56, %v695_v8  ;;  %v755_v21 = vstv %s3383_s25  ;;  %s3522_s24 = sld [smem:[#allocation2 + $0x307]] }
  0xcb   : > { %1247 = vrot.lane.b32.xlu2 %v1246_v47, %s2815_s26  ;;  %v542_v63 = vadd.f32 %v3190_v1, %v529_v54  ;;  %v658_v47 = vstv %s3344_s19  ;;  %v1411_v35 = vstv %s3393_s28  ;;  %s3485_s19 = sld [smem:[#allocation2 + $0x287]] }
  0xcc   : > { %1223 = vrot.lane.b32.xlu1 %v1221_v48, %s2816_s4  ;;  %v1387_v48 = vmul.f32 %v3228_v34, %v1386_v38  ;;  %v659_v58 = vmul.f32 %v3298_v43, %v658_v47  ;;  %v660_v59 = vmul.f32 %v3306_v56, %v658_v47  ;;  %v701_v28 = vrot.slane %v697_v13, 2  ;;  %s3526_s25 = sld [smem:[#allocation2 + $0x115]] }
  0xcd   : > { %v3329_v30 = vpop.permute.xlu2 %727  ;;  %v546_v7 = vadd.f32 %v545_v55, %v542_v63  ;;  %v1374_v55 = vmul.f32 %v3228_v34, %v1373_v45  ;;  %v639_v63 = vmul.f32 %v3298_v43, %v638_v50  ;;  %v1595_v38 = vmul.f32 %v3228_v34, %v1594_v19  ;;  %s3536_s28 = sld [smem:[#allocation2 + $0x388]] }
  0xce   : > { %v560_v1 = vpop.permute.xlu1 %559  ;;  %v1391_v0 = vrot.slane %v1387_v48, 2  ;;  %v663_v9 = vrot.slane %v659_v58, 1  ;;  %v1412_v47 = vmul.f32 %v3310_v49, %v1411_v35  ;;  %v446_v58 = vmax.f32 %v3278_v22, 0.0 }
  0xcf   : > { %v554_v14 = vadd.f32 %v552_v2, %v546_v7  ;;  %1260 = vrot.lane.b32.xlu0 %v1259_v4, %s2816_s4  ;;  %v1375_v2 = vmul.f32 %v3234_v39, %v1373_v45  ;;  %v1378_v4 = vrot.slane %v1374_v55, 2  ;;  %v1602_v45 = vstv %s3399_s30  ;;  %s3559_s30 = sld [smem:[#allocation2 + $0x180]] }
  0xd0   : > { %v1393_v12 = vsel %vm226_vm0, %v1391_v0, %v1392_v24  ;;  %v1603_v52 = vmul.f32 %v3228_v34, %v1602_v45  ;;  %v1887_v55 = vstv %s3407_s3  ;;  %v829_v19 = vstv %s3431_s8  ;;  %s3565_s3 = sld [smem:[#allocation2 + $0x183]] }
  0xd1   : > { %v562_v17 = vadd.f32 %v560_v1, %v554_v14  ;;  %v597_v18 = vpop.permute.xlu0 %596  ;;  %v1379_v7 = vrot.slane %v1375_v2, 2  ;;  %v664_v1 = vrot.slane %v660_v59, 1  ;;  %v1403_v14 = vstv %s3373_s22  ;;  %s3516_s22 = sld [smem:[#allocation2 + $0x112]] }
  0xd2   : > { %v1621_v2 = vstv %s3412_s5  ;;  %v1906_v35 = vstv %s3453_s15  ;;  %s3568_s5 = sld [smem:[#allocation2 + $0x20d]] }
  0xd3   : > { %1297 = vrot.lane.b32.xlu2 %v1296_v20, %s2816_s4  ;;  %v573_v29 = vadd.f32 %v571_v15, %v562_v17  ;;  %v1380_v16 = vsel %vm226_vm0, %v1378_v4, %v1379_v7  ;;  %v665_v17 = vsel %vm188_vm1, %v663_v9, %v664_v1  ;;  %v1888_v4 = vmul.f32 %v3228_v34, %v1887_v55  ;;  %s3589_s8 = sld [smem:[#allocation2 + $0x186]] }
  0xd4   : > { %1284 = vrot.lane.b32.xlu1 %v1283_v61, %s2815_s26  ;;  %v1404_v61 = vmul.f32 %v3310_v49, %v1403_v14  ;;  %v1622_v7 = vmul.f32 %v3228_v34, %v1621_v2  ;;  %v2164_v9 = vstv %s3425_s7  ;;  %v1623_v1 = vmul.f32 %v3234_v39, %v1621_v2  ;;  %s3584_s7 = sld [smem:[#allocation2 + $0x28b]] }
  0xd5   : > { %v3355_v33 = vpop.permute.xlu2 %774  ;;  %v586_v26 = vadd.f32 %v3222_v32, %v573_v29  ;;  %v1318_v32 = vmul.f32 %v3228_v34, %v1317_v40  ;;  %v735_v29 = vstv %s3389_s27  ;;  %v757_v40 = vmul.f32 %v3234_v39, %v755_v21  ;;  %s3532_s27 = sld [smem:[#allocation2 + $0x387]] }
  0xd6   : > { %v621_v42 = vpop.permute.xlu1 %620  ;;  %v886_v55 = vstv %s3472_s17  ;;  %s3624_s15 = sld [smem:[#allocation2 + $0x38a]] }
  0xd7   : > { %v599_v46 = vadd.f32 %v597_v18, %v586_v26  ;;  %1312 = vrot.lane.b32.xlu0 %v1310_v31, %s2815_s26  ;;  %v756_v26 = vmul.f32 %v3228_v34, %v755_v21  ;;  %v761_v36 = vrot.slane %v757_v40, 1  ;;  %v1627_v21 = vrot.slane %v1623_v1, 1  ;;  %s3634_s17 = sld [smem:[#allocation2 + $0x18c]] }
  0xd8   : > { %v887_v1 = vmul.f32 %v3310_v49, %v886_v55 }
  0xd9   : > { %v610_v53 = vadd.f32 %v608_v41, %v599_v46  ;;  %v646_v54 = vpop.permute.xlu0 %645  ;;  %v792_v41 = vstv %s3395_s29  ;;  %s3545_s29 = sld [smem:[#allocation2 + $0x118]] }
  0xda   : > { %v793_v50 = vmul.f32 %v3228_v34, %v792_v41 }
  0xdb   : > { %1344 = vrot.lane.b32.xlu2 %v1343_v44, %s2815_s26  ;;  %v623_v62 = vadd.f32 %v621_v42, %v610_v53  ;;  %v736_v44 = vmul.f32 %v3228_v34, %v735_v29 }
  0xdc   : > { %1320 = vrot.lane.b32.xlu1 %v1318_v32, %s2816_s4  ;;  %v760_v32 = vrot.slane %v756_v26, 1  ;;  %v797_v0 = vrot.slane %v793_v50, 2  ;;  %v1907_v50 = vmul.f32 %v3228_v34, %v1906_v35 }
  0xdd   : > { %v3386_v27 = vpop.permute.xlu2 %824  ;;  %v636_v6 = vadd.f32 %v3258_v3, %v623_v62  ;;  %v696_v3 = vmul.f32 %v3298_v43, %v695_v8 }
  0xde   : > { %v654_v10 = vpop.permute.xlu1 %653 }
  0xdf   : > { %v640_v11 = vadd.f32 %v639_v63, %v636_v6  ;;  %1357 = vrot.lane.b32.xlu0 %v1356_v5, %s2816_s4  ;;  %v700_v25 = vrot.slane %v696_v3, 2  ;;  %v1879_v63 = vstv %s3419_s6  ;;  %v762_v5 = vsel %vm188_vm1, %v760_v32, %v761_v36  ;;  %s3578_s6 = sld [smem:[#allocation2 + $0x28a]] }
  0xe1   : > { %v648_v20 = vadd.f32 %v646_v54, %v640_v11  ;;  %v691_v15 = vpop.permute.xlu0 %690  ;;  %v702_v46 = vsel %vm226_vm0, %v700_v25, %v701_v28  ;;  %v1880_v11 = vmul.f32 %v3228_v34, %v1879_v63  ;;  %v849_v28 = vstv %s3447_s14  ;;  %s3619_s14 = sld [smem:[#allocation2 + $0x28d]] }
  0xe2   : > { %v2204_v63 = vstv %s3476_s18  ;;  %s3637_s18 = sld [smem:[#allocation2 + $0x189]] }
  0xe3   : > { %1394 = vrot.lane.b32.xlu2 %v1393_v12, %s2816_s4  ;;  %v656_v18 = vadd.f32 %v654_v10, %v648_v20  ;;  %v447_v10 = vmul.f32 %v446_v58, %v446_v58  ;;  %v2165_v20 = vmul.f32 %v3228_v34, %v2164_v9 }
  0xe4   : > { %1381 = vrot.lane.b32.xlu1 %v1380_v16, %s2815_s26  ;;  %v1626_v16 = vrot.slane %v1622_v7, 1 }
  0xe5   : > { %v3415_v23 = vpop.permute.xlu2 %868  ;;  %v667_v31 = vadd.f32 %v665_v17, %v656_v18  ;;  %v1919_v17 = vstv %s3443_s13  ;;  %s3616_s13 = sld [smem:[#allocation2 + $0x30b]] }
  0xe6   : > { %v715_v37 = vpop.permute.xlu1 %714  ;;  %v1921_v26 = vmul.f32 %v3234_v39, %v1919_v17  ;;  %v1628_v45 = vsel %vm188_vm1, %v1626_v16, %v1627_v21 }
  0xe7   : > { %v680_v42 = vadd.f32 %v3289_v60, %v667_v31  ;;  %1406 = vrot.lane.b32.xlu0 %v1404_v61, %s2815_s26  ;;  %v794_v60 = vmul.f32 %v3234_v39, %v792_v41  ;;  %v830_v41 = vmul.f32 %v3310_v49, %v829_v19  ;;  %v891_v19 = vrot.slane %v887_v1, 2 }
  0xe9   : > { %v693_v48 = vadd.f32 %v691_v15, %v680_v42  ;;  %v743_v57 = vpop.permute.xlu0 %742  ;;  %v798_v24 = vrot.slane %v794_v60, 2  ;;  %v2172_v15 = vstv %s3435_s11  ;;  %v2191_v60 = vstv %s3464_s16  ;;  %s3596_s11 = sld [smem:[#allocation2 + $0x20e]] }
  0xea   : > { %v745_v54 = vadd.f32 %v743_v57, %v736_v44  ;;  %v2173_v42 = vmul.f32 %v3228_v34, %v2172_v15  ;;  %v2192_v58 = vmul.f32 %v3228_v34, %v2191_v60  ;;  %s3631_s16 = sld [smem:[#allocation2 + $0x28e]] }
  0xeb   : > { %1597 = vrot.lane.b32.xlu2 %v1595_v38, %s2815_s26  ;;  %v704_v53 = vadd.f32 %v702_v46, %v693_v48  ;;  %v799_v14 = vsel %vm226_vm0, %v797_v0, %v798_v24  ;;  %v1920_v38 = vmul.f32 %v3228_v34, %v1919_v17  ;;  %v850_v46 = vmul.f32 %v3310_v49, %v849_v28 }
  0xec   : > { %1414 = vrot.lane.b32.xlu1 %v1412_v47, %s2816_s4  ;;  %v851_v47 = vmul.f32 %v3314_v51, %v849_v28 }
  0xed   : > { %v3451_v59 = vpop.permute.xlu2 %918  ;;  %v717_v62 = vadd.f32 %v715_v37, %v704_v53  ;;  %v1925_v53 = vrot.slane %v1921_v26, 1  ;;  %v854_v24 = vrot.slane %v850_v46, 1 }
  0xee   : > { %v751_v6 = vpop.permute.xlu1 %750 }
  0xef   : > { %v730_v22 = vadd.f32 %v3329_v30, %v717_v62  ;;  %v753_v8 = vadd.f32 %v751_v6, %v745_v54  ;;  %1605 = vrot.lane.b32.xlu0 %v1603_v52, %s2816_s4  ;;  %v1634_v30 = vstv %s3439_s12  ;;  %v1924_v52 = vrot.slane %v1920_v38, 1  ;;  %s3603_s12 = sld [smem:[#allocation2 + $0x30a]] }
  0xf0   : > { %v1635_v29 = vmul.f32 %v3228_v34, %v1634_v30  ;;  %v1636_v31 = vmul.f32 %v3234_v39, %v1634_v30  ;;  %v1908_v54 = vmul.f32 %v3234_v39, %v1906_v35  ;;  %v2193_v62 = vmul.f32 %v3234_v39, %v2191_v60 }
  0xf1   : > { %v731_v12 = vmax.f32 %v730_v22, 0.0  ;;  %v764_v3 = vadd.f32 %v762_v5, %v753_v8  ;;  %v788_v13 = vpop.permute.xlu0 %787  ;;  %v855_v5 = vrot.slane %v851_v47, 1  ;;  %v1926_v22 = vsel %vm188_vm1, %v1924_v52, %v1925_v53 }
  0xf2   : > { %v1639_v48 = vrot.slane %v1635_v29, 1  ;;  %v1640_v57 = vrot.slane %v1636_v31, 1  ;;  %v1912_v8 = vrot.slane %v1908_v54, 1  ;;  %v923_v47 = vstv %s3516_s22  ;;  %s3664_s22 = sld [smem:[#allocation2 + $0x30e]] }
  0xf3   : > { %1890 = vrot.lane.b32.xlu2 %v1888_v4, %s2816_s4  ;;  %v732_v18 = vmul.f32 %v731_v12, %v731_v12  ;;  %v777_v61 = vadd.f32 %v3355_v33, %v764_v3  ;;  %v1658_v4 = vstv %s3485_s19  ;;  %v2206_v12 = vmul.f32 %v3234_v39, %v2204_v63  ;;  %s3644_s19 = sld [smem:[#allocation2 + $0x30d]] }
  0xf4   : > { %1882 = vrot.lane.b32.xlu1 %v1880_v11, %s2815_s26  ;;  %v1641_v6 = vsel %vm188_vm1, %v1639_v48, %v1640_v57  ;;  %v2205_v11 = vmul.f32 %v3228_v34, %v2204_v63  ;;  %v1659_v30 = vmul.f32 %v3228_v34, %v1658_v4  ;;  %v1660_v15 = vmul.f32 %v3234_v39, %v1658_v4 }
  0xf5   : > { %v3479_v25 = vpop.permute.xlu2 %962  ;;  %v3487_v37 = vadd.f32 %v732_v18, %v447_v10  ;;  %v790_v33 = vadd.f32 %v788_v13, %v777_v61  ;;  %v888_v10 = vmul.f32 %v3314_v51, %v886_v55  ;;  %v2196_v13 = vrot.slane %v2192_v58, 1 }
  0xf6   : > { %v812_v40 = vpop.permute.xlu1 %811  ;;  %v1671_v61 = vstv %s3500_s20  ;;  %v2209_v28 = vrot.slane %v2205_v11, 1  ;;  %v2210_v29 = vrot.slane %v2206_v12, 1  ;;  %v1664_v26 = vrot.slane %v1660_v15, 2  ;;  %s3650_s20 = sld [smem:[#allocation2 + $0x18f]] }
  0xf7   : > { %v801_v44 = vadd.f32 %v799_v14, %v790_v33  ;;  %2167 = vrot.lane.b32.xlu0 %v2165_v20, %s2815_s26  ;;  %v2197_v14 = vrot.slane %v2193_v62, 1  ;;  %v856_v20 = vsel %vm188_vm1, %v854_v24, %v855_v5  ;;  %v892_v21 = vrot.slane %v888_v10, 2 }
  0xf8   : > { %v1663_v33 = vrot.slane %v1659_v30, 2  ;;  %v2211_v48 = vsel %vm188_vm1, %v2209_v28, %v2210_v29  ;;  %v1943_v57 = vstv %s3522_s24  ;;  %v943_v60 = vstv %s3526_s25  ;;  %s3670_s24 = sld [smem:[#allocation2 + $0x38b]] }
  0xf9   : > { %v814_v32 = vadd.f32 %v812_v40, %v801_v44  ;;  %v837_v36 = vpop.permute.xlu0 %836  ;;  %v2198_v35 = vsel %vm188_vm1, %v2196_v13, %v2197_v14  ;;  %v1672_v40 = vmul.f32 %v3228_v34, %v1671_v61  ;;  %v1945_v58 = vmul.f32 %v3234_v39, %v1943_v57  ;;  %s3682_s25 = sld [smem:[#allocation2 + $0x38d]] }
  0xfa   : > { %v2228_v62 = vstv %s3532_s27  ;;  %v924_v63 = vmul.f32 %v3298_v43, %v923_v47  ;;  %v944_v24 = vmul.f32 %v3298_v43, %v943_v60  ;;  %v945_v5 = vmul.f32 %v3306_v56, %v943_v60  ;;  %s3689_s27 = sld [smem:[#allocation2 + $0x192]] }
  0xfb   : > { %2175 = vrot.lane.b32.xlu2 %v2173_v42, %s2816_s4  ;;  %v827_v2 = vadd.f32 %v3386_v27, %v814_v32  ;;  %v1911_v27 = vrot.slane %v1907_v50, 1  ;;  %v1956_v42 = vstv %s3513_s21  ;;  %v1676_v52 = vrot.slane %v1672_v40, 2  ;;  %s3655_s21 = sld [smem:[#allocation2 + $0x210]] }
  0xfc   : > { %1629 = vrot.lane.b32.xlu1 %v1628_v45, %s2815_s26  ;;  %v893_v45 = vsel %vm226_vm0, %v891_v19, %v892_v21  ;;  %v1957_v32 = vmul.f32 %v3228_v34, %v1956_v42  ;;  %v2230_v1 = vmul.f32 %v3234_v39, %v2228_v62  ;;  %v1949_v12 = vrot.slane %v1945_v58, 2 }
  0xfd   : > { %v3509_v0 = vpop.permute.xlu2 %1012  ;;  %v831_v7 = vadd.f32 %v830_v41, %v827_v2  ;;  %v1913_v18 = vsel %vm188_vm1, %v1911_v27, %v1912_v8  ;;  %v1673_v41 = vmul.f32 %v3234_v39, %v1671_v61  ;;  %v1944_v2 = vmul.f32 %v3228_v34, %v1943_v57 }
  0xfe   : > { %v845_v9 = vpop.permute.xlu1 %844  ;;  %v1961_v4 = vrot.slane %v1957_v32, 2  ;;  %v948_v13 = vrot.slane %v944_v24, 1  ;;  %v949_v14 = vrot.slane %v945_v5, 1  ;;  %v2234_v19 = vrot.slane %v2230_v1, 2 }
  0xff   : > { %v839_v3 = vadd.f32 %v837_v36, %v831_v7  ;;  %1642 = vrot.lane.b32.xlu0 %v1641_v6, %s2816_s4  ;;  %v1958_v36 = vmul.f32 %v3234_v39, %v1956_v42  ;;  %v1677_v53 = vrot.slane %v1673_v41, 2  ;;  %v1948_v11 = vrot.slane %v1944_v2, 2 }
 0x100   : > { %v1430_v41 = vstv %s3568_s5  ;;  %v1688_v47 = vstv %s3578_s6  ;;  %s3719_s5 = sld [smem:[#allocation2 + $0x198]] }
 0x101   : > { %v847_v16 = vadd.f32 %v845_v9, %v839_v3  ;;  %v882_v17 = vpop.permute.xlu0 %881  ;;  %v1962_v7 = vrot.slane %v1958_v36, 2  ;;  %v1678_v8 = vsel %vm226_vm0, %v1676_v52, %v1677_v53  ;;  %v2229_v9 = vmul.f32 %v3228_v34, %v2228_v62  ;;  %s3727_s6 = sld [smem:[#allocation2 + $0x310]] }
 0x102   : > { %v980_v3 = vstv %s3545_s29  ;;  %v1950_v29 = vsel %vm226_vm0, %v1948_v11, %v1949_v12  ;;  %v1431_v32 = vmul.f32 %v3310_v49, %v1430_v41  ;;  %v1696_v52 = vstv %s3584_s7  ;;  %s3701_s29 = sld [smem:[#allocation2 + $0x211]] }
 0x103   : > { %1927 = vrot.lane.b32.xlu2 %v1926_v22, %s2816_s4  ;;  %v858_v31 = vadd.f32 %v856_v20, %v847_v16  ;;  %v2241_v22 = vstv %s3536_s28  ;;  %v1963_v16 = vsel %vm226_vm0, %v1961_v4, %v1962_v7  ;;  %v2233_v61 = vrot.slane %v2229_v9, 2  ;;  %s3697_s28 = sld [smem:[#allocation2 + $0x290]] }
 0x104   : > { %1914 = vrot.lane.b32.xlu1 %v1913_v18, %s2815_s26  ;;  %v2242_v20 = vmul.f32 %v3228_v34, %v2241_v22  ;;  %v982_v18 = vmul.f32 %v3306_v56, %v980_v3  ;;  %v1432_v53 = vmul.f32 %v3314_v51, %v1430_v41  ;;  %v1077_v62 = vstv %s3589_s8  ;;  %s3730_s7 = sld [smem:[#allocation2 + $0x291]] }
 0x105   : > { %v3539_v38 = vpop.permute.xlu2 %1059  ;;  %v871_v44 = vadd.f32 %v3415_v23, %v858_v31  ;;  %v1665_v23 = vsel %vm226_vm0, %v1663_v33, %v1664_v26  ;;  %v950_v31 = vsel %vm188_vm1, %v948_v13, %v949_v14  ;;  %v1697_v24 = vmul.f32 %v3310_v49, %v1696_v52  ;;  %s3754_s8 = sld [smem:[#allocation2 + $0x203]] }
 0x106   : > { %v906_v46 = vpop.permute.xlu1 %905  ;;  %v2246_v33 = vrot.slane %v2242_v20, 2  ;;  %v1435_v5 = vrot.slane %v1431_v32, 1  ;;  %v1436_v7 = vrot.slane %v1432_v53, 1  ;;  %v1078_v9 = vmul.f32 %v3228_v34, %v1077_v62 }
 0x107   : > { %v884_v50 = vadd.f32 %v882_v17, %v871_v44  ;;  %2199 = vrot.lane.b32.xlu0 %v2198_v35, %s2815_s26  ;;  %v2243_v17 = vmul.f32 %v3234_v39, %v2241_v22  ;;  %v1020_v35 = vstv %s3559_s30  ;;  %v986_v44 = vrot.slane %v982_v18, 2  ;;  %s3705_s30 = sld [smem:[#allocation2 + $0x195]] }
 0x108   : > { %v1021_v57 = vmul.f32 %v3228_v34, %v1020_v35  ;;  %v1443_v22 = vstv %s3596_s11  ;;  %v1079_v1 = vmul.f32 %v3234_v39, %v1077_v62  ;;  %v1973_v11 = vstv %s3603_s12  ;;  %s3757_s11 = sld [smem:[#allocation2 + $0x390]] }
 0x109   : > { %v895_v54 = vadd.f32 %v893_v45, %v884_v50  ;;  %v931_v55 = vpop.permute.xlu0 %930  ;;  %v2247_v40 = vrot.slane %v2243_v17, 2  ;;  %v2235_v45 = vsel %vm226_vm0, %v2233_v61, %v2234_v19  ;;  %v1444_v13 = vmul.f32 %v3310_v49, %v1443_v22  ;;  %s3771_s12 = sld [smem:[#allocation2 + $0x200]] }
 0x10a   : > { %v1445_v14 = vmul.f32 %v3314_v51, %v1443_v22  ;;  %v1974_v20 = vmul.f32 %v3310_v49, %v1973_v11  ;;  %v1981_v17 = vstv %s3616_s13  ;;  %v1715_v19 = vstv %s3619_s14  ;;  %s3778_s13 = sld [smem:[#allocation2 + $0x311]] }
 0x10b   : > { %2212 = vrot.lane.b32.xlu2 %v2211_v48, %s2816_s4  ;;  %v908_v6 = vadd.f32 %v906_v46, %v895_v54  ;;  %v2258_v35 = vstv %s3624_s15  ;;  %v1728_v41 = vstv %s3631_s16  ;;  %s3786_s14 = sld [smem:[#allocation2 + $0x213]] }
 0x10c   : > { %1666 = vrot.lane.b32.xlu1 %v1665_v23, %s2815_s26  ;;  %v2248_v23 = vsel %vm226_vm0, %v2246_v33, %v2247_v40  ;;  %v1716_v40 = vmul.f32 %v3310_v49, %v1715_v19  ;;  %s3789_s15 = sld [smem:[#allocation2 + $0x206]] }
 0x10d   : > { %v3571_v27 = vpop.permute.xlu2 %1109  ;;  %v921_v10 = vadd.f32 %v3451_v59, %v908_v6  ;;  %v981_v59 = vmul.f32 %v3298_v43, %v980_v3  ;;  %v1040_v43 = vstv %s3565_s3  ;;  %s3715_s3 = sld [smem:[#allocation2 + $0x38e]] }
 0x10e   : > { %v939_v30 = vpop.permute.xlu1 %938  ;;  %v1041_v50 = vmul.f32 %v3228_v34, %v1040_v43  ;;  %v1042_v60 = vmul.f32 %v3234_v39, %v1040_v43  ;;  %v1717_v43 = vmul.f32 %v3314_v51, %v1715_v19  ;;  %s3800_s16 = sld [smem:[#allocation2 + $0x391]] }
 0x10f   : > { %v925_v15 = vadd.f32 %v924_v63, %v921_v10  ;;  %1679 = vrot.lane.b32.xlu0 %v1678_v8, %s2816_s4  ;;  %v985_v42 = vrot.slane %v981_v59, 2 }
 0x110   : > { %v1046_v63 = vrot.slane %v1042_v60, 1  ;;  %v1729_v60 = vmul.f32 %v3310_v49, %v1728_v41  ;;  %v1721_v52 = vrot.slane %v1717_v43, 1 }
 0x111   : > { %v933_v21 = vadd.f32 %v931_v55, %v925_v15  ;;  %v976_v28 = vpop.permute.xlu0 %975  ;;  %v987_v54 = vsel %vm226_vm0, %v985_v42, %v986_v44  ;;  %v1689_v55 = vmul.f32 %v3310_v49, %v1688_v47  ;;  %v1082_v15 = vrot.slane %v1078_v9, 2 }
 0x112   : > { %v1134_v44 = vstv %s3634_s17  ;;  %v2013_v9 = vstv %s3664_s22  ;;  %s3820_s17 = sld [smem:[#allocation2 + $0x214]] }
 0x113   : > { %1964 = vrot.lane.b32.xlu2 %v1963_v16, %s2816_s4  ;;  %v941_v26 = vadd.f32 %v939_v30, %v933_v21  ;;  %v1437_v30 = vsel %vm188_vm1, %v1435_v5, %v1436_v7  ;;  %v1083_v16 = vrot.slane %v1079_v1, 2  ;;  %v1449_v21 = vrot.slane %v1445_v14, 1  ;;  %s3848_s22 = sld [smem:[#allocation2 + $0x294]] }
 0x114   : > { %1951 = vrot.lane.b32.xlu1 %v1950_v29, %s2815_s26  ;;  %v1135_v32 = vmul.f32 %v3310_v49, %v1134_v44 }
 0x115   : > { %v3599_v56 = vpop.permute.xlu2 %1153  ;;  %v952_v46 = vadd.f32 %v950_v31, %v941_v26  ;;  %v1982_v31 = vmul.f32 %v3310_v49, %v1981_v17  ;;  %v1084_v26 = vsel %vm226_vm0, %v1082_v15, %v1083_v16 }
 0x116   : > { %v1000_v48 = vpop.permute.xlu1 %999 }
 0x117   : > { %v965_v36 = vadd.f32 %v3479_v25, %v952_v46  ;;  %2236 = vrot.lane.b32.xlu0 %v2235_v45, %s2815_s26  ;;  %v1045_v25 = vrot.slane %v1041_v50, 1  ;;  %v1114_v46 = vstv %s3637_s18  ;;  %v2000_v50 = vstv %s3644_s19  ;;  %s3826_s18 = sld [smem:[#allocation2 + $0x280]] }
 0x118   : > { %v2002_v62 = vmul.f32 %v3314_v51, %v2000_v50  ;;  %s3835_s19 = sld [smem:[#allocation2 + $0x216]] }
 0x119   : > { %v978_v2 = vadd.f32 %v976_v28, %v965_v36  ;;  %v1028_v58 = vpop.permute.xlu0 %1027  ;;  %v1047_v12 = vsel %vm188_vm1, %v1045_v25, %v1046_v63  ;;  %v1136_v36 = vmul.f32 %v3314_v51, %v1134_v44  ;;  %v1467_v63 = vstv %s3655_s21  ;;  %s3840_s21 = sld [smem:[#allocation2 + $0x209]] }
 0x11a   : > { %v1030_v4 = vadd.f32 %v1028_v58, %v1021_v57  ;;  %v2001_v58 = vmul.f32 %v3310_v49, %v2000_v50  ;;  %v1468_v14 = vmul.f32 %v3310_v49, %v1467_v63  ;;  %v1469_v17 = vmul.f32 %v3314_v51, %v1467_v63  ;;  %v3750_v63 = vld [vmem:[%s2851_s23 + $0x28] sm:$0x3] }
 0x11b   : > { %2249 = vrot.lane.b32.xlu2 %v2248_v23, %s2816_s4  ;;  %v989_v6 = vadd.f32 %v987_v54, %v978_v2  ;;  %v1720_v23 = vrot.slane %v1716_v40, 1  ;;  %v1115_v54 = vmul.f32 %v3310_v49, %v1114_v46  ;;  %v1171_v2 = vstv %s3650_s20  ;;  %s3837_s20 = sld [smem:[#allocation2 + $0x293]] }
 0x11c   : > { %1691 = vrot.lane.b32.xlu1 %v1689_v55, %s2815_s26  ;;  %v1140_v7 = vrot.slane %v1136_v36, 1  ;;  %v1473_v40 = vrot.slane %v1469_v17, 2 }
 0x11d   : > { %v3627_v8 = vpop.permute.xlu2 %1203  ;;  %v1002_v10 = vadd.f32 %v1000_v48, %v989_v6  ;;  %v2259_v48 = vmul.f32 %v3310_v49, %v2258_v35  ;;  %v1722_v22 = vsel %vm188_vm1, %v1720_v23, %v1721_v52 }
 0x11e   : > { %v1036_v3 = vpop.permute.xlu1 %1035 }
 0x11f   : > { %v1015_v34 = vadd.f32 %v3509_v0, %v1002_v10  ;;  %v1038_v39 = vadd.f32 %v1036_v3, %v1030_v4  ;;  %1699 = vrot.lane.b32.xlu0 %v1697_v24, %s2816_s4  ;;  %v1448_v0 = vrot.slane %v1444_v13, 1  ;;  %v1733_v24 = vrot.slane %v1729_v60, 1 }
 0x120   : > { %v1139_v4 = vrot.slane %v1135_v32, 1  ;;  %v2266_v10 = vstv %s3670_s24  ;;  %v2005_v3 = vrot.slane %v2001_v58, 1  ;;  %v2006_v13 = vrot.slane %v2002_v62, 1  ;;  %v3745_v58 = vld [vmem:[%s2851_s23 + $0x20] sm:$0xff]  ;;  %s3852_s24 = sld [smem:[#allocation2 + $0x283]] }
 0x121   : > { %v1016_v59 = vmax.f32 %v1015_v34, 0.0  ;;  %v1049_v18 = vadd.f32 %v1047_v12, %v1038_v39  ;;  %v1073_v61 = vpop.permute.xlu0 %1072  ;;  %v1450_v47 = vsel %vm188_vm1, %v1448_v0, %v1449_v21  ;;  %v1173_v12 = vmul.f32 %v3314_v51, %v1171_v2 }
 0x122   : > { %v1141_v15 = vsel %vm188_vm1, %v1139_v4, %v1140_v7  ;;  %v2267_v16 = vmul.f32 %v3310_v49, %v2266_v10  ;;  %v2007_v21 = vsel %vm188_vm1, %v2005_v3, %v2006_v13  ;;  %v3768_v10 = vld [vmem:[%s2851_s23 + $0x18] sm:$0x3] }
 0x123   : > { %1438 = vrot.lane.b32.xlu2 %v1437_v30, %s2815_s26  ;;  %v1017_v28 = vmul.f32 %v1016_v59, %v1016_v59  ;;  %v1062_v29 = vadd.f32 %v3539_v38, %v1049_v18  ;;  %v2014_v30 = vmul.f32 %v3310_v49, %v2013_v9  ;;  %v1177_v0 = vrot.slane %v1173_v12, 2 }
 0x124   : > { %1976 = vrot.lane.b32.xlu1 %v1974_v20, %s2815_s26  ;;  %v2015_v20 = vmul.f32 %v3314_v51, %v2013_v9  ;;  %v3764_v9 = vld [vmem:[%s2851_s23 + $0x10] sm:$0xff] }
 0x125   : > { %v3658_v33 = vpop.permute.xlu2 %1247  ;;  %v3667_v38 = vadd.f32 %v1017_v28, %v3487_v37  ;;  %v1075_v42 = vadd.f32 %v1073_v61, %v1062_v29  ;;  %v1730_v37 = vmul.f32 %v3314_v51, %v1728_v41  ;;  %v2285_v61 = vstv %s3682_s25  ;;  %s3856_s25 = sld [smem:[#allocation2 + $0x313]] }
 0x126   : > { %v1097_v45 = vpop.permute.xlu1 %1096  ;;  %v1472_v29 = vrot.slane %v1468_v14, 2  ;;  %v2019_v35 = vrot.slane %v2015_v20, 1  ;;  %v2286_v43 = vmul.f32 %v3310_v49, %v2285_v61  ;;  %v2287_v41 = vmul.f32 %v3314_v51, %v2285_v61 }
 0x127   : > { %v1086_v57 = vadd.f32 %v1084_v26, %v1075_v42  ;;  %1984 = vrot.lane.b32.xlu0 %v1982_v31, %s2816_s4  ;;  %v1734_v5 = vrot.slane %v1730_v37, 1  ;;  %v2018_v31 = vrot.slane %v2014_v30, 1  ;;  %v1752_v42 = vstv %s3697_s28  ;;  %s3866_s28 = sld [smem:[#allocation2 + $0x300]] }
 0x128   : > { %v1753_v37 = vmul.f32 %v3310_v49, %v1752_v42  ;;  %v1474_v32 = vsel %vm226_vm0, %v1472_v29, %v1473_v40  ;;  %v2290_v36 = vrot.slane %v2286_v43, 1  ;;  %v2291_v23 = vrot.slane %v2287_v41, 1 }
 0x129   : > { %v1099_v53 = vadd.f32 %v1097_v45, %v1086_v57  ;;  %v1122_v55 = vpop.permute.xlu0 %1121  ;;  %v1735_v39 = vsel %vm188_vm1, %v1733_v24, %v1734_v5  ;;  %v1480_v57 = vstv %s3701_s29  ;;  %v2020_v60 = vsel %vm188_vm1, %v2018_v31, %v2019_v35  ;;  %s3870_s29 = sld [smem:[#allocation2 + $0x296]] }
 0x12a   : > { %v1757_v5 = vrot.slane %v1753_v37, 2  ;;  %v1765_v14 = vstv %s3730_s7  ;;  %v1325_v43 = vstv %s3754_s8  ;;  %v3803_v37 = vld [vmem:[%s2851_s23] sm:$0xff]  ;;  %s3898_s7 = sld [smem:[#allocation2 + $0x297]] }
 0x12b   : > { %1451 = vrot.lane.b32.xlu2 %v1450_v47, %s2816_s4  ;;  %v1112_v25 = vadd.f32 %v3571_v27, %v1099_v53  ;;  %v1172_v27 = vmul.f32 %v3310_v49, %v1171_v2  ;;  %v1208_v47 = vstv %s3689_s27  ;;  %v2298_v2 = vstv %s3715_s3  ;;  %s3863_s27 = sld [smem:[#allocation2 + $0x217]] }
 0x12c   : > { %2261 = vrot.lane.b32.xlu1 %v2259_v48, %s2815_s26  ;;  %v1228_v48 = vstv %s3705_s30  ;;  %v1209_v62 = vmul.f32 %v3745_v58, %v1208_v47  ;;  %s3876_s30 = sld [smem:[#allocation2 + $0x20c]] }
 0x12d   : > { %v3693_v6 = vpop.permute.xlu2 %1297  ;;  %v1116_v1 = vadd.f32 %v1115_v54, %v1112_v25  ;;  %v1176_v19 = vrot.slane %v1172_v27, 2  ;;  %v1481_v54 = vmul.f32 %v3310_v49, %v1480_v57  ;;  %v1229_v25 = vmul.f32 %v3745_v58, %v1228_v48  ;;  %s3880_s3 = sld [smem:[#allocation2 + $0x314]] }
 0x12e   : > { %v1130_v11 = vpop.permute.xlu1 %1129  ;;  %v1230_v24 = vmul.f32 %v3750_v63, %v1228_v48  ;;  %v2300_v27 = vmul.f32 %v3768_v10, %v2298_v2  ;;  %v1305_v48 = vstv %s3771_s12  ;;  %s3901_s8 = sld [smem:[#allocation2 + $0x393]] }
 0x12f   : > { %v1124_v34 = vadd.f32 %v1122_v55, %v1116_v1  ;;  %1723 = vrot.lane.b32.xlu0 %v1722_v22, %s2815_s26  ;;  %v1178_v45 = vsel %vm226_vm0, %v1176_v19, %v1177_v0  ;;  %v1482_v55 = vmul.f32 %v3314_v51, %v1480_v57  ;;  %v2292_v22 = vsel %vm188_vm1, %v2290_v36, %v2291_v23  ;;  %v3807_v36 = vld [vmem:[%s2851_s23 + $0x8] sm:$0x3]  ;;  %s3921_s12 = sld [smem:[#allocation2 + $0x316]] }
 0x130   : > { %v2299_v1 = vmul.f32 %v3764_v9, %v2298_v2  ;;  %v1485_v3 = vrot.slane %v1481_v54, 2  ;;  %v2304_v61 = vrot.slane %v2300_v27, 1  ;;  %v1766_v19 = vmul.f32 %v3764_v9, %v1765_v14 }
 0x131   : > { %v1132_v59 = vadd.f32 %v1130_v11, %v1124_v34  ;;  %v1167_v18 = vpop.permute.xlu0 %1166  ;;  %v2037_v11 = vstv %s3727_s6  ;;  %v1486_v13 = vrot.slane %v1482_v55, 2  ;;  %v1233_v34 = vrot.slane %v1229_v25, 1  ;;  %s3892_s6 = sld [smem:[#allocation2 + $0x380]] }
 0x132   : > { %v1767_v0 = vmul.f32 %v3768_v10, %v1765_v14  ;;  %v1770_v57 = vrot.slane %v1766_v19, 2  ;;  %v1327_v23 = vmul.f32 %v3807_v36, %v1325_v43  ;;  %v1306_v2 = vmul.f32 %v3803_v37, %v1305_v48 }
 0x133   : > { %1736 = vrot.lane.b32.xlu2 %v1735_v39, %s2816_s4  ;;  %v1143_v28 = vadd.f32 %v1141_v15, %v1132_v59  ;;  %v1234_v39 = vrot.slane %v1230_v24, 1  ;;  %v2039_v59 = vmul.f32 %v3768_v10, %v2037_v11  ;;  %v1487_v29 = vsel %vm226_vm0, %v1485_v3, %v1486_v13 }
 0x134   : > { %2269 = vrot.lane.b32.xlu1 %v2267_v16, %s2816_s4  ;;  %v1331_v27 = vrot.slane %v1327_v23, 1  ;;  %v1399_v23 = vstv %s3840_s21  ;;  %s3991_s21 = sld [smem:[#allocation2 + $0x21a]] }
 0x135   : > { %v3722_v26 = vpop.permute.xlu2 %1344  ;;  %v1156_v44 = vadd.f32 %v3599_v56, %v1143_v28  ;;  %v1754_v56 = vmul.f32 %v3314_v51, %v1752_v42  ;;  %v1265_v51 = vstv %s3719_s5  ;;  %v1235_v31 = vsel %vm188_vm1, %v1233_v34, %v1234_v39  ;;  %s3888_s5 = sld [smem:[#allocation2 + $0x303]] }
 0x136   : > { %v1191_v46 = vpop.permute.xlu1 %1190  ;;  %v1266_v20 = vmul.f32 %v3745_v58, %v1265_v51  ;;  %v1267_v15 = vmul.f32 %v3750_v63, %v1265_v51 }
 0x137   : > { %v1169_v50 = vadd.f32 %v1167_v18, %v1156_v44  ;;  %2008 = vrot.lane.b32.xlu0 %v2007_v21, %s2815_s26  ;;  %v1758_v4 = vrot.slane %v1754_v56, 2  ;;  %v2303_v18 = vrot.slane %v2299_v1, 1  ;;  %v2043_v44 = vrot.slane %v2039_v59, 2 }
 0x138   : > { %v1270_v35 = vrot.slane %v1266_v20, 2  ;;  %v1271_v40 = vrot.slane %v1267_v15, 2  ;;  %v1326_v56 = vmul.f32 %v3803_v37, %v1325_v43  ;;  %v2335_v20 = vstv %s3800_s16  ;;  %s3944_s16 = sld [smem:[#allocation2 + $0x219]] }
 0x139   : > { %v1180_v52 = vadd.f32 %v1178_v45, %v1169_v50  ;;  %v1216_v53 = vpop.permute.xlu0 %1215  ;;  %v1759_v17 = vsel %vm226_vm0, %v1757_v5, %v1758_v4  ;;  %v2322_v45 = vstv %s3757_s11  ;;  %v2305_v47 = vsel %vm188_vm1, %v2303_v18, %v2304_v61  ;;  %s3913_s11 = sld [smem:[#allocation2 + $0x383]] }
 0x13a   : > { %v1771_v50 = vrot.slane %v1767_v0, 2  ;;  %v2324_v54 = vmul.f32 %v3768_v10, %v2322_v45  ;;  %v1272_v25 = vsel %vm226_vm0, %v1270_v35, %v1271_v40  ;;  %v1330_v1 = vrot.slane %v1326_v56, 1 }
 0x13b   : > { %2021 = vrot.lane.b32.xlu2 %v2020_v60, %s2816_s4  ;;  %v1193_v49 = vadd.f32 %v1191_v46, %v1180_v52  ;;  %v2050_v52 = vstv %s3778_s13  ;;  %v2336_v0 = vmul.f32 %v3764_v9, %v2335_v20  ;;  %v1590_v56 = vstv %s3826_s18  ;;  %s3927_s13 = sld [smem:[#allocation2 + $0x286]] }
 0x13c   : > { %1475 = vrot.lane.b32.xlu1 %v1474_v32, %s2815_s26  ;;  %v1772_v24 = vsel %vm226_vm0, %v1770_v57, %v1771_v50  ;;  %v2051_v4 = vmul.f32 %v3764_v9, %v2050_v52  ;;  %v1524_v50 = vstv %s3835_s19  ;;  %s3967_s18 = sld [smem:[#allocation2 + $0x306]] }
 0x13d   : > { %v3760_v7 = vpop.permute.xlu2 %1394  ;;  %v1206_v12 = vadd.f32 %v3627_v8, %v1193_v49  ;;  %v2038_v8 = vmul.f32 %v3764_v9, %v2037_v11  ;;  %v1497_v49 = vstv %s3786_s14  ;;  %s3931_s14 = sld [smem:[#allocation2 + $0x394]] }
 0x13e   : > { %v1224_v30 = vpop.permute.xlu1 %1223  ;;  %v1498_v14 = vmul.f32 %v3745_v58, %v1497_v49  ;;  %v1400_v49 = vmul.f32 %v3764_v9, %v1399_v23  ;;  %s3980_s19 = sld [smem:[#allocation2 + $0x299]] }
 0x13f   : > { %v1210_v16 = vadd.f32 %v1209_v62, %v1206_v12  ;;  %2293 = vrot.lane.b32.xlu0 %v2292_v22, %s2815_s26  ;;  %v2042_v42 = vrot.slane %v2038_v8, 2  ;;  %v1362_v22 = vstv %s3789_s15  ;;  %v2328_v12 = vrot.slane %v2324_v54, 2  ;;  %s3940_s15 = sld [smem:[#allocation2 + $0x317]] }
 0x140   : > { %v1363_v39 = vmul.f32 %v3803_v37, %v1362_v22  ;;  %v1332_v8 = vsel %vm188_vm1, %v1330_v1, %v1331_v27  ;;  %v1525_v54 = vmul.f32 %v3745_v58, %v1524_v50  ;;  %v1537_v27 = vstv %s3863_s27  ;;  %s4034_s27 = sld [smem:[#allocation2 + $0x31a]] }
 0x141   : > { %v1218_v21 = vadd.f32 %v1216_v53, %v1210_v16  ;;  %v1261_v28 = vpop.permute.xlu0 %1260  ;;  %v2323_v53 = vmul.f32 %v3764_v9, %v2322_v45  ;;  %v2044_v62 = vsel %vm226_vm0, %v2042_v42, %v2043_v44  ;;  %v2055_v16 = vrot.slane %v2051_v4, 2 }
 0x142   : > { %v2340_v44 = vrot.slane %v2336_v0, 2 }
 0x143   : > { %1760 = vrot.lane.b32.xlu2 %v1759_v17, %s2815_s26  ;;  %v1226_v41 = vadd.f32 %v1224_v30, %v1218_v21  ;;  %v2327_v11 = vrot.slane %v2323_v53, 2  ;;  %v1364_v30 = vmul.f32 %v3807_v36, %v1362_v22  ;;  %v2337_v21 = vmul.f32 %v3768_v10, %v2335_v20 }
 0x144   : > { %1488 = vrot.lane.b32.xlu1 %v1487_v29, %s2816_s4 }
 0x145   : > { %v3796_v46 = vpop.permute.xlu2 %1597  ;;  %v1237_v60 = vadd.f32 %v1235_v31, %v1226_v41  ;;  %v2329_v18 = vsel %vm226_vm0, %v2327_v11, %v2328_v12  ;;  %v1368_v29 = vrot.slane %v1364_v30, 2  ;;  %v1505_v31 = vstv %s3820_s17  ;;  %s3948_s17 = sld [smem:[#allocation2 + $0x396]] }
 0x146   : > { %v1285_v32 = vpop.permute.xlu1 %1284  ;;  %v1506_v42 = vmul.f32 %v3745_v58, %v1505_v31  ;;  %v2341_v45 = vrot.slane %v2337_v21, 2  ;;  %v2067_v12 = vstv %s3856_s25  ;;  %v1895_v31 = vstv %s3888_s5  ;;  %s4014_s25 = sld [smem:[#allocation2 + $0x319]] }
 0x147   : > { %v1250_v55 = vadd.f32 %v3658_v33, %v1237_v60  ;;  %2306 = vrot.lane.b32.xlu0 %v2305_v47, %s2816_s4  ;;  %v2052_v33 = vmul.f32 %v3768_v10, %v2050_v52  ;;  %v1897_v23 = vmul.f32 %v3807_v36, %v1895_v31  ;;  %s2678_s5 = sld [smem:[#allocation2 + $0x28c]] }
 0x148   : > { %v2342_v53 = vsel %vm226_vm0, %v2340_v44, %v2341_v45  ;;  %v1822_v44 = vstv %s3898_s7  ;;  %v2352_v45 = vstv %s3901_s8  ;;  %s2654_s7 = sld [smem:[#allocation2 + $0x20f]] }
 0x149   : > { %v1263_v51 = vadd.f32 %v1261_v28, %v1250_v55  ;;  %v1313_v5 = vpop.permute.xlu0 %1312  ;;  %v2056_v17 = vrot.slane %v2052_v33, 2  ;;  %v1367_v28 = vrot.slane %v1363_v39, 2  ;;  %v1526_v55 = vmul.f32 %v3750_v63, %v1524_v50  ;;  %s2708_s8 = sld [smem:[#allocation2 + $0x30f]] }
 0x14a   : > { %v1315_v13 = vadd.f32 %v1313_v5, %v1306_v2  ;;  %v1591_v5 = vmul.f32 %v3803_v37, %v1590_v56  ;;  %v1809_v39 = vstv %s3870_s29  ;;  %v1896_v50 = vmul.f32 %v3803_v37, %v1895_v31  ;;  %s4053_s29 = sld [smem:[#allocation2 + $0x399]] }
 0x14b   : > { %2045 = vrot.lane.b32.xlu2 %v2044_v62, %s2815_s26  ;;  %v1274_v3 = vadd.f32 %v1272_v25, %v1263_v51  ;;  %v2057_v41 = vsel %vm226_vm0, %v2055_v16, %v2056_v17  ;;  %v1369_v57 = vsel %vm226_vm0, %v1367_v28, %v1368_v29  ;;  %v1790_v62 = vstv %s3848_s22  ;;  %s4001_s22 = sld [smem:[#allocation2 + $0x397]] }
 0x14c   : > { %1773 = vrot.lane.b32.xlu1 %v1772_v24, %s2816_s4  ;;  %v1791_v33 = vmul.f32 %v3745_v58, %v1790_v62  ;;  %v1530_v22 = vrot.slane %v1526_v55, 1  ;;  %v1539_v16 = vmul.f32 %v3750_v63, %v1537_v27  ;;  %v2068_v17 = vmul.f32 %v3745_v58, %v2067_v12 }
 0x14d   : > { %v3830_v34 = vpop.permute.xlu2 %1890  ;;  %v1287_v15 = vadd.f32 %v1285_v32, %v1274_v3  ;;  %v1810_v28 = vmul.f32 %v3745_v58, %v1809_v39  ;;  %v1811_v29 = vmul.f32 %v3750_v63, %v1809_v39  ;;  %v1824_v55 = vmul.f32 %v3750_v63, %v1822_v44 }
 0x14e   : > { %v1321_v59 = vpop.permute.xlu1 %1320  ;;  %v2360_v12 = vstv %s3931_s14  ;;  %s4144_s14 = sld [smem:[#allocation2 + $0x38f]] }
 0x14f   : > { %v1300_v61 = vadd.f32 %v3693_v6, %v1287_v15  ;;  %v1323_v19 = vadd.f32 %v1321_v59, %v1315_v13  ;;  %1500 = vrot.lane.b32.xlu0 %v1498_v14, %s2815_s26  ;;  %v1875_v13 = vstv %s3866_s28  ;;  %v1610_v14 = vstv %s3852_s24  ;;  %s4007_s24 = sld [smem:[#allocation2 + $0x29a]] }
 0x150   : > { %v1538_v15 = vmul.f32 %v3745_v58, %v1537_v27  ;;  %v1612_v0 = vmul.f32 %v3807_v36, %v1610_v14  ;;  %v1814_v56 = vrot.slane %v1810_v28, 1  ;;  %v1901_v27 = vrot.slane %v1897_v23, 1  ;;  %s4044_s28 = sld [smem:[#allocation2 + $0x289]] }
 0x151   : > { %v1301_v35 = vmax.f32 %v1300_v61, 0.0  ;;  %v1334_v40 = vadd.f32 %v1332_v8, %v1323_v19  ;;  %v1358_v43 = vpop.permute.xlu0 %1357  ;;  %v2075_v8 = vstv %s3880_s3  ;;  %v1876_v61 = vmul.f32 %v3803_v37, %v1875_v13  ;;  %s4078_s3 = sld [smem:[#allocation2 + $0x309]] }
 0x152   : > { %v1611_v19 = vmul.f32 %v3803_v37, %v1610_v14 }
 0x153   : > { %2330 = vrot.lane.b32.xlu2 %v2329_v18, %s2815_s26  ;;  %v1347_v6 = vadd.f32 %v3722_v26, %v1334_v40  ;;  %v1302_v47 = vmul.f32 %v1301_v35, %v1301_v35  ;;  %v1782_v26 = vstv %s3837_s20  ;;  %v2076_v35 = vmul.f32 %v3745_v58, %v2075_v8  ;;  %s3985_s20 = sld [smem:[#allocation2 + $0x386]] }
 0x154   : > { %2058 = vrot.lane.b32.xlu1 %v2057_v41, %s2816_s4  ;;  %v1783_v2 = vmul.f32 %v3745_v58, %v1782_v26  ;;  %v2160_v40 = vstv %s3892_s6  ;;  %v1543_v41 = vrot.slane %v1539_v16, 1  ;;  %v1561_v8 = vstv %s3944_s16  ;;  %s2729_s6 = sld [smem:[#allocation2 + $0x389]] }
 0x155   : > { %v3859_v48 = vpop.permute.xlu2 %2175  ;;  %v1360_v60 = vadd.f32 %v1358_v43, %v1347_v6  ;;  %v3883_v25 = vadd.f32 %v1302_v47, %v3667_v38  ;;  %v1529_v38 = vrot.slane %v1525_v54, 1  ;;  %v1542_v43 = vrot.slane %v1538_v15, 1  ;;  %s4166_s16 = sld [smem:[#allocation2 + $0x295]] }
 0x156   : > { %v1382_v32 = vpop.permute.xlu1 %1381  ;;  %v1615_v47 = vrot.slane %v1611_v19, 1  ;;  %v2161_v26 = vmul.f32 %v3803_v37, %v2160_v40  ;;  %v1823_v54 = vmul.f32 %v3745_v58, %v1822_v44  ;;  %v2379_v19 = vstv %s3948_s17  ;;  %s4171_s17 = sld [smem:[#allocation2 + $0x312]] }
 0x157   : > { %v1371_v52 = vadd.f32 %v1369_v57, %v1360_v60  ;;  %1508 = vrot.lane.b32.xlu0 %v1506_v42, %s2816_s4  ;;  %v1531_v20 = vsel %vm188_vm1, %v1529_v38, %v1530_v22  ;;  %v1616_v57 = vrot.slane %v1612_v0, 1  ;;  %v1562_v40 = vmul.f32 %v3745_v58, %v1561_v8 }
 0x159   : > { %v1384_v24 = vadd.f32 %v1382_v32, %v1371_v52  ;;  %v1407_v51 = vpop.permute.xlu0 %1406  ;;  %v1815_v32 = vrot.slane %v1811_v29, 1 }
 0x15b   : > { %2343 = vrot.lane.b32.xlu2 %v2342_v53, %s2816_s4  ;;  %v1397_v4 = vadd.f32 %v3760_v7, %v1384_v24  ;;  %v1600_v7 = vadd.f32 %v3796_v46, %v1591_v5  ;;  %v1419_v46 = vstv %s3876_s30  ;;  %v1544_v53 = vsel %vm188_vm1, %v1542_v43, %v1543_v41  ;;  %s4063_s30 = sld [smem:[#allocation2 + $0x39a]] }
 0x15c   : > { %1785 = vrot.lane.b32.xlu1 %v1783_v2, %s2815_s26  ;;  %v3937_v42 = vmul.f32 %v3764_v9, %v1419_v46  ;;  %v2353_v2 = vmul.f32 %v3745_v58, %v2352_v45  ;;  %v3956_v62 = vmul.f32 %v3768_v10, %v1419_v46  ;;  %v1617_v5 = vsel %vm188_vm1, %v1615_v47, %v1616_v57 }
 0x15d   : > { %v3895_v1 = vpop.permute.xlu2 %1927  ;;  %v1401_v11 = vadd.f32 %v1400_v49, %v1397_v4  ;;  %v1900_v4 = vrot.slane %v1896_v50, 1  ;;  %v1816_v22 = vsel %vm188_vm1, %v1814_v56, %v1815_v32  ;;  %v2361_v46 = vmul.f32 %v3745_v58, %v2360_v12 }
 0x15e   : > { %v1415_v3 = vpop.permute.xlu1 %1414  ;;  %v1424_v24 = vrot.slane %v3937_v42, 1  ;;  %v1563_v43 = vmul.f32 %v3750_v63, %v1561_v8  ;;  %v1425_v57 = vrot.slane %v3956_v62, 1  ;;  %v1932_v56 = vstv %s3967_s18  ;;  %s4175_s18 = sld [smem:[#allocation2 + $0x218]] }
 0x15f   : > { %v1409_v30 = vadd.f32 %v1407_v51, %v1401_v11  ;;  %1793 = vrot.lane.b32.xlu0 %v1791_v33, %s2816_s4  ;;  %v2094_v33 = vstv %s3921_s12  ;;  %v2180_v11 = vstv %s3913_s11  ;;  %v1902_v44 = vsel %vm188_vm1, %v1900_v4, %v1901_v27  ;;  %s2732_s11 = sld [smem:[#allocation2 + $0x38c]] }
 0x160   : > { %v2095_v39 = vmul.f32 %v3745_v58, %v2094_v33  ;;  %v2181_v16 = vmul.f32 %v3803_v37, %v2180_v11  ;;  %v1567_v62 = vrot.slane %v1563_v43, 2  ;;  %v1574_v12 = vstv %s3991_s21  ;;  %s4140_s12 = sld [smem:[#allocation2 + $0x215]] }
 0x161   : > { %v3916_v59 = vadd.f32 %v1415_v3, %v1409_v30  ;;  %v1606_v18 = vpop.permute.xlu0 %1605  ;;  %v1828_v3 = vrot.slane %v1824_v55, 1  ;;  %v2096_v30 = vmul.f32 %v3750_v63, %v2094_v33  ;;  %v1426_v33 = vsel %vm188_vm1, %v1424_v24, %v1425_v57  ;;  %s4207_s21 = sld [smem:[#allocation2 + $0x392]] }
 0x162   : > { %v1608_v21 = vadd.f32 %v1606_v18, %v1600_v7  ;;  %v1647_v7 = vstv %s3927_s13  ;;  %v2099_v31 = vrot.slane %v2095_v39, 1  ;;  %v2185_v45 = vrot.slane %v2181_v16, 1  ;;  %s4142_s13 = sld [smem:[#allocation2 + $0x212]] }
 0x163   : > { %1532 = vrot.lane.b32.xlu2 %v1531_v20, %s2815_s26  ;;  %v2107_v20 = vstv %s3940_s15  ;;  %v1648_v18 = vmul.f32 %v3803_v37, %v1647_v7  ;;  %v1576_v8 = vmul.f32 %v3750_v63, %v1574_v12  ;;  %s4160_s15 = sld [smem:[#allocation2 + $0x292]] }
 0x164   : > { %2070 = vrot.lane.b32.xlu1 %v2068_v17, %s2815_s26  ;;  %v1619_v15 = vadd.f32 %v1617_v5, %v1608_v21  ;;  %v2182_v17 = vmul.f32 %v3807_v36, %v2180_v11  ;;  %v2108_v28 = vmul.f32 %v3745_v58, %v2107_v20  ;;  %v2109_v29 = vmul.f32 %v3750_v63, %v2107_v20 }
 0x165   : > { %v3934_v6 = vpop.permute.xlu2 %2212  ;;  %v1652_v32 = vrot.slane %v1648_v18, 2  ;;  %v1934_v20 = vmul.f32 %v3807_v36, %v1932_v56 }
 0x166   : > { %v1883_v60 = vpop.permute.xlu1 %1882  ;;  %v2186_v47 = vrot.slane %v2182_v17, 1  ;;  %v1575_v17 = vmul.f32 %v3745_v58, %v1574_v12 }
 0x167   : > { %v1885_v52 = vadd.f32 %v1883_v60, %v1876_v61  ;;  %2078 = vrot.lane.b32.xlu0 %v2076_v35, %s2816_s4  ;;  %v1649_v61 = vmul.f32 %v3807_v36, %v1647_v7  ;;  %v2100_v35 = vrot.slane %v2096_v30, 1  ;;  %v2380_v60 = vmul.f32 %v3745_v58, %v2379_v19 }
 0x168   : > { %v2187_v4 = vsel %vm188_vm1, %v2185_v45, %v2186_v47  ;;  %v2217_v7 = vstv %s3985_s20  ;;  %v1938_v45 = vrot.slane %v1934_v20, 2  ;;  %s4200_s20 = sld [smem:[#allocation2 + $0x298]] }
 0x169   : > { %v3960_v49 = vadd.f32 %v3830_v34, %v1885_v52  ;;  %v2168_v51 = vpop.permute.xlu0 %2167  ;;  %v1827_v34 = vrot.slane %v1823_v54, 1  ;;  %v1653_v23 = vrot.slane %v1649_v61, 2  ;;  %v2112_v52 = vrot.slane %v2108_v28, 1 }
 0x16a   : > { %v2170_v38 = vadd.f32 %v2168_v51, %v2161_v26  ;;  %v2381_v26 = vmul.f32 %v3750_v63, %v2379_v19  ;;  %v2101_v55 = vsel %vm188_vm1, %v2099_v31, %v2100_v35  ;;  %v1846_v51 = vstv %s3980_s19  ;;  %s4179_s19 = sld [smem:[#allocation2 + $0x315]] }
 0x16b   : > { %1545 = vrot.lane.b32.xlu2 %v1544_v53, %s2816_s4  ;;  %v1829_v21 = vsel %vm188_vm1, %v1827_v34, %v1828_v3  ;;  %v2113_v53 = vrot.slane %v2109_v29, 1  ;;  %v1904_v5 = vadd.f32 %v1902_v44, %v3960_v49  ;;  %v2384_v27 = vrot.slane %v2380_v60, 1 }
 0x16c   : > { %v3972_v13 = vadd.f32 %v3859_v48, %v2170_v38  ;;  %2355 = vrot.lane.b32.xlu1 %v2353_v2, %s2815_s26  ;;  %v1566_v2 = vrot.slane %v1562_v40, 2  ;;  %v4022_v38 = vmul.f32 %v3803_v37, %v1932_v56  ;;  %v2385_v11 = vrot.slane %v2381_v26, 1 }
 0x16d   : > { %v3975_v14 = vpop.permute.xlu2 %1964  ;;  %v2114_v49 = vsel %vm188_vm1, %v2112_v52, %v2113_v53  ;;  %v1847_v3 = vmul.f32 %v3745_v58, %v1846_v51  ;;  %v1848_v42 = vmul.f32 %v3750_v63, %v1846_v51  ;;  %v1654_v30 = vsel %vm226_vm0, %v1652_v32, %v1653_v23 }
 0x16e   : > { %v1630_v48 = vpop.permute.xlu1 %1629  ;;  %v2189_v24 = vadd.f32 %v2187_v4, %v3972_v13  ;;  %v1568_v39 = vsel %vm226_vm0, %v1566_v2, %v1567_v62  ;;  %v2386_v13 = vsel %vm188_vm1, %v2384_v27, %v2385_v11  ;;  %v2218_v18 = vmul.f32 %v3803_v37, %v2217_v7 }
 0x16f   : > { %v1632_v0 = vadd.f32 %v1630_v48, %v1619_v15  ;;  %1817 = vrot.lane.b32.xlu0 %v1816_v22, %s2815_s26  ;;  %v2392_v48 = vstv %s4001_s22  ;;  %v2219_v61 = vmul.f32 %v3807_v36, %v2217_v7  ;;  %v1859_v19 = vstv %s4007_s24  ;;  %s4216_s22 = sld [smem:[#allocation2 + $0x395]] }
 0x170   : > { %v2393_v31 = vmul.f32 %v3745_v58, %v2392_v48  ;;  %v2394_v35 = vmul.f32 %v3750_v63, %v2392_v48  ;;  %v2131_v40 = vstv %s4014_s25  ;;  %v1579_v36 = vrot.slane %v1575_v17, 2  ;;  %s4223_s24 = sld [smem:[#allocation2 + $0x318]]  ;;  %s2531_s25 = sshll.u32 %s4274_s10, 3 }
 0x171   : > { %v1643_v41 = vpop.permute.xlu0 %1642  ;;  %v1937_v44 = vrot.slane %v4022_v38, 2  ;;  %v1861_v47 = vmul.f32 %v3750_v63, %v1859_v19  ;;  %v2133_v26 = vmul.f32 %v3750_v63, %v2131_v40  ;;  %v2144_v23 = vstv %s4034_s27 }
 0x172   : > { %v1645_v50 = vadd.f32 %v1643_v41, %v1632_v0  ;;  %v1851_v0 = vrot.slane %v1847_v3, 2  ;;  %v1580_v41 = vrot.slane %v1576_v8, 2  ;;  %v2397_v56 = vrot.slane %v2393_v31, 1 }
 0x173   : > { %1830 = vrot.lane.b32.xlu2 %v1829_v21, %s2816_s4  ;;  %v1852_v21 = vrot.slane %v1848_v42, 2  ;;  %v2398_v32 = vrot.slane %v2394_v35, 1  ;;  %v2223_v2 = vrot.slane %v2219_v61, 2  ;;  %v1939_v51 = vsel %vm226_vm0, %v1937_v44, %v1938_v45 }
 0x174   : > { %2363 = vrot.lane.b32.xlu1 %v2361_v46, %s2816_s4  ;;  %v1656_v43 = vadd.f32 %v1654_v30, %v1645_v50  ;;  %v2132_v50 = vmul.f32 %v3745_v58, %v2131_v40  ;;  %v1581_v53 = vsel %vm226_vm0, %v1579_v36, %v1580_v41  ;;  %v1684_v4 = vstv %s4044_s28 }
 0x175   : > { %v4010_v54 = vpop.permute.xlu2 %2249  ;;  %v1853_v60 = vsel %vm226_vm0, %v1851_v0, %v1852_v21  ;;  %v2145_v38 = vmul.f32 %v3745_v58, %v2144_v23  ;;  %v2137_v27 = vrot.slane %v2133_v26, 2  ;;  %v2399_v12 = vsel %vm188_vm1, %v2397_v56, %v2398_v32 }
 0x176   : > { %v1915_v22 = vpop.permute.xlu1 %1914  ;;  %v2146_v7 = vmul.f32 %v3750_v63, %v2144_v23  ;;  %v2416_v42 = vstv %s4053_s29  ;;  %v2254_v56 = vstv %s2729_s6 }
 0x177   : > { %v1917_v34 = vadd.f32 %v1915_v22, %v1904_v5  ;;  %2102 = vrot.lane.b32.xlu0 %v2101_v55, %s2815_s26  ;;  %v2222_v55 = vrot.slane %v2218_v18, 2  ;;  %v2136_v22 = vrot.slane %v2132_v50, 2  ;;  %v2418_v61 = vmul.f32 %v3750_v63, %v2416_v42 }
 0x178   : > { %v2150_v48 = vrot.slane %v2146_v7, 2 }
 0x179   : > { %v1930_v15 = vadd.f32 %v3895_v1, %v1917_v34  ;;  %v2200_v16 = vpop.permute.xlu0 %2199  ;;  %v1428_v1 = vadd.f32 %v1426_v33, %v3916_v59  ;;  %v1865_v33 = vrot.slane %v1861_v47, 2  ;;  %v2224_v3 = vsel %vm226_vm0, %v2222_v55, %v2223_v2 }
 0x17a   : > { %v2202_v46 = vadd.f32 %v2200_v16, %v2189_v24  ;;  %v2149_v16 = vrot.slane %v2145_v38, 2  ;;  %v2138_v17 = vsel %vm226_vm0, %v2136_v22, %v2137_v27  ;;  %v2422_v40 = vrot.slane %v2418_v61, 2 }
 0x17b   : > { %2115 = vrot.lane.b32.xlu2 %v2114_v49, %s2816_s4  ;;  %v1941_v49 = vadd.f32 %v1939_v51, %v1930_v15  ;;  %v2417_v15 = vmul.f32 %v3745_v58, %v2416_v42  ;;  %v1704_v47 = vstv %s2678_s5  ;;  %v1456_v38 = vstv %s2654_s7 }
 0x17c   : > { %v2215_v28 = vadd.f32 %v3934_v6, %v2202_v46  ;;  %1569 = vrot.lane.b32.xlu1 %v1568_v39, %s2815_s26  ;;  %v1860_v6 = vmul.f32 %v3745_v58, %v1859_v19  ;;  %v1685_v39 = vmul.f32 %v3764_v9, %v1684_v4  ;;  %v2429_v46 = vstv %s4063_s30  ;;  %s155_s30 = scalar_lea.vmem %s4272_s2, %s2531_s25 }
 0x17d   : > { %v1439_v29 = vpop.permute.xlu2 %1438  ;;  %v2431_v19 = vmul.f32 %v3750_v63, %v2429_v46  ;;  %v2421_v35 = vrot.slane %v2417_v15, 2  ;;  %v1706_v50 = vmul.f32 %v3768_v10, %v1704_v47  ;;  %v1458_v7 = vmul.f32 %v3768_v10, %v1456_v38 }
 0x17e   : > { %v1441_v37 = vadd.f32 %v1439_v29, %v1428_v1  ;;  %v1667_v59 = vpop.permute.xlu1 %1666  ;;  %v1864_v5 = vrot.slane %v1860_v6, 2  ;;  %v2226_v8 = vadd.f32 %v2224_v3, %v2215_v28  ;;  %v2430_v1 = vmul.f32 %v3745_v58, %v2429_v46 }
 0x17f   : > { %v1669_v57 = vadd.f32 %v1667_v59, %v1656_v43  ;;  %2387 = vrot.lane.b32.xlu0 %v2386_v13, %s2815_s26  ;;  %v2435_v28 = vrot.slane %v2431_v19, 2  ;;  %v1969_v43 = vstv %s4078_s3  ;;  %v2423_v45 = vsel %vm226_vm0, %v2421_v35, %v2422_v40 }
 0x180   : > { %v1866_v20 = vsel %vm226_vm0, %v1864_v5, %v1865_v33  ;;  %v2434_v21 = vrot.slane %v2430_v1, 2  ;;  %v1710_v2 = vrot.slane %v1706_v50, 1 }
 0x181   : > { %v1680_v52 = vpop.permute.xlu0 %1679 }
 0x182   : > { %v1682_v62 = vadd.f32 %v1680_v52, %v1669_v57  ;;  %v2436_v59 = vsel %vm226_vm0, %v2434_v21, %v2435_v28  ;;  %v2255_v52 = vmul.f32 %v3764_v9, %v2254_v56 }
 0x183   : > { %1854 = vrot.lane.b32.xlu2 %v1853_v60, %s2815_s26  ;;  %v1705_v60 = vmul.f32 %v3764_v9, %v1704_v47 }
 0x184   : > { %1582 = vrot.lane.b32.xlu1 %v1581_v53, %s2816_s4  ;;  %v1686_v31 = vadd.f32 %v1685_v39, %v1682_v62  ;;  %v1462_v39 = vrot.slane %v1458_v7, 2 }
 0x185   : > { %v1452_v11 = vpop.permute.xlu2 %1451  ;;  %v1709_v55 = vrot.slane %v1705_v60, 1 }
 0x186   : > { %v4073_v34 = vadd.f32 %v1452_v11, %v1441_v37  ;;  %v1952_v24 = vpop.permute.xlu1 %1951 }
 0x187   : > { %v1954_v30 = vadd.f32 %v1952_v24, %v1941_v49  ;;  %2400 = vrot.lane.b32.xlu0 %v2399_v12, %s2816_s4  ;;  %v1711_v5 = vsel %vm188_vm1, %v1709_v55, %v1710_v2  ;;  %v1457_v12 = vmul.f32 %v3764_v9, %v1456_v38  ;;  %v1513_v55 = vstv %s4140_s12 }
 0x189   : > { %v1967_v13 = vadd.f32 %v3975_v14, %v1954_v30  ;;  %v2237_v18 = vpop.permute.xlu0 %2236  ;;  %v2151_v14 = vsel %vm226_vm0, %v2149_v16, %v2150_v48  ;;  %v1461_v24 = vrot.slane %v1457_v12, 2 }
 0x18a   : > { %v2239_v0 = vadd.f32 %v2237_v18, %v2226_v8 }
 0x18b   : > { %2139 = vrot.lane.b32.xlu2 %v2138_v17, %s2815_s26  ;;  %v1463_v16 = vsel %vm226_vm0, %v1461_v24, %v1462_v39 }
 0x18c   : > { %v2252_v29 = vadd.f32 %v4010_v54, %v2239_v0  ;;  %1867 = vrot.lane.b32.xlu1 %v1866_v20, %s2816_s4  ;;  %v1970_v54 = vmul.f32 %v3764_v9, %v1969_v43  ;;  %v1465_v17 = vadd.f32 %v1463_v16, %v4073_v34 }
 0x18d   : > { %v1737_v41 = vpop.permute.xlu2 %1736 }
 0x18e   : > { %v1692_v37 = vpop.permute.xlu1 %1691  ;;  %v1971_v57 = vadd.f32 %v1970_v54, %v1967_v13  ;;  %v2256_v51 = vadd.f32 %v2255_v52, %v2252_v29  ;;  %v2274_v54 = vstv %s2732_s11 }
 0x18f   : > { %v1694_v36 = vadd.f32 %v1692_v37, %v1686_v31  ;;  %2152 = vrot.lane.b32.xlu0 %v2151_v14, %s2816_s4  ;;  %v2275_v60 = vmul.f32 %v3764_v9, %v2274_v54  ;;  %v2276_v50 = vmul.f32 %v3768_v10, %v2274_v54  ;;  %v1550_v54 = vstv %s4175_s18 }
 0x191   : > { %v1700_v44 = vpop.permute.xlu0 %1699 }
 0x192   : > { %v1702_v6 = vadd.f32 %v1700_v44, %v1694_v36  ;;  %v2026_v36 = vstv %s2708_s8 }
 0x193   : > { %2437 = vrot.lane.b32.xlu2 %v2436_v59, %s2816_s4  ;;  %s2681_s4 = sld [smem:[#allocation2 + $0x28f]]  ;;  %v2028_v47 = vmul.f32 %v3768_v10, %v2026_v36 }
 0x194   : > { %2424 = vrot.lane.b32.xlu1 %v2423_v45, %s2815_s26  ;;  %v1713_v22 = vadd.f32 %v1711_v5, %v1702_v6  ;;  %s2705_s26 = sld [smem:[#allocation2 + $0x30c]]  ;;  %v2027_v6 = vmul.f32 %v3764_v9, %v2026_v36  ;;  %v1493_v5 = vstv %s4142_s13 }
 0x195   : > { %v4103_v53 = vpop.permute.xlu2 %2021 }
 0x196   : > { %v1977_v26 = vpop.permute.xlu1 %1976  ;;  %v2031_v2 = vrot.slane %v2027_v6, 2 }
 0x197   : > { %v1979_v32 = vadd.f32 %v1977_v26, %v1971_v57 }
 0x199   : > { %v1985_v23 = vpop.permute.xlu0 %1984  ;;  %v1741_v43 = vstv %s2681_s4 }
 0x19a   : > { %v1987_v62 = vadd.f32 %v1985_v23, %v1979_v32  ;;  %v1989_v34 = vstv %s2705_s26  ;;  %v1742_v59 = vmul.f32 %v3764_v9, %v1741_v43  ;;  %v1743_v44 = vmul.f32 %v3768_v10, %v1741_v43 }
 0x19b   : > { %v1990_v29 = vmul.f32 %v3764_v9, %v1989_v34  ;;  %v1991_v14 = vmul.f32 %v3768_v10, %v1989_v34 }
 0x19c   : > { %v1746_v56 = vrot.slane %v1742_v59, 2  ;;  %v1747_v32 = vrot.slane %v1743_v44, 2  ;;  %v4196_v59 = vld [vmem:[%s2851_s23 + $0x20] sm:$0xff] }
 0x19d   : > { %v4108_v49 = vpop.permute.xlu2 %1760  ;;  %v1994_v35 = vrot.slane %v1990_v29, 1  ;;  %v1995_v40 = vrot.slane %v1991_v14, 1 }
 0x19e   : > { %v2262_v4 = vpop.permute.xlu1 %2261 }
 0x19f   : > { %v2264_v33 = vadd.f32 %v2262_v4, %v2256_v51  ;;  %v1996_v45 = vsel %vm188_vm1, %v1994_v35, %v1995_v40  ;;  %v2032_v51 = vrot.slane %v2028_v47, 2  ;;  %v2279_v4 = vrot.slane %v2275_v60, 1  ;;  %v4211_v47 = vld [vmem:[%s2851_s23 + $0x28] sm:$0x3]  ;;  %s4243_s23 = sld [smem:[#allocation2 + $0x398]] }
 0x1a0   : > { %v1998_v57 = vadd.f32 %v1996_v45, %v1987_v62  ;;  %v2311_v62 = vstv %s4144_s14  ;;  %v1798_v35 = vstv %s4166_s16  ;;  %v2083_v60 = vstv %s4179_s19 }
 0x1a1   : > { %v1724_v27 = vpop.permute.xlu0 %1723  ;;  %v2033_v24 = vsel %vm226_vm0, %v2031_v2, %v2032_v51  ;;  %v2312_v39 = vmul.f32 %v3764_v9, %v2311_v62  ;;  %v2313_v16 = vmul.f32 %v3768_v10, %v2311_v62 }
 0x1a2   : > { %v1726_v11 = vadd.f32 %v1724_v27, %v1713_v22  ;;  %v1748_v22 = vsel %vm226_vm0, %v1746_v56, %v1747_v32  ;;  %v1514_v27 = vmul.f32 %v3745_v58, %v1513_v55 }
 0x1a3   : > { %v2316_v29 = vrot.slane %v2312_v39, 2  ;;  %v2317_v14 = vrot.slane %v2313_v16, 2  ;;  %v2348_v16 = vstv %s4207_s21 }
 0x1a4   : > { %v4110_v3 = vadd.f32 %v1737_v41, %v1726_v11  ;;  %v1515_v11 = vmul.f32 %v3750_v63, %v1513_v55  ;;  %v2085_v55 = vmul.f32 %v4211_v47, %v2083_v60 }
 0x1a5   : > { %v4116_v8 = vpop.permute.xlu2 %2045 }
 0x1a6   : > { %v2270_v42 = vpop.permute.xlu1 %2269 }
 0x1a7   : > { %v4112_v30 = vadd.f32 %v2270_v42, %v2264_v33  ;;  %v2280_v33 = vrot.slane %v2276_v50, 1  ;;  %v1494_v42 = vmul.f32 %v3745_v58, %v1493_v5  ;;  %v2318_v50 = vsel %vm226_vm0, %v2316_v29, %v2317_v14 }
 0x1a8   : > { %v2349_v29 = vmul.f32 %v4196_v59, %v2348_v16 }
 0x1a9   : > { %v2009_v20 = vpop.permute.xlu0 %2008  ;;  %v2281_v63 = vsel %vm188_vm1, %v2279_v4, %v2280_v33 }
 0x1aa   : > { %v2011_v52 = vadd.f32 %v2009_v20, %v1998_v57  ;;  %v1750_v20 = vadd.f32 %v1748_v22, %v4110_v3  ;;  %v2283_v9 = vadd.f32 %v2281_v63, %v4112_v30  ;;  %v2063_v30 = vstv %s4171_s17 }
 0x1ab   : > { %v1800_v57 = vmul.f32 %v4211_v47, %v1798_v35 }
 0x1ac   : > { %v2024_v12 = vadd.f32 %v4103_v53, %v2011_v52  ;;  %v1519_v53 = vrot.slane %v1515_v11, 1  ;;  %v1763_v3 = vadd.f32 %v4108_v49, %v1750_v20  ;;  %v2084_v52 = vmul.f32 %v4196_v59, %v2083_v60 }
 0x1ad   : > { %v4120_v18 = vpop.permute.xlu2 %2330  ;;  %v1804_v5 = vrot.slane %v1800_v57, 1 }
 0x1ae   : > { %v1476_v48 = vpop.permute.xlu1 %1475  ;;  %v2035_v58 = vadd.f32 %v2033_v24, %v2024_v12  ;;  %v2089_v24 = vrot.slane %v2085_v55, 1 }
 0x1af   : > { %v1478_v15 = vadd.f32 %v1476_v48, %v1465_v17  ;;  %v1518_v17 = vrot.slane %v1514_v27, 1  ;;  %v1835_v27 = vstv %s4200_s20 }
 0x1b0   : > { %v2048_v49 = vadd.f32 %v4116_v8, %v2035_v58  ;;  %v1837_v58 = vmul.f32 %v4211_v47, %v1835_v27 }
 0x1b1   : > { %v4118_v46 = vpop.permute.xlu0 %2293  ;;  %v1520_v36 = vsel %vm188_vm1, %v1518_v17, %v1519_v53  ;;  %v1836_v17 = vmul.f32 %v4196_v59, %v1835_v27 }
 0x1b2   : > { %v2296_v43 = vadd.f32 %v4118_v46, %v2283_v9  ;;  %v1799_v46 = vmul.f32 %v4196_v59, %v1798_v35 }
 0x1b4   : > { %v1803_v51 = vrot.slane %v1799_v46, 1 }
 0x1b5   : > { %v4126_v19 = vpop.permute.xlu2 %2343 }
 0x1b6   : > { %v1489_v13 = vpop.permute.xlu1 %1488  ;;  %v1805_v63 = vsel %vm188_vm1, %v1803_v51, %v1804_v5 }
 0x1b7   : > { %v1491_v7 = vadd.f32 %v1489_v13, %v1478_v15  ;;  %v1778_v13 = vstv %s4160_s15 }
 0x1b8   : > { %v1779_v44 = vmul.f32 %v4196_v59, %v1778_v13  ;;  %v2368_v13 = vstv %s4216_s22 }
 0x1b9   : > { %v4122_v61 = vpop.permute.xlu0 %2306  ;;  %v1495_v15 = vadd.f32 %v1494_v42, %v1491_v7  ;;  %v2088_v42 = vrot.slane %v2084_v52, 1  ;;  %v2369_v35 = vmul.f32 %v4196_v59, %v2368_v13 }
 0x1ba   : > { %v2309_v6 = vadd.f32 %v4122_v61, %v2296_v43  ;;  %v1551_v61 = vmul.f32 %v4196_v59, %v1550_v54 }
 0x1bb   : > { %v2373_v60 = vrot.slane %v2369_v35, 1 }
 0x1bc   : > { %v2320_v2 = vadd.f32 %v2318_v50, %v2309_v6  ;;  %v1555_v11 = vrot.slane %v1551_v61, 2 }
 0x1bd   : > { %v4136_v31 = vpop.permute.xlu2 %1532 }
 0x1be   : > { %v4124_v1 = vpop.permute.xlu1 %1773  ;;  %v2333_v39 = vadd.f32 %v4120_v18, %v2320_v2  ;;  %v2090_v18 = vsel %vm188_vm1, %v2088_v42, %v2089_v24 }
 0x1bf   : > { %v1776_v45 = vadd.f32 %v4124_v1, %v1763_v3  ;;  %v2064_v1 = vmul.f32 %v4196_v59, %v2063_v30  ;;  %v2370_v30 = vmul.f32 %v4211_v47, %v2368_v13 }
 0x1c1   : > { %v4128_v0 = vpop.permute.xlu0 %1500  ;;  %v1780_v32 = vadd.f32 %v1779_v44, %v1776_v45  ;;  %v2374_v50 = vrot.slane %v2370_v30, 1 }
 0x1c2   : > { %v1503_v10 = vadd.f32 %v4128_v0, %v1495_v15 }
 0x1c3   : > { %v2375_v5 = vsel %vm188_vm1, %v2373_v60, %v2374_v50 }
 0x1c5   : > { %v4155_v26 = vpop.permute.xlu2 %1545 }
 0x1c6   : > { %v4130_v21 = vpop.permute.xlu1 %2058 }
 0x1c7   : > { %v2061_v8 = vadd.f32 %v4130_v21, %v2048_v49  ;;  %v1552_v21 = vmul.f32 %v4211_v47, %v1550_v54 }
 0x1c9   : > { %v4132_v28 = vpop.permute.xlu0 %1508  ;;  %v2065_v22 = vadd.f32 %v2064_v1, %v2061_v8 }
 0x1ca   : > { %v1511_v0 = vadd.f32 %v4132_v28, %v1503_v10 }
 0x1cc   : > { %v1522_v56 = vadd.f32 %v1520_v36, %v1511_v0  ;;  %v1841_v36 = vrot.slane %v1837_v58, 2 }
 0x1cd   : > { %v4187_v34 = vpop.permute.xlu2 %1830 }
 0x1ce   : > { %v4138_v37 = vpop.permute.xlu1 %1785  ;;  %v1535_v12 = vadd.f32 %v4136_v31, %v1522_v56  ;;  %v2120_v31 = vstv %s4223_s24  ;;  %v2405_v56 = vstv %s4243_s23 }
 0x1cf   : > { %v1788_v4 = vadd.f32 %v4138_v37, %v1780_v32  ;;  %v1556_v37 = vrot.slane %v1552_v21, 2  ;;  %v2122_v10 = vmul.f32 %v4211_v47, %v2120_v31  ;;  %v2406_v21 = vmul.f32 %v4196_v59, %v2405_v56 }
 0x1d1   : > { %v4146_v41 = vpop.permute.xlu0 %1793  ;;  %v1557_v3 = vsel %vm226_vm0, %v1555_v11, %v1556_v37  ;;  %v2126_v46 = vrot.slane %v2122_v10, 2 }
 0x1d2   : > { %v1796_v7 = vadd.f32 %v4146_v41, %v1788_v4  ;;  %v1548_v41 = vadd.f32 %v4155_v26, %v1535_v12  ;;  %v1840_v26 = vrot.slane %v1836_v17, 2  ;;  %v2407_v4 = vmul.f32 %v4211_v47, %v2405_v56 }
 0x1d4   : > { %v1807_v9 = vadd.f32 %v1805_v63, %v1796_v7  ;;  %v1842_v57 = vsel %vm226_vm0, %v1840_v26, %v1841_v36  ;;  %v2411_v7 = vrot.slane %v2407_v4, 2 }
 0x1d5   : > { %v2116_v33 = vpop.permute.xlu2 %2115 }
 0x1d6   : > { %v4157_v23 = vpop.permute.xlu1 %2070 }
 0x1d7   : > { %v2073_v20 = vadd.f32 %v4157_v23, %v2065_v22  ;;  %v2346_v23 = vadd.f32 %v4126_v19, %v2333_v39  ;;  %v1559_v19 = vadd.f32 %v1557_v3, %v1548_v41 }
 0x1d9   : > { %v4164_v38 = vpop.permute.xlu0 %2078  ;;  %v2350_v45 = vadd.f32 %v2349_v29, %v2346_v23 }
 0x1da   : > { %v2081_v53 = vadd.f32 %v4164_v38, %v2073_v20  ;;  %v2121_v38 = vmul.f32 %v4196_v59, %v2120_v31 }
 0x1dc   : > { %v2092_v44 = vadd.f32 %v2090_v18, %v2081_v53  ;;  %v2125_v6 = vrot.slane %v2121_v38, 2 }
 0x1dd   : > { %v1855_v49 = vpop.permute.xlu2 %1854 }
 0x1de   : > { %v4184_v48 = vpop.permute.xlu1 %2355  ;;  %v2127_v2 = vsel %vm226_vm0, %v2125_v6, %v2126_v46 }
 0x1df   : > { %v2358_v1 = vadd.f32 %v4184_v48, %v2350_v45 }
 0x1e1   : > { %v1818_v40 = vpop.permute.xlu0 %1817 }
 0x1e2   : > { %v1820_v14 = vadd.f32 %v1818_v40, %v1807_v9 }
 0x1e4   : > { %v1833_v54 = vadd.f32 %v4187_v34, %v1820_v14 }
 0x1e5   : > { %v2140_v48 = vpop.permute.xlu2 %2139 }
 0x1e6   : > { %v4220_v28 = vpop.permute.xlu1 %2363  ;;  %v1844_v55 = vadd.f32 %v1842_v57, %v1833_v54 }
 0x1e7   : > { %v2366_v52 = vadd.f32 %v4220_v28, %v2358_v1  ;;  %v2410_v28 = vrot.slane %v2406_v21, 2 }
 0x1e8   : > { %v1857_v27 = vadd.f32 %v1855_v49, %v1844_v55 }
 0x1e9   : > { %v2103_v62 = vpop.permute.xlu0 %2102  ;;  %v2377_v11 = vadd.f32 %v2375_v5, %v2366_v52  ;;  %v2412_v59 = vsel %vm226_vm0, %v2410_v28, %v2411_v7 }
 0x1ea   : > { %v2105_v0 = vadd.f32 %v2103_v62, %v2092_v44 }
 0x1ec   : > { %v2118_v32 = vadd.f32 %v2116_v33, %v2105_v0 }
 0x1ed   : > { %v2438_v13 = vpop.permute.xlu2 %2437 }
 0x1ee   : > { %v1570_v15 = vpop.permute.xlu1 %1569  ;;  %v2129_v22 = vadd.f32 %v2127_v2, %v2118_v32 }
 0x1ef   : > { %v1572_v40 = vadd.f32 %v1570_v15, %v1559_v19 }
 0x1f0   : > { %v2142_v39 = vadd.f32 %v2140_v48, %v2129_v22 }
 0x1f1   : > { %v2388_v43 = vpop.permute.xlu0 %2387 }
 0x1f2   : > { %v2390_v42 = vadd.f32 %v2388_v43, %v2377_v11 }
 0x1f6   : > { %v1583_v8 = vpop.permute.xlu1 %1582 }
 0x1f7   : > { %v1585_v61 = vadd.f32 %v1583_v8, %v1572_v40 }
 0x1f9   : > { %v1586_v51 = vmax.f32 %v1585_v61, 0.0  ;;  %v2401_v34 = vpop.permute.xlu0 %2400 }
 0x1fa   : > { %v2403_v20 = vadd.f32 %v2401_v34, %v2390_v42 }
 0x1fb   : > { %v1587_v62 = vmul.f32 %v1586_v51, %v1586_v51 }
 0x1fc   : > { %v2414_v58 = vadd.f32 %v2412_v59, %v2403_v20 }
 0x1fd   : > { %v1588_v33 = vadd.f32 %v1587_v62, %v3883_v25 }
 0x1fe   : > { %v1868_v12 = vpop.permute.xlu1 %1867 }
 0x1ff   : > { %v1870_v24 = vadd.f32 %v1868_v12, %v1857_v27 }
 0x201   : > { %v1871_v63 = vmax.f32 %v1870_v24, 0.0  ;;  %v2153_v37 = vpop.permute.xlu0 %2152 }
 0x202   : > { %v2155_v16 = vadd.f32 %v2153_v37, %v2142_v39 }
 0x203   : > { %v1872_v47 = vmul.f32 %v1871_v63, %v1871_v63 }
 0x204   : > { %v2156_v17 = vmax.f32 %v2155_v16, 0.0 }
 0x205   : > { %v1873_v53 = vadd.f32 %v1872_v47, %v1588_v33 }
 0x206   : > { %v2157_v15 = vmul.f32 %v2156_v17, %v2156_v17  ;;  %v2425_v31 = vpop.permute.xlu1 %2424 }
 0x207   : > { %v2427_v25 = vadd.f32 %v2425_v31, %v2414_v58 }
 0x208   : > { %v2158_v41 = vadd.f32 %v2157_v15, %v1873_v53 }
 0x209   : > { %v2440_v9 = vadd.f32 %v2438_v13, %v2427_v25 }
 0x20b   : > { %v2441_v18 = vmax.f32 %v2440_v9, 0.0 }
 0x20d   : > { %v2442_v23 = vmul.f32 %v2441_v18, %v2441_v18 }
 0x20f   : > { %v2443_v29 = vadd.f32 %v2442_v23, %v2158_v41 }
 0x211   : > { %v2445_v3 = vsel %vm2444_vm2, %v2443_v29, 0.0 }
 0x212   : > { %2446 = vadd.xlane.f32.xlu0 %v2445_v3 }
 0x285   : > { %v2447_v14 = vpop.xlane.xlu0 %2446 }
 0x286   : > { %v2448_v38 = vrot.slane %v2447_v14, 4 }
 0x288   : > { %v2449_v10 = vadd.f32 %v2448_v38, %v2447_v14 }
 0x28a   : > { %v2450_v35 = vrot.slane %v2449_v10, 2 }
 0x28c   : > { %v2451_v43 = vadd.f32 %v2450_v35, %v2449_v10 }
 0x28e   : > { %v2452_v26 = vrot.slane %v2451_v43, 1 }
 0x290   : > { %v2453_v36 = vadd.f32 %v2452_v26, %v2451_v43 }
 0x292   : > { %2750 = vpush %v2453_v36 }
 0x2c3   : > { %s2751_s27 = spop %2750 }
 0x2c4   : > { %s2455_s3 = ssub.f32 0.0, %s2751_s27 }
 0x2c6   : > { %v2456_v44 = vstv %s2455_s3 }
 0x2c7   : > { %2457 = vst [vmem:[%s155_s30] sm:$0xff] %v2456_v44 }
 0x2c8 PF: > { %s13_s9 = sadd.s32 1, %s2812_s9  }
 0x2c9   : > { %p10_p7 = scmp.ge.s32.totalorder %s13_s9, 6  }
 0x2cb   :  { %12 = sbr.rel (!%p10_p7) target bundleno = 1 (0x1), region = 63 }
 0x2d0   :  { %2477 = vsyncpa [#allocation3], 1 }
 0x2d1   :  { %2479 = vsyncpa [#allocation3 + $0x1], 1 }

</bundles_post_ra>
